<compile_context>
chip_gen: v5e
topology: v5e:2x2
jax: 0.10.0
libtpu: 0.0.40
codegen_flags: <defaults>
</compile_context>

<pallas_src>
import functools

import numpy as np
import jax
import jax.numpy as jnp
from jax.experimental import pallas as pl
from jax.experimental.pallas import tpu as pltpu

_C = 64            # internal (lane) channel width; all layers padded to this
_BN_EPS = 1e-5     # PyTorch BatchNorm2d default
_ROW_ALIGN = 16    # bf16 sublane tile height -> keeps dy-tap slices aligned


def _round_up(x, m):
    return (x + m - 1) // m * m


def _vmem_limit_bytes():
    """Per-generation VMEM limit (v5e/v6e: 128 MiB physical, v7x: 64 MiB)."""
    cap = 128 * 1024 * 1024
    try:
        cap = int(getattr(pltpu.get_tpu_info(), "vmem_capacity_bytes", cap))
    except Exception:
        pass
    return int(min(cap * 3 // 4, 100 * 1024 * 1024))


def _make_fused_kernel(Rb, C, Wp, num_layers):
    """Fused L-layer kernel for one image block of Rb = Hp*Wp padded pixels.

    Refs:
      x_ref:     (Rb, C)        f32  zero-padded input image (read at layer 0)
      mask_ref:  (Rb, 1)        f32  1.0 on interior pixels, 0.0 on the halo
      w_ref:     (3, 3C, C)     bf16 this layer's conv taps, dx-merged per dy
      scale_ref: (1, C)         f32  folded-BN scale for this layer's inputs
      shift_ref: (1, C)         f32  folded-BN shift
      o_ref:     (Rb, C)        f32  output (written at the last layer only)
      act_ref:   (Rb, C)        f32  scratch: previous conv output
      cat_ref:   (Rb+2Wp, 3C)   bf16 scratch: dx-tap-merged padded activations
    """

    def kernel(x_ref, mask_ref, w_ref, scale_ref, shift_ref, o_ref,
               act_ref, cat_ref):
        layer = pl.program_id(1)

        @pl.when(layer == 0)
        def _init():
            act_ref[...] = x_ref[...]
            # Zero only the dy-halo margin rows; the interior rows [Wp, Wp+Rb)
            # are fully overwritten every layer.
            zeros = jnp.zeros((Wp, 3 * C), dtype=jnp.bfloat16)
            cat_ref[0:Wp, :] = zeros
            cat_ref[Wp + Rb:Wp + Rb + Wp, :] = zeros

        # Folded BatchNorm (inference) + ReLU, then re-zero the halo pixels
        # with a single multiply so the matmuls below see Conv2d(padding=1)
        # zero padding without re-zeroing any buffer.
        a = jnp.maximum(act_ref[...] * scale_ref[...] + shift_ref[...], 0.0)
        a = a * mask_ref[...]

        # dx-tap-merged operand (K = 3*C), stored once per layer in bf16.
        # A dx shift is a +-1 row shift in the flattened (Hp*Wp, C) layout,
        # done with a cheap XLU sublane roll (wrap rows only ever feed
        # discarded halo output rows).  All row offsets are 16-aligned.
        cat_ref[Wp:Wp + Rb, 0 * C:1 * C] = (
            pltpu.roll(a, shift=1, axis=0).astype(jnp.bfloat16))
        cat_ref[Wp:Wp + Rb, 1 * C:2 * C] = a.astype(jnp.bfloat16)
        cat_ref[Wp:Wp + Rb, 2 * C:3 * C] = (
            pltpu.roll(a, shift=Rb - 1, axis=0).astype(jnp.bfloat16))

        # 3x3 conv = 3 MXU matmuls (one per dy tap row): bf16 operands, f32
        # accumulation.  Slice starts {0, Wp, 2*Wp} are static and tile-aligned.
        def tap(dy):
            start = dy * Wp
            lhs = cat_ref[start:start + Rb, :]
            return jnp.dot(lhs, w_ref[dy], preferred_element_type=jnp.float32)

        # Single expression: partial sums stay in vregs / MXU result path
        # instead of f32 read-modify-writes through VMEM.
        act_ref[...] = tap(0) + tap(1) + tap(2)

        @pl.when(layer == num_layers - 1)
        def _final():
            o_ref[...] = act_ref[...]

    return kernel


def init_dcnn_params(key, in_channels=3, num_of_layers=17):
    """Synthetic parameters matching DCNN's per-layer shapes.

    Each entry: (w_hwio (3,3,cin,cout), gamma, beta, running_mean, running_var).
    """
    dims = ([(in_channels, 64)]
            + [(64, 64)] * (num_of_layers - 2)
            + [(64, in_channels)])
    params = []
    for cin, cout in dims:
        key, kw, kg, kb, km, kv = jax.random.split(key, 6)
        w = jax.random.normal(kw, (3, 3, cin, cout), jnp.float32) / np.sqrt(9.0 * cin)
        gamma = 1.0 + 0.1 * jax.random.normal(kg, (cin,), jnp.float32)
        beta = 0.1 * jax.random.normal(kb, (cin,), jnp.float32)
        mean = 0.1 * jax.random.normal(km, (cin,), jnp.float32)
        var = 1.0 + 0.1 * jax.random.uniform(kv, (cin,), jnp.float32)
        params.append((w, gamma, beta, mean, var))
    return params


def pack_dcnn_params(raw_params, C=_C, eps=_BN_EPS):
    """Folds BN into scale/shift, pads channels to C, packs conv taps in bf16.

    Returns (wcat (L,3,3C,C) bf16, scale (L,1,C) f32, shift (L,1,C) f32).
    The dx taps of each dy row are stacked along K so the kernel contracts
    K = 3*C per matmul; padded channels get zero weights / scale / shift.
    """
    L = len(raw_params)
    wcat = np.zeros((L, 3, 3 * C, C), np.float32)
    scale = np.zeros((L, 1, C), np.float32)
    shift = np.zeros((L, 1, C), np.float32)
    for l, (w, gamma, beta, mean, var) in enumerate(raw_params):
        w = np.asarray(w, np.float32)
        gamma = np.asarray(gamma, np.float32)
        beta = np.asarray(beta, np.float32)
        mean = np.asarray(mean, np.float32)
        var = np.asarray(var, np.float32)
        cin, cout = w.shape[2], w.shape[3]
        assert cin <= C and cout <= C
        s = gamma / np.sqrt(var + eps)
        b = beta - mean * s
        scale[l, 0, :cin] = s
        shift[l, 0, :cin] = b
        for dy in range(3):
            for dx in range(3):
                wcat[l, dy, dx * C:dx * C + cin, :cout] = w[dy, dx]
    return (jnp.asarray(wcat, jnp.bfloat16),
            jnp.asarray(scale, jnp.float32),
            jnp.asarray(shift, jnp.float32))


@functools.partial(jax.jit, static_argnames=("out_channels",))
def dcnn_forward(x_nchw, packed_params, out_channels):
    """Pallas-backed DCNN forward; input/output are NCHW like the PyTorch module."""
    wcat, scale, shift = packed_params
    num_layers = wcat.shape[0]
    C = wcat.shape[-1]
    N, cin, H, W = x_nchw.shape
    assert cin <= C
    Hp = H + 2
    Wp = _round_up(W + 2, _ROW_ALIGN)   # row pitch: 1-px halo + alignment pad
    Rb = Hp * Wp                        # flattened padded pixels per image

    # Layout plumbing outside the kernel: NCHW -> NHWC, zero halo (+ alignment
    # columns), channel pad to C, flatten spatial dims per image.
    x = jnp.transpose(x_nchw, (0, 2, 3, 1)).astype(jnp.float32)
    x = jnp.pad(x, ((0, 0), (1, 1), (1, Wp - W - 1), (0, C - cin)))
    x3 = x.reshape(N, Rb, C)
    mask = jnp.pad(jnp.ones((H, W, 1), jnp.float32),
                   ((1, 1), (1, Wp - W - 1), (0, 0))).reshape(Rb, 1)

    grid_spec = pltpu.PrefetchScalarGridSpec(
        num_scalar_prefetch=0,
        grid=(N, num_layers),           # batch parallel, layers sequential
        in_specs=[
            pl.BlockSpec((None, Rb, C), lambda b, l: (b, 0, 0)),       # x
            pl.BlockSpec((Rb, 1), lambda b, l: (0, 0)),                # halo mask
            pl.BlockSpec((None, 3, 3 * C, C), lambda b, l: (l, 0, 0, 0)),  # W
            pl.BlockSpec((None, 1, C), lambda b, l: (l, 0, 0)),        # BN scale
            pl.BlockSpec((None, 1, C), lambda b, l: (l, 0, 0)),        # BN shift
        ],
        out_specs=pl.BlockSpec((None, Rb, C), lambda b, l: (b, 0, 0)),
        scratch_shapes=[
            pltpu.VMEM((Rb, C), jnp.float32),                # activation
            pltpu.VMEM((Rb + 2 * Wp, 3 * C), jnp.bfloat16),  # tap-merged operand
        ],
    )
    kernel = _make_fused_kernel(Rb, C, Wp, num_layers)
    out3 = pl.pallas_call(
        kernel,
        out_shape=jax.ShapeDtypeStruct((N, Rb, C), jnp.float32),
        grid_spec=grid_spec,
        compiler_params=pltpu.CompilerParams(
            dimension_semantics=("parallel", "arbitrary"),
            vmem_limit_bytes=_vmem_limit_bytes(),
        ),
    )(x3, mask, wcat, scale, shift)

    out = out3.reshape(N, Hp, Wp, C)[:, 1:H + 1, 1:W + 1, :out_channels]
    return jnp.transpose(out, (0, 3, 1, 2))


def dcnn_reference(x_nchw, raw_params, eps=_BN_EPS):
    """Pure-JAX reference with matching numerics (folded BN, bf16 conv operands,
    f32 accumulation) for correctness checking."""
    x = jnp.transpose(x_nchw, (0, 2, 3, 1)).astype(jnp.float32)
    for (w, gamma, beta, mean, var) in raw_params:
        s = gamma / jnp.sqrt(var + eps)
        b = beta - mean * s
        a = jnp.maximum(x * s + b, 0.0)
        x = jax.lax.conv_general_dilated(
            a.astype(jnp.bfloat16), w.astype(jnp.bfloat16),
            window_strides=(1, 1), padding="SAME",
            dimension_numbers=("NHWC", "HWIO", "NHWC"),
            preferred_element_type=jnp.float32)
    return jnp.transpose(x, (0, 3, 1, 2))


if __name__ == "__main__":
    key = jax.random.PRNGKey(0)
    kx, kp = jax.random.split(key)

    N, Cin, H, W = 2, 3, 16, 16    # small NCHW input, like the PyTorch module
    num_of_layers = 6              # constructor arg (module default is 17)

    x = jax.random.normal(kx, (N, Cin, H, W), jnp.float32)
    raw_params = init_dcnn_params(kp, in_channels=Cin, num_of_layers=num_of_layers)
    packed = pack_dcnn_params(raw_params)

    out = jax.block_until_ready(dcnn_forward(x, packed, out_channels=Cin))
    ref = jax.block_until_ready(dcnn_reference(x, raw_params))

    assert out.shape == (N, Cin, H, W), out.shape
    diff = float(np.max(np.abs(np.asarray(out) - np.asarray(ref))))
    assert np.allclose(np.asarray(out), np.asarray(ref), rtol=2e-2, atol=2e-2), (
        "max abs diff: %g" % diff)
    print("KERNEL_OK")
</pallas_src>

<mosaic_0001>
module attributes {stable_mosaic.version = 11 : i64} {
  func.func @kernel(%arg0: i32, %arg1: i32, %arg2: memref<1x576x64xf32, #tpu.memory_space<vmem>>, %arg3: memref<576x1xf32, #tpu.memory_space<vmem>>, %arg4: memref<1x3x192x64xbf16, #tpu.memory_space<vmem>>, %arg5: memref<1x1x64xf32, #tpu.memory_space<vmem>>, %arg6: memref<1x1x64xf32, #tpu.memory_space<vmem>>, %arg7: memref<1x576x64xf32, #tpu.memory_space<vmem>>, %arg8: memref<576x64xf32, #tpu.memory_space<vmem>>, %arg9: memref<640x192xbf16, #tpu.memory_space<vmem>>) attributes {dimension_semantics = [#tpu.dimension_semantics<parallel>, #tpu.dimension_semantics<arbitrary>], iteration_bounds = array<i64: 2, 6>, scalar_prefetch = 0 : i64, scratch_operands = 2 : i64, tpu.core_type = #tpu.core_type<tc>, window_params = [{transform_indices = @transform_0, window_bounds = array<i64: 1, 576, 64>}, {pipeline_mode = #tpu.pipeline_mode<synchronous>, transform_indices = @transform_1, window_bounds = array<i64: 576, 1>}, {transform_indices = @transform_2, window_bounds = array<i64: 1, 3, 192, 64>}, {transform_indices = @transform_3, window_bounds = array<i64: 1, 1, 64>}, {transform_indices = @transform_4, window_bounds = array<i64: 1, 1, 64>}, {transform_indices = @transform_5, window_bounds = array<i64: 1, 576, 64>}]} {
    %c0_i32 = arith.constant 0 : i32
    %0 = arith.cmpi eq, %arg1, %c0_i32 : i32
    %1 = arith.extui %0 : i1 to i32
    %c0_i32_0 = arith.constant 0 : i32
    %2 = arith.cmpi ne, %1, %c0_i32_0 : i32
    scf.if %2 {
      %c0_35 = arith.constant 0 : index
      %c0_36 = arith.constant 0 : index
      %c0_37 = arith.constant 0 : index
      %43 = vector.load %arg2[%c0_35, %c0_36, %c0_37] : memref<1x576x64xf32, #tpu.memory_space<vmem>>, vector<1x576x64xf32>
      %44 = vector.shape_cast %43 : vector<1x576x64xf32> to vector<576x64xf32>
      %c0_38 = arith.constant 0 : index
      %c0_39 = arith.constant 0 : index
      %45 = vector.load %arg8[%c0_38, %c0_39] : memref<576x64xf32, #tpu.memory_space<vmem>>, vector<576x64xf32>
      tpu.vector_store %arg8[%c0_38, %c0_39], %44 {strides = array<i32>} : memref<576x64xf32, #tpu.memory_space<vmem>>, vector<576x64xf32>,
      %cst_40 = arith.constant 0.000000e+00 : bf16
      %46 = vector.broadcast %cst_40 : bf16 to vector<32x192xbf16>
      %c0_41 = arith.constant 0 : index
      %c0_42 = arith.constant 0 : index
      %47 = vector.load %arg9[%c0_41, %c0_42] : memref<640x192xbf16, #tpu.memory_space<vmem>>, vector<32x192xbf16>
      tpu.vector_store %arg9[%c0_41, %c0_42], %46 {strides = array<i32>} : memref<640x192xbf16, #tpu.memory_space<vmem>>, vector<32x192xbf16>,
      %c608 = arith.constant 608 : index
      %c0_43 = arith.constant 0 : index
      %48 = vector.load %arg9[%c608, %c0_43] : memref<640x192xbf16, #tpu.memory_space<vmem>>, vector<32x192xbf16>
      tpu.vector_store %arg9[%c608, %c0_43], %46 {strides = array<i32>} : memref<640x192xbf16, #tpu.memory_space<vmem>>, vector<32x192xbf16>,
    } else {
    }
    %c0 = arith.constant 0 : index
    %c0_1 = arith.constant 0 : index
    %3 = vector.load %arg8[%c0, %c0_1] : memref<576x64xf32, #tpu.memory_space<vmem>>, vector<576x64xf32>
    %c0_2 = arith.constant 0 : index
    %c0_3 = arith.constant 0 : index
    %c0_4 = arith.constant 0 : index
    %4 = vector.load %arg5[%c0_2, %c0_3, %c0_4] : memref<1x1x64xf32, #tpu.memory_space<vmem>>, vector<1x1x64xf32>
    %5 = vector.shape_cast %4 : vector<1x1x64xf32> to vector<1x64xf32>
    %6 = vector.broadcast %5 : vector<1x64xf32> to vector<576x64xf32>
    %7 = arith.mulf %3, %6 : vector<576x64xf32>
    %c0_5 = arith.constant 0 : index
    %c0_6 = arith.constant 0 : index
    %c0_7 = arith.constant 0 : index
    %8 = vector.load %arg6[%c0_5, %c0_6, %c0_7] : memref<1x1x64xf32, #tpu.memory_space<vmem>>, vector<1x1x64xf32>
    %9 = vector.shape_cast %8 : vector<1x1x64xf32> to vector<1x64xf32>
    %10 = vector.broadcast %9 : vector<1x64xf32> to vector<576x64xf32>
    %11 = arith.addf %7, %10 : vector<576x64xf32>
    %cst = arith.constant 0.000000e+00 : f32
    %12 = vector.broadcast %cst : f32 to vector<576x64xf32>
    %13 = arith.maximumf %11, %12 : vector<576x64xf32>
    %c0_8 = arith.constant 0 : index
    %c0_9 = arith.constant 0 : index
    %14 = vector.load %arg3[%c0_8, %c0_9] : memref<576x1xf32, #tpu.memory_space<vmem>>, vector<576x1xf32>
    %15 = vector.broadcast %14 : vector<576x1xf32> to vector<576x64xf32>
    %16 = arith.mulf %13, %15 : vector<576x64xf32>
    %c1_i32 = arith.constant 1 : i32
    %17 = tpu.dynamic_rotate %16 by %c1_i32 dim 0 : vector<576x64xf32>, i32 -> vector<576x64xf32>
    %18 = arith.truncf %17 : vector<576x64xf32> to vector<576x64xbf16>
    %c32 = arith.constant 32 : index
    %c0_10 = arith.constant 0 : index
    %19 = vector.load %arg9[%c32, %c0_10] : memref<640x192xbf16, #tpu.memory_space<vmem>>, vector<576x64xbf16>
    tpu.vector_store %arg9[%c32, %c0_10], %18 {strides = array<i32>} : memref<640x192xbf16, #tpu.memory_space<vmem>>, vector<576x64xbf16>,
    %20 = arith.truncf %16 : vector<576x64xf32> to vector<576x64xbf16>
    %c32_11 = arith.constant 32 : index
    %c64 = arith.constant 64 : index
    %21 = vector.load %arg9[%c32_11, %c64] : memref<640x192xbf16, #tpu.memory_space<vmem>>, vector<576x64xbf16>
    tpu.vector_store %arg9[%c32_11, %c64], %20 {strides = array<i32>} : memref<640x192xbf16, #tpu.memory_space<vmem>>, vector<576x64xbf16>,
    %c575_i32 = arith.constant 575 : i32
    %22 = tpu.dynamic_rotate %16 by %c575_i32 dim 0 : vector<576x64xf32>, i32 -> vector<576x64xf32>
    %23 = arith.truncf %22 : vector<576x64xf32> to vector<576x64xbf16>
    %c32_12 = arith.constant 32 : index
    %c128 = arith.constant 128 : index
    %24 = vector.load %arg9[%c32_12, %c128] : memref<640x192xbf16, #tpu.memory_space<vmem>>, vector<576x64xbf16>
    tpu.vector_store %arg9[%c32_12, %c128], %23 {strides = array<i32>} : memref<640x192xbf16, #tpu.memory_space<vmem>>, vector<576x64xbf16>,
    %c0_13 = arith.constant 0 : index
    %c0_14 = arith.constant 0 : index
    %25 = vector.load %arg9[%c0_13, %c0_14] : memref<640x192xbf16, #tpu.memory_space<vmem>>, vector<576x192xbf16>
    %c0_15 = arith.constant 0 : index
    %c0_16 = arith.constant 0 : index
    %c0_17 = arith.constant 0 : index
    %c0_18 = arith.constant 0 : index
    %26 = vector.load %arg4[%c0_15, %c0_16, %c0_17, %c0_18] : memref<1x3x192x64xbf16, #tpu.memory_space<vmem>>, vector<1x1x192x64xbf16>
    %27 = vector.shape_cast %26 : vector<1x1x192x64xbf16> to vector<192x64xbf16>
    %cst_19 = arith.constant dense<0.000000e+00> : vector<576x64xf32>
    %28 = tpu.matmul %25, %27, %cst_19 {dimension_numbers = #tpu.dot_dimension_numbers<[1], [0], [0], [1], [0, 0, 1, 1], [], []>} : vector<576x192xbf16>, vector<192x64xbf16>, vector<576x64xf32> -> vector<576x64xf32>
    %c32_20 = arith.constant 32 : index
    %c0_21 = arith.constant 0 : index
    %29 = vector.load %arg9[%c32_20, %c0_21] : memref<640x192xbf16, #tpu.memory_space<vmem>>, vector<576x192xbf16>
    %c0_22 = arith.constant 0 : index
    %c1 = arith.constant 1 : index
    %c0_23 = arith.constant 0 : index
    %c0_24 = arith.constant 0 : index
    %30 = vector.load %arg4[%c0_22, %c1, %c0_23, %c0_24] : memref<1x3x192x64xbf16, #tpu.memory_space<vmem>>, vector<1x1x192x64xbf16>
    %31 = vector.shape_cast %30 : vector<1x1x192x64xbf16> to vector<192x64xbf16>
    %cst_25 = arith.constant dense<0.000000e+00> : vector<576x64xf32>
    %32 = tpu.matmul %29, %31, %cst_25 {dimension_numbers = #tpu.dot_dimension_numbers<[1], [0], [0], [1], [0, 0, 1, 1], [], []>} : vector<576x192xbf16>, vector<192x64xbf16>, vector<576x64xf32> -> vector<576x64xf32>
    %33 = arith.addf %28, %32 : vector<576x64xf32>
    %c64_26 = arith.constant 64 : index
    %c0_27 = arith.constant 0 : index
    %34 = vector.load %arg9[%c64_26, %c0_27] : memref<640x192xbf16, #tpu.memory_space<vmem>>, vector<576x192xbf16>
    %c0_28 = arith.constant 0 : index
    %c2 = arith.constant 2 : index
    %c0_29 = arith.constant 0 : index
    %c0_30 = arith.constant 0 : index
    %35 = vector.load %arg4[%c0_28, %c2, %c0_29, %c0_30] : memref<1x3x192x64xbf16, #tpu.memory_space<vmem>>, vector<1x1x192x64xbf16>
    %36 = vector.shape_cast %35 : vector<1x1x192x64xbf16> to vector<192x64xbf16>
    %cst_31 = arith.constant dense<0.000000e+00> : vector<576x64xf32>
    %37 = tpu.matmul %34, %36, %cst_31 {dimension_numbers = #tpu.dot_dimension_numbers<[1], [0], [0], [1], [0, 0, 1, 1], [], []>} : vector<576x192xbf16>, vector<192x64xbf16>, vector<576x64xf32> -> vector<576x64xf32>
    %38 = arith.addf %33, %37 : vector<576x64xf32>
    %c0_32 = arith.constant 0 : index
    %c0_33 = arith.constant 0 : index
    %39 = vector.load %arg8[%c0_32, %c0_33] : memref<576x64xf32, #tpu.memory_space<vmem>>, vector<576x64xf32>
    tpu.vector_store %arg8[%c0_32, %c0_33], %38 {strides = array<i32>} : memref<576x64xf32, #tpu.memory_space<vmem>>, vector<576x64xf32>,
    %c5_i32 = arith.constant 5 : i32
    %40 = arith.cmpi eq, %arg1, %c5_i32 : i32
    %41 = arith.extui %40 : i1 to i32
    %c0_i32_34 = arith.constant 0 : i32
    %42 = arith.cmpi ne, %41, %c0_i32_34 : i32
    scf.if %42 {
      %c0_35 = arith.constant 0 : index
      %c0_36 = arith.constant 0 : index
      %43 = vector.load %arg8[%c0_35, %c0_36] : memref<576x64xf32, #tpu.memory_space<vmem>>, vector<576x64xf32>
      %c0_37 = arith.constant 0 : index
      %c0_38 = arith.constant 0 : index
      %c0_39 = arith.constant 0 : index
      %44 = vector.load %arg7[%c0_37, %c0_38, %c0_39] : memref<1x576x64xf32, #tpu.memory_space<vmem>>, vector<1x576x64xf32>
      %45 = vector.shape_cast %44 : vector<1x576x64xf32> to vector<576x64xf32>
      %46 = vector.shape_cast %43 : vector<576x64xf32> to vector<1x576x64xf32>
      tpu.vector_store %arg7[%c0_37, %c0_38, %c0_39], %46 {strides = array<i32>} : memref<1x576x64xf32, #tpu.memory_space<vmem>>, vector<1x576x64xf32>,
    } else {
    }
    return
  }
  func.func @transform_0(%arg0: i32, %arg1: i32) -> (i32, i32, i32) {
    %c0_i32 = arith.constant 0 : i32
    %c0_i32_0 = arith.constant 0 : i32
    %c0_i32_1 = arith.constant 0 : i32
    return %arg0, %c0_i32, %c0_i32_0 : i32, i32, i32
  }
  func.func @transform_1(%arg0: i32, %arg1: i32) -> (i32, i32) {
    %c0_i32 = arith.constant 0 : i32
    %c0_i32_0 = arith.constant 0 : i32
    %c0_i32_1 = arith.constant 0 : i32
    return %c0_i32, %c0_i32_0 : i32, i32
  }
  func.func @transform_2(%arg0: i32, %arg1: i32) -> (i32, i32, i32, i32) {
    %c0_i32 = arith.constant 0 : i32
    %c0_i32_0 = arith.constant 0 : i32
    %c0_i32_1 = arith.constant 0 : i32
    %c0_i32_2 = arith.constant 0 : i32
    return %arg1, %c0_i32, %c0_i32_0, %c0_i32_1 : i32, i32, i32, i32
  }
  func.func @transform_3(%arg0: i32, %arg1: i32) -> (i32, i32, i32) {
    %c0_i32 = arith.constant 0 : i32
    %c0_i32_0 = arith.constant 0 : i32
    %c0_i32_1 = arith.constant 0 : i32
    return %arg1, %c0_i32, %c0_i32_0 : i32, i32, i32
  }
  func.func @transform_4(%arg0: i32, %arg1: i32) -> (i32, i32, i32) {
    %c0_i32 = arith.constant 0 : i32
    %c0_i32_0 = arith.constant 0 : i32
    %c0_i32_1 = arith.constant 0 : i32
    return %arg1, %c0_i32, %c0_i32_0 : i32, i32, i32
  }
  func.func @transform_5(%arg0: i32, %arg1: i32) -> (i32, i32, i32) {
    %c0_i32 = arith.constant 0 : i32
    %c0_i32_0 = arith.constant 0 : i32
    %c0_i32_1 = arith.constant 0 : i32
    return %arg0, %c0_i32, %c0_i32_0 : i32, i32, i32
  }
}

</mosaic_0001>

<bundles_post_ra>
// kernel: dcnn_forward.1
= control target key start
LH: loop header
LB: loop body
LE: loop exit
PB: predicated region body
PF: predicated region fallthrough
CT: control target
= control target key end

     0   :  { %s6333_s18 = smov 0   ;;  %s6335_s19 = smov 0   ;;  %s9339_s0 = inlined_call_operand.vmem [shape: f32[2,576,64], index: 0, kind: input, shape index: {}]   ;;  %s9340_s1 = inlined_call_operand.vmem [shape: f32[576,1], index: 1, kind: input, shape index: {}]   ;;  %s9341_s2 = inlined_call_operand.vmem [shape: bf16[6,3,192,64], index: 2, kind: input, shape index: {}]   ;;  %s9342_s3 = inlined_call_operand.vmem [shape: f32[6,1,64], index: 3, kind: input, shape index: {}]   ;;  %s9343_s4 = inlined_call_operand.vmem [shape: f32[6,1,64], index: 4, kind: input, shape index: {}]   ;;  %s9344_s5 = inlined_call_operand.vmem [shape: f32[2,576,64], index: 5, kind: output, shape index: {}]  }
   0x1   :  { %s6337_s20 = smov 0   ;;  %s6339_s21 = smov 0  }
   0x2   :  { %s6341_s22 = smov 0  }
   0x3 LB: > { %s24_s23 = sadd.s32 1, %s6290_s20  ;;  %s27_s24 = sadd.s32 1, %s6294_s21  ;;  %s6298_s22 = sphi %s6341_s22, %s15_s22   ;;  %s6294_s21 = sphi %s6339_s21, %s9684_s21   ;;  %s6290_s20 = sphi %s6337_s20, %s9683_s20   ;;  %s6286_s19 = sphi %s6335_s19, %s9682_s19   ;;  %s6282_s18 = sphi %s6333_s18, %s9681_s18  }
   0x4   : > { %p25_p0 = scmp.ge.s32.totalorder %s24_s23, 6  ;;  %p5113_p1 = scmp.ge.s32.totalorder %s6298_s22, 1 }
   0x5   : > { %p225_p2 = scmp.lt.s32.totalorder %s6298_s22, 13 }
   0x6   : > { %s9686_s23 = smov (%p25_p0, %s24_s23), 0  ;;  %s9688_s24 = smov (!%p25_p0, %s27_s24), %s6294_s21 }
   0x7   : > { %p226_p3 = pnand %p5113_p1, %p225_p2  ;;  %p29_p4 = scmp.ge.s32.totalorder %s9688_s24, 2 }
   0x9   : > { %s9690_s24 = smov (%p29_p4, %s9688_s24), 0  ;;  %229 = sbr.rel (%p226_p3) target bundleno = 1490 (0x5d2), region = 40 }
   0xe   : > { %p264_p5 = scmp.lt.s32.totalorder %s6286_s19, 1  ;;  %p269_p6 = scmp.lt.s32.totalorder %s6282_s18, 5 }
   0xf   : > { %p5117_p7 = scmp.ne.s32.totalorder %s6282_s18, 0 }
  0x10   : > { %s9692_s19 = smov (!%p264_p5, %s6286_s19), 1 }
  0x11   : > { %s270_s25 = scalar_select %p269_p6, %s6282_s18, 5 }
  0x12   : > { %s6205_s26 = smul.u32 576, %s9692_s19 }
  0x13   : > { %s6206_s27 = smul.u32 288, %s270_s25  ;;  %s6370_s30 = scalar_lea.vmem %s9342_s3, %s270_s25 }
  0x14   : > { %s6375_s8 = scalar_lea.vmem %s9339_s0, %s6205_s26  ;;  %s6380_s11 = scalar_lea.vmem %s9343_s4, %s270_s25 }
  0x15   : > { %s6385_s14 = scalar_lea.vmem %s9341_s2, %s6206_s27  ;;  %s6390_s17 = scalar_lea.vmem %s9344_s5, %s6205_s26 }
  0x16   : > { %289 = sbr.rel (%p5117_p7) target bundleno = 108 (0x6c), region = 44 }
  0x1b   : > { %v290_v0 = vld [vmem:[%s6375_s8] sm:$0xff]  ;;  %vm362_vm0 = vcmask 523264   ;;  %v291_v1 = vld [vmem:[%s6375_s8 + $0x8] sm:$0xff]  ;;  %v292_v2 = vld [vmem:[%s6375_s8 + $0x10] sm:$0xff]  ;;  %vm435_vm1 = vcmask 1043456   ;;  %vm436_vm2 = vcmask 523268  }
  0x1c   : > { %363 = vst.msk [vmem:[#allocation2] sm:$0xff] %vm362_vm0, %v290_v0  ;;  %v293_v3 = vld [vmem:[%s6375_s8 + $0x18] sm:$0xff]  ;;  %v294_v4 = vld [vmem:[%s6375_s8 + $0x20] sm:$0xff]  ;;  %v295_v5 = vld [vmem:[%s6375_s8 + $0x28] sm:$0xff] }
  0x1d   : > { %364 = vst.msk [vmem:[#allocation2 + $0x8] sm:$0xff] %vm362_vm0, %v291_v1  ;;  %v296_v6 = vld [vmem:[%s6375_s8 + $0x30] sm:$0xff]  ;;  %v297_v7 = vld [vmem:[%s6375_s8 + $0x38] sm:$0xff]  ;;  %v298_v8 = vld [vmem:[%s6375_s8 + $0x40] sm:$0xff] }
  0x1e   : > { %365 = vst.msk [vmem:[#allocation2 + $0x10] sm:$0xff] %vm362_vm0, %v292_v2  ;;  %v299_v9 = vld [vmem:[%s6375_s8 + $0x48] sm:$0xff]  ;;  %v300_v10 = vld [vmem:[%s6375_s8 + $0x50] sm:$0xff]  ;;  %v301_v11 = vld [vmem:[%s6375_s8 + $0x58] sm:$0xff] }
  0x1f   : > { %366 = vst.msk [vmem:[#allocation2 + $0x18] sm:$0xff] %vm362_vm0, %v293_v3  ;;  %v302_v12 = vld [vmem:[%s6375_s8 + $0x60] sm:$0xff]  ;;  %v303_v13 = vld [vmem:[%s6375_s8 + $0x68] sm:$0xff]  ;;  %v304_v14 = vld [vmem:[%s6375_s8 + $0x70] sm:$0xff] }
  0x20   : > { %367 = vst.msk [vmem:[#allocation2 + $0x20] sm:$0xff] %vm362_vm0, %v294_v4  ;;  %v305_v15 = vld [vmem:[%s6375_s8 + $0x78] sm:$0xff]  ;;  %v306_v16 = vld [vmem:[%s6375_s8 + $0x80] sm:$0xff]  ;;  %v307_v17 = vld [vmem:[%s6375_s8 + $0x88] sm:$0xff] }
  0x21   : > { %368 = vst.msk [vmem:[#allocation2 + $0x28] sm:$0xff] %vm362_vm0, %v295_v5  ;;  %v308_v18 = vld [vmem:[%s6375_s8 + $0x90] sm:$0xff]  ;;  %v309_v19 = vld [vmem:[%s6375_s8 + $0x98] sm:$0xff]  ;;  %v310_v20 = vld [vmem:[%s6375_s8 + $0xa0] sm:$0xff] }
  0x22   : > { %369 = vst.msk [vmem:[#allocation2 + $0x30] sm:$0xff] %vm362_vm0, %v296_v6  ;;  %v311_v21 = vld [vmem:[%s6375_s8 + $0xa8] sm:$0xff]  ;;  %v312_v22 = vld [vmem:[%s6375_s8 + $0xb0] sm:$0xff]  ;;  %v313_v23 = vld [vmem:[%s6375_s8 + $0xb8] sm:$0xff] }
  0x23   : > { %370 = vst.msk [vmem:[#allocation2 + $0x38] sm:$0xff] %vm362_vm0, %v297_v7  ;;  %v314_v24 = vld [vmem:[%s6375_s8 + $0xc0] sm:$0xff]  ;;  %v315_v25 = vld [vmem:[%s6375_s8 + $0xc8] sm:$0xff]  ;;  %v316_v26 = vld [vmem:[%s6375_s8 + $0xd0] sm:$0xff] }
  0x24   : > { %371 = vst.msk [vmem:[#allocation2 + $0x40] sm:$0xff] %vm362_vm0, %v298_v8  ;;  %v317_v27 = vld [vmem:[%s6375_s8 + $0xd8] sm:$0xff]  ;;  %v318_v28 = vld [vmem:[%s6375_s8 + $0xe0] sm:$0xff]  ;;  %v319_v29 = vld [vmem:[%s6375_s8 + $0xe8] sm:$0xff]  ;;  %v6300_v8 = vmov 0  }
  0x25   : > { %372 = vst.msk [vmem:[#allocation2 + $0x48] sm:$0xff] %vm362_vm0, %v299_v9  ;;  %v320_v30 = vld [vmem:[%s6375_s8 + $0xf0] sm:$0xff]  ;;  %v321_v31 = vld [vmem:[%s6375_s8 + $0xf8] sm:$0xff]  ;;  %v322_v32 = vld [vmem:[%s6375_s8 + $0x100] sm:$0xff] }
  0x26   : > { %373 = vst.msk [vmem:[#allocation2 + $0x50] sm:$0xff] %vm362_vm0, %v300_v10  ;;  %v323_v33 = vld [vmem:[%s6375_s8 + $0x108] sm:$0xff]  ;;  %v324_v34 = vld [vmem:[%s6375_s8 + $0x110] sm:$0xff]  ;;  %v325_v35 = vld [vmem:[%s6375_s8 + $0x118] sm:$0xff] }
  0x27   : > { %374 = vst.msk [vmem:[#allocation2 + $0x58] sm:$0xff] %vm362_vm0, %v301_v11  ;;  %v326_v36 = vld [vmem:[%s6375_s8 + $0x120] sm:$0xff]  ;;  %v327_v37 = vld [vmem:[%s6375_s8 + $0x128] sm:$0xff]  ;;  %v328_v38 = vld [vmem:[%s6375_s8 + $0x130] sm:$0xff] }
  0x28   : > { %375 = vst.msk [vmem:[#allocation2 + $0x60] sm:$0xff] %vm362_vm0, %v302_v12  ;;  %v329_v39 = vld [vmem:[%s6375_s8 + $0x138] sm:$0xff]  ;;  %v330_v40 = vld [vmem:[%s6375_s8 + $0x140] sm:$0xff]  ;;  %v331_v41 = vld [vmem:[%s6375_s8 + $0x148] sm:$0xff] }
  0x29   : > { %376 = vst.msk [vmem:[#allocation2 + $0x68] sm:$0xff] %vm362_vm0, %v303_v13  ;;  %v332_v42 = vld [vmem:[%s6375_s8 + $0x150] sm:$0xff]  ;;  %v333_v43 = vld [vmem:[%s6375_s8 + $0x158] sm:$0xff]  ;;  %v334_v44 = vld [vmem:[%s6375_s8 + $0x160] sm:$0xff] }
  0x2a   : > { %377 = vst.msk [vmem:[#allocation2 + $0x70] sm:$0xff] %vm362_vm0, %v304_v14  ;;  %v335_v45 = vld [vmem:[%s6375_s8 + $0x168] sm:$0xff]  ;;  %v336_v46 = vld [vmem:[%s6375_s8 + $0x170] sm:$0xff]  ;;  %v337_v47 = vld [vmem:[%s6375_s8 + $0x178] sm:$0xff] }
  0x2b   : > { %378 = vst.msk [vmem:[#allocation2 + $0x78] sm:$0xff] %vm362_vm0, %v305_v15  ;;  %v338_v48 = vld [vmem:[%s6375_s8 + $0x180] sm:$0xff]  ;;  %v339_v49 = vld [vmem:[%s6375_s8 + $0x188] sm:$0xff]  ;;  %v340_v50 = vld [vmem:[%s6375_s8 + $0x190] sm:$0xff] }
  0x2c   : > { %379 = vst.msk [vmem:[#allocation2 + $0x80] sm:$0xff] %vm362_vm0, %v306_v16  ;;  %v341_v51 = vld [vmem:[%s6375_s8 + $0x198] sm:$0xff]  ;;  %v342_v52 = vld [vmem:[%s6375_s8 + $0x1a0] sm:$0xff]  ;;  %v343_v53 = vld [vmem:[%s6375_s8 + $0x1a8] sm:$0xff] }
  0x2d   : > { %380 = vst.msk [vmem:[#allocation2 + $0x88] sm:$0xff] %vm362_vm0, %v307_v17  ;;  %v344_v54 = vld [vmem:[%s6375_s8 + $0x1b0] sm:$0xff]  ;;  %v345_v55 = vld [vmem:[%s6375_s8 + $0x1b8] sm:$0xff]  ;;  %v346_v56 = vld [vmem:[%s6375_s8 + $0x1c0] sm:$0xff] }
  0x2e   : > { %381 = vst.msk [vmem:[#allocation2 + $0x90] sm:$0xff] %vm362_vm0, %v308_v18  ;;  %v347_v57 = vld [vmem:[%s6375_s8 + $0x1c8] sm:$0xff]  ;;  %v348_v58 = vld [vmem:[%s6375_s8 + $0x1d0] sm:$0xff]  ;;  %v349_v59 = vld [vmem:[%s6375_s8 + $0x1d8] sm:$0xff] }
  0x2f   : > { %382 = vst.msk [vmem:[#allocation2 + $0x98] sm:$0xff] %vm362_vm0, %v309_v19  ;;  %v350_v60 = vld [vmem:[%s6375_s8 + $0x1e0] sm:$0xff]  ;;  %v351_v61 = vld [vmem:[%s6375_s8 + $0x1e8] sm:$0xff]  ;;  %v352_v62 = vld [vmem:[%s6375_s8 + $0x1f0] sm:$0xff] }
  0x30   : > { %383 = vst.msk [vmem:[#allocation2 + $0xa0] sm:$0xff] %vm362_vm0, %v310_v20  ;;  %v353_v63 = vld [vmem:[%s6375_s8 + $0x1f8] sm:$0xff]  ;;  %v354_v0 = vld [vmem:[%s6375_s8 + $0x200] sm:$0xff]  ;;  %v355_v1 = vld [vmem:[%s6375_s8 + $0x208] sm:$0xff] }
  0x31   : > { %384 = vst.msk [vmem:[#allocation2 + $0xa8] sm:$0xff] %vm362_vm0, %v311_v21  ;;  %v356_v2 = vld [vmem:[%s6375_s8 + $0x210] sm:$0xff]  ;;  %v357_v3 = vld [vmem:[%s6375_s8 + $0x218] sm:$0xff]  ;;  %v358_v4 = vld [vmem:[%s6375_s8 + $0x220] sm:$0xff] }
  0x32   : > { %385 = vst.msk [vmem:[#allocation2 + $0xb0] sm:$0xff] %vm362_vm0, %v312_v22  ;;  %v359_v5 = vld [vmem:[%s6375_s8 + $0x228] sm:$0xff]  ;;  %v360_v6 = vld [vmem:[%s6375_s8 + $0x230] sm:$0xff]  ;;  %v361_v7 = vld [vmem:[%s6375_s8 + $0x238] sm:$0xff] }
  0x33   : > { %386 = vst.msk [vmem:[#allocation2 + $0xb8] sm:$0xff] %vm362_vm0, %v313_v23  ;;  %vm437_vm3 = vmor %vm436_vm2, %vm435_vm1 }
  0x34   : > { %387 = vst.msk [vmem:[#allocation2 + $0xc0] sm:$0xff] %vm362_vm0, %v314_v24 }
  0x35   : > { %388 = vst.msk [vmem:[#allocation2 + $0xc8] sm:$0xff] %vm362_vm0, %v315_v25 }
  0x36   : > { %389 = vst.msk [vmem:[#allocation2 + $0xd0] sm:$0xff] %vm362_vm0, %v316_v26 }
  0x37   : > { %390 = vst.msk [vmem:[#allocation2 + $0xd8] sm:$0xff] %vm362_vm0, %v317_v27 }
  0x38   : > { %391 = vst.msk [vmem:[#allocation2 + $0xe0] sm:$0xff] %vm362_vm0, %v318_v28 }
  0x39   : > { %392 = vst.msk [vmem:[#allocation2 + $0xe8] sm:$0xff] %vm362_vm0, %v319_v29 }
  0x3a   : > { %393 = vst.msk [vmem:[#allocation2 + $0xf0] sm:$0xff] %vm362_vm0, %v320_v30 }
  0x3b   : > { %394 = vst.msk [vmem:[#allocation2 + $0xf8] sm:$0xff] %vm362_vm0, %v321_v31 }
  0x3c   : > { %395 = vst.msk [vmem:[#allocation2 + $0x100] sm:$0xff] %vm362_vm0, %v322_v32 }
  0x3d   : > { %396 = vst.msk [vmem:[#allocation2 + $0x108] sm:$0xff] %vm362_vm0, %v323_v33 }
  0x3e   : > { %397 = vst.msk [vmem:[#allocation2 + $0x110] sm:$0xff] %vm362_vm0, %v324_v34 }
  0x3f   : > { %398 = vst.msk [vmem:[#allocation2 + $0x118] sm:$0xff] %vm362_vm0, %v325_v35 }
  0x40   : > { %399 = vst.msk [vmem:[#allocation2 + $0x120] sm:$0xff] %vm362_vm0, %v326_v36 }
  0x41   : > { %400 = vst.msk [vmem:[#allocation2 + $0x128] sm:$0xff] %vm362_vm0, %v327_v37 }
  0x42   : > { %401 = vst.msk [vmem:[#allocation2 + $0x130] sm:$0xff] %vm362_vm0, %v328_v38 }
  0x43   : > { %402 = vst.msk [vmem:[#allocation2 + $0x138] sm:$0xff] %vm362_vm0, %v329_v39 }
  0x44   : > { %403 = vst.msk [vmem:[#allocation2 + $0x140] sm:$0xff] %vm362_vm0, %v330_v40 }
  0x45   : > { %404 = vst.msk [vmem:[#allocation2 + $0x148] sm:$0xff] %vm362_vm0, %v331_v41 }
  0x46   : > { %405 = vst.msk [vmem:[#allocation2 + $0x150] sm:$0xff] %vm362_vm0, %v332_v42 }
  0x47   : > { %406 = vst.msk [vmem:[#allocation2 + $0x158] sm:$0xff] %vm362_vm0, %v333_v43 }
  0x48   : > { %407 = vst.msk [vmem:[#allocation2 + $0x160] sm:$0xff] %vm362_vm0, %v334_v44 }
  0x49   : > { %408 = vst.msk [vmem:[#allocation2 + $0x168] sm:$0xff] %vm362_vm0, %v335_v45 }
  0x4a   : > { %409 = vst.msk [vmem:[#allocation2 + $0x170] sm:$0xff] %vm362_vm0, %v336_v46 }
  0x4b   : > { %410 = vst.msk [vmem:[#allocation2 + $0x178] sm:$0xff] %vm362_vm0, %v337_v47 }
  0x4c   : > { %411 = vst.msk [vmem:[#allocation2 + $0x180] sm:$0xff] %vm362_vm0, %v338_v48 }
  0x4d   : > { %412 = vst.msk [vmem:[#allocation2 + $0x188] sm:$0xff] %vm362_vm0, %v339_v49 }
  0x4e   : > { %413 = vst.msk [vmem:[#allocation2 + $0x190] sm:$0xff] %vm362_vm0, %v340_v50 }
  0x4f   : > { %414 = vst.msk [vmem:[#allocation2 + $0x198] sm:$0xff] %vm362_vm0, %v341_v51 }
  0x50   : > { %415 = vst.msk [vmem:[#allocation2 + $0x1a0] sm:$0xff] %vm362_vm0, %v342_v52 }
  0x51   : > { %416 = vst.msk [vmem:[#allocation2 + $0x1a8] sm:$0xff] %vm362_vm0, %v343_v53 }
  0x52   : > { %417 = vst.msk [vmem:[#allocation2 + $0x1b0] sm:$0xff] %vm362_vm0, %v344_v54 }
  0x53   : > { %418 = vst.msk [vmem:[#allocation2 + $0x1b8] sm:$0xff] %vm362_vm0, %v345_v55 }
  0x54   : > { %419 = vst.msk [vmem:[#allocation2 + $0x1c0] sm:$0xff] %vm362_vm0, %v346_v56 }
  0x55   : > { %420 = vst.msk [vmem:[#allocation2 + $0x1c8] sm:$0xff] %vm362_vm0, %v347_v57 }
  0x56   : > { %421 = vst.msk [vmem:[#allocation2 + $0x1d0] sm:$0xff] %vm362_vm0, %v348_v58 }
  0x57   : > { %422 = vst.msk [vmem:[#allocation2 + $0x1d8] sm:$0xff] %vm362_vm0, %v349_v59 }
  0x58   : > { %423 = vst.msk [vmem:[#allocation2 + $0x1e0] sm:$0xff] %vm362_vm0, %v350_v60 }
  0x59   : > { %424 = vst.msk [vmem:[#allocation2 + $0x1e8] sm:$0xff] %vm362_vm0, %v351_v61 }
  0x5a   : > { %425 = vst.msk [vmem:[#allocation2 + $0x1f0] sm:$0xff] %vm362_vm0, %v352_v62 }
  0x5b   : > { %426 = vst.msk [vmem:[#allocation2 + $0x1f8] sm:$0xff] %vm362_vm0, %v353_v63 }
  0x5c   : > { %427 = vst.msk [vmem:[#allocation2 + $0x200] sm:$0xff] %vm362_vm0, %v354_v0 }
  0x5d   : > { %428 = vst.msk [vmem:[#allocation2 + $0x208] sm:$0xff] %vm362_vm0, %v355_v1 }
  0x5e   : > { %429 = vst.msk [vmem:[#allocation2 + $0x210] sm:$0xff] %vm362_vm0, %v356_v2 }
  0x5f   : > { %430 = vst.msk [vmem:[#allocation2 + $0x218] sm:$0xff] %vm362_vm0, %v357_v3 }
  0x60   : > { %431 = vst.msk [vmem:[#allocation2 + $0x220] sm:$0xff] %vm362_vm0, %v358_v4 }
  0x61   : > { %432 = vst.msk [vmem:[#allocation2 + $0x228] sm:$0xff] %vm362_vm0, %v359_v5 }
  0x62   : > { %433 = vst.msk [vmem:[#allocation2 + $0x230] sm:$0xff] %vm362_vm0, %v360_v6 }
  0x63   : > { %434 = vst.msk [vmem:[#allocation2 + $0x238] sm:$0xff] %vm362_vm0, %v361_v7 }
  0x64   : > { %438 = vst.msk [vmem:[#allocation3] sm:$0xff] %vm437_vm3, %v6300_v8 }
  0x65   : > { %439 = vst.msk [vmem:[#allocation3 + $0x8] sm:$0xff] %vm437_vm3, %v6300_v8 }
  0x66   : > { %440 = vst.msk [vmem:[#allocation3 + $0x10] sm:$0xff] %vm437_vm3, %v6300_v8 }
  0x67   : > { %441 = vst.msk [vmem:[#allocation3 + $0x18] sm:$0xff] %vm437_vm3, %v6300_v8 }
  0x68   : > { %442 = vst.msk [vmem:[#allocation3 + $0x260] sm:$0xff] %vm437_vm3, %v6300_v8 }
  0x69   : > { %443 = vst.msk [vmem:[#allocation3 + $0x268] sm:$0xff] %vm437_vm3, %v6300_v8 }
  0x6a   : > { %444 = vst.msk [vmem:[#allocation3 + $0x270] sm:$0xff] %vm437_vm3, %v6300_v8 }
  0x6b   : > { %445 = vst.msk [vmem:[#allocation3 + $0x278] sm:$0xff] %vm437_vm3, %v6300_v8 }
  0x6c PF: > { %v774_v9 = vld [vmem:[%s9340_s1 + $0x100] sm:$0xff]  ;;  %v772_v10 = vld [vmem:[%s9340_s1 + $0xf0] sm:$0xff]  ;;  %v6301_v12 = vmov 0   ;;  %v773_v14 = vld [vmem:[%s9340_s1 + $0xf8] sm:$0xff]  ;;  %s6302_s12 = smov 64   ;;  %vm1465_vm4 = vcmask 519168  }
  0x6d   : > { %v742_v11 = vld [vmem:[%s9340_s1] sm:$0xff]  ;;  %6252 = vset.pattern.permute.xlu2 %v6301_v12  ;;  %6251 = vset.pattern.permute.xlu1 %v6301_v12  ;;  %v776_v13 = vld [vmem:[%s9340_s1 + $0x110] sm:$0xff]  ;;  %v743_v15 = vld [vmem:[%s9340_s1 + $0x8] sm:$0xff]  ;;  %vm2781_vm7 = vcmask 523264   ;;  %vm1898_vm8 = vcmask 1043968   ;;  %p6010_p8 = scmp.ne.s32.totalorder %s6282_s18, 5 }
  0x6e   : > { %6250 = vset.pattern.permute.xlu0 %v6301_v12  ;;  %976 = vperm.xlu2 %6252, %v774_v9   ;;  %v744_v16 = vld [vmem:[%s9340_s1 + $0x10] sm:$0xff]  ;;  %v778_v17 = vld [vmem:[%s9340_s1 + $0x120] sm:$0xff]  ;;  %v777_v18 = vld [vmem:[%s9340_s1 + $0x118] sm:$0xff] }
  0x6f   : > { %966 = vperm.xlu1 %6251, %v772_v10   ;;  %816 = vperm.xlu0 %6250, %v742_v11   ;;  %v779_v19 = vld [vmem:[%s9340_s1 + $0x128] sm:$0xff]  ;;  %v745_v21 = vld [vmem:[%s9340_s1 + $0x18] sm:$0xff]  ;;  %v746_v23 = vld [vmem:[%s9340_s1 + $0x20] sm:$0xff]  ;;  %v1318_v11 = vlaneseq }
  0x70   : > { %v775_v20 = vld [vmem:[%s9340_s1 + $0x108] sm:$0xff]  ;;  %v780_v24 = vld [vmem:[%s9340_s1 + $0x130] sm:$0xff]  ;;  %v782_v25 = vld [vmem:[%s9340_s1 + $0x140] sm:$0xff] }
  0x71   : > { %v747_v22 = vld [vmem:[%s9340_s1 + $0x28] sm:$0xff]  ;;  %v781_v26 = vld [vmem:[%s9340_s1 + $0x138] sm:$0xff]  ;;  %v748_v28 = vld [vmem:[%s9340_s1 + $0x30] sm:$0xff] }
  0x72   : > { %v813_v27 = vld [vmem:[%s9340_s1 + $0x238] sm:$0xff]  ;;  %v784_v29 = vld [vmem:[%s9340_s1 + $0x150] sm:$0xff]  ;;  %v750_v30 = vld [vmem:[%s9340_s1 + $0x40] sm:$0xff] }
  0x73   : > { %v786_v31 = vld [vmem:[%s9340_s1 + $0x160] sm:$0xff]  ;;  %v752_v32 = vld [vmem:[%s9340_s1 + $0x50] sm:$0xff]  ;;  %v6615_v36 = vld [vmem:[%s6385_s14 + $0x58] sm:$0xff] }
  0x74   : > { %v788_v33 = vld [vmem:[%s9340_s1 + $0x170] sm:$0xff]  ;;  %v754_v35 = vld [vmem:[%s9340_s1 + $0x60] sm:$0xff]  ;;  %6201 = vmatpush.bf16.msra.mxu3 %v6615_v36  ;;  %v6631_v43 = vld [vmem:[%s6385_s14 + $0xb8] sm:$0xff] }
  0x75   : > { %v6621_v38 = vld [vmem:[%s6385_s14 + $0x50] sm:$0xff]  ;;  %v6624_v39 = vld [vmem:[%s6370_s30] ss:$0 sm:$0xff]  ;;  %v6634_v44 = vld [vmem:[%s6385_s14 + $0x48] sm:$0xff]  ;;  %6197 = vmatpush.bf16.msra.mxu1 %v6631_v43 }
  0x76   : > { %986 = vperm.xlu2 %6252, %v776_v13   ;;  %v790_v40 = vld [vmem:[%s9340_s1 + $0x180] sm:$0xff]  ;;  %v448_v49 = vld [vmem:[#allocation2 + $0x10] sm:$0xff]  ;;  %v483_v54 = vld [vmem:[#allocation2 + $0x128] sm:$0xff] }
  0x77   : > { %971 = vperm.xlu1 %6251, %v773_v14   ;;  %821 = vperm.xlu0 %6250, %v743_v15   ;;  %v446_v41 = vld [vmem:[#allocation2] sm:$0xff]  ;;  %v476_v50 = vld [vmem:[#allocation2 + $0xf0] sm:$0xff]  ;;  %v524_v56 = vmul.f32 %v6624_v39, %v448_v49  ;;  %v477_v59 = vld [vmem:[#allocation2 + $0xf8] sm:$0xff]  ;;  %v559_v63 = vmul.f32 %v6624_v39, %v483_v54 }
  0x78   : > { %6202 = vmatpush.bf16.msra.mxu3 %v6621_v38  ;;  %v478_v42 = vld [vmem:[#allocation2 + $0x100] sm:$0xff]  ;;  %v522_v46 = vmul.f32 %v6624_v39, %v446_v41  ;;  %v6644_v51 = vld [vmem:[%s6385_s14 + $0xb0] sm:$0xff]  ;;  %v552_v58 = vmul.f32 %v6624_v39, %v476_v50  ;;  %v447_v60 = vld [vmem:[#allocation2 + $0x8] sm:$0xff]  ;;  %v553_v3 = vmul.f32 %v6624_v39, %v477_v59 }
  0x79   : > { %v6637_v45 = vld [vmem:[%s6380_s11] ss:$0 sm:$0xff]  ;;  %v554_v47 = vmul.f32 %v6624_v39, %v478_v42  ;;  %v480_v53 = vld [vmem:[#allocation2 + $0x110] sm:$0xff]  ;;  %6198 = vmatpush.bf16.msra.mxu1 %v6644_v51  ;;  %v451_v0 = vld [vmem:[#allocation2 + $0x28] sm:$0xff]  ;;  %v523_v4 = vmul.f32 %v6624_v39, %v447_v60 }
  0x7a   : > { %v6647_v52 = vld [vmem:[%s6385_s14 + $0x40] sm:$0xff]  ;;  %v598_v55 = vadd.f32 %v6637_v45, %v522_v46  ;;  %v756_v57 = vld [vmem:[%s9340_s1 + $0x70] sm:$0xff]  ;;  %v556_v62 = vmul.f32 %v6624_v39, %v480_v53  ;;  %v6661_v1 = vld [vmem:[%s6385_s14 + $0xa8] sm:$0xff]  ;;  %v600_v6 = vadd.f32 %v6637_v45, %v524_v56  ;;  %v628_v7 = vadd.f32 %v6637_v45, %v552_v58 }
  0x7b   : > { %v630_v61 = vadd.f32 %v6637_v45, %v554_v47  ;;  %v482_v5 = vld [vmem:[#allocation2 + $0x120] sm:$0xff]  ;;  %v481_v8 = vld [vmem:[#allocation2 + $0x118] sm:$0xff]  ;;  %v527_v12 = vmul.f32 %v6624_v39, %v451_v0  ;;  %v6673_v15 = vadd.f32 %v6637_v45, %v559_v63  ;;  %v452_v49 = vld [vmem:[#allocation2 + $0x30] sm:$0xff] }
  0x7c   : > { %6203 = vmatpush.bf16.msra.mxu3 %v6634_v44  ;;  %v670_v2 = vmax.f32 %v598_v55, 0.0  ;;  %v632_v13 = vadd.f32 %v6637_v45, %v556_v62  ;;  %v449_v55 = vld [vmem:[#allocation2 + $0x18] sm:$0xff]  ;;  %v528_v0 = vmul.f32 %v6624_v39, %v452_v49 }
  0x7d   : > { %6199 = vmatpush.bf16.msra.mxu1 %v6661_v1  ;;  %v702_v9 = vmax.f32 %v630_v61, 0.0 }
  0x7e   : > { %826 = vperm.xlu2 %6252, %v744_v16  }
  0x7f   : > { %996 = vperm.xlu1 %6251, %v778_v17   ;;  %991 = vperm.xlu0 %6250, %v777_v18   ;;  %v558_v17 = vmul.f32 %v6624_v39, %v482_v5  ;;  %v6677_v18 = vld [vmem:[%s6385_s14 + $0xa0] sm:$0xff]  ;;  %v525_v5 = vmul.f32 %v6624_v39, %v449_v55 }
  0x80   : > { %6204 = vmatpush.bf16.msra.mxu3 %v6647_v52 }
  0x81   : > { %6200 = vmatpush.bf16.msra.mxu1 %v6677_v18 }
  0x86   : > { %1001 = vperm.xlu2 %6252, %v779_v19  }
  0x87   : > { %981 = vperm.xlu1 %6251, %v775_v20   ;;  %831 = vperm.xlu0 %6250, %v745_v21   ;;  %v629_v20 = vadd.f32 %v6637_v45, %v553_v3  ;;  %v599_v21 = vadd.f32 %v6637_v45, %v523_v4  ;;  %v758_v3 = vld [vmem:[%s9340_s1 + $0x80] sm:$0xff] }
  0x8e   : > { %841 = vperm.xlu2 %6252, %v747_v22   ;;  %v557_v22 = vmul.f32 %v6624_v39, %v481_v8 }
  0x8f   : > { %836 = vperm.xlu1 %6251, %v746_v23   ;;  %1006 = vperm.xlu0 %6250, %v780_v24   ;;  %v672_v23 = vmax.f32 %v600_v6, 0.0  ;;  %v700_v24 = vmax.f32 %v628_v7, 0.0 }
  0x90   : > { %v6703_v41 = vadd.f32 %v6637_v45, %v557_v22  ;;  %v450_v22 = vld [vmem:[#allocation2 + $0x20] sm:$0xff] }
  0x92   : > { %v705_v63 = vmax.f32 %v6703_v41, 0.0  ;;  %v526_v41 = vmul.f32 %v6624_v39, %v450_v22 }
  0x96   : > { %1016 = vperm.xlu2 %6252, %v782_v25   ;;  %v792_v25 = vld [vmem:[%s9340_s1 + $0x190] sm:$0xff] }
  0x97   : > { %1011 = vperm.xlu1 %6251, %v781_v26   ;;  %1171 = vperm.xlu0 %6250, %v813_v27   ;;  %v6691_v27 = vshrl.u32 %v1318_v11, 7 }
  0x99   : > { %vm2043_vm5 = vcmp.lt.s32.totalorder %v6691_v27, 7  ;;  %vm1320_vm6 = vcmp.lt.s32.totalorder %v6691_v27, 1 }
  0x9e   : > { %846 = vperm.xlu2 %6252, %v748_v28   ;;  %v6694_v28 = vadd.f32 %v6637_v45, %v527_v12 }
  0xa6   : > { %1026 = vperm.xlu2 %6252, %v784_v29   ;;  %v479_v29 = vld [vmem:[#allocation2 + $0x108] sm:$0xff] }
  0xa7   : > { %v555_v47 = vmul.f32 %v6624_v39, %v479_v29 }
  0xa9   : > { %v6735_v4 = vadd.f32 %v6637_v45, %v555_v47 }
  0xae   : > { %856 = vperm.xlu2 %6252, %v750_v30   ;;  %v704_v30 = vmax.f32 %v632_v13, 0.0 }
  0xb6   : > { %1036 = vperm.xlu2 %6252, %v786_v31  }
  0xbe   : > { %866 = vperm.xlu2 %6252, %v752_v32   ;;  %v6699_v32 = vadd.f32 %v6637_v45, %v558_v17 }
  0xc0   : > { %v706_v59 = vmax.f32 %v6699_v32, 0.0 }
  0xc6   : > { %1046 = vperm.xlu2 %6252, %v788_v33   ;;  %v707_v33 = vmax.f32 %v6673_v15, 0.0  ;;  %v749_v15 = vld [vmem:[%s9340_s1 + $0x38] sm:$0xff] }
  0xc8   : > { %v6609_v34 = vpop.permute.xlu2 %976 }
  0xc9   : > { %v6689_v26 = vmul.f32 %v6609_v34, %v702_v9  ;;  %v486_v34 = vld [vmem:[#allocation2 + $0x140] sm:$0xff] }
  0xca   : > { %v6722_v60 = vmul.f32 %v6624_v39, %v486_v34 }
  0xcb   : > { %v1278_v50 = vrot.slane %v6689_v26, 7  ;;  %v2003_v53 = vrot.slane %v6689_v26, 1 }
  0xce   : > { %876 = vperm.xlu2 %6252, %v754_v35   ;;  %v701_v35 = vmax.f32 %v629_v20, 0.0 }
  0xd0   : > { %v6618_v37 = vpop.permute.xlu2 %986 }
  0xd1   : > { %v6718_v56 = vmul.f32 %v6618_v37, %v704_v30 }
  0xd6   : > { %1056 = vperm.xlu2 %6252, %v790_v40   ;;  %v671_v40 = vmax.f32 %v599_v21, 0.0 }
  0xd8   : > { %v827_v48 = vpop.permute.xlu2 %826 }
  0xd9   : > { %v6705_v42 = vmul.f32 %v827_v48, %v672_v23  ;;  %v675_v48 = vmax.f32 %v6694_v28, 0.0  ;;  %v484_v23 = vld [vmem:[#allocation2 + $0x130] sm:$0xff] }
  0xda   : > { %v560_v47 = vmul.f32 %v6624_v39, %v484_v23 }
  0xdb   : > { %v1248_v11 = vrot.slane %v6705_v42, 7 }
  0xdc   : > { %v6813_v22 = vadd.f32 %v6637_v45, %v560_v47 }
  0xde   : > { %886 = vperm.xlu2 %6252, %v756_v57  }
  0xe0   : > { %v6668_v10 = vpop.permute.xlu2 %1001 }
  0xe1   : > { %v967_v14 = vpop.permute.xlu1 %966  ;;  %v817_v16 = vpop.permute.xlu0 %816 }
  0xe2   : > { %v6679_v19 = vmul.f32 %v817_v16, %v670_v2  ;;  %v6707_v46 = vmul.f32 %v967_v14, %v700_v24  ;;  %v1973_v2 = vrot.slane %v6705_v42, 1  ;;  %v6763_v24 = vmul.f32 %v6668_v10, %v707_v33 }
  0xe4   : > { %v1538_v31 = vpack.c.bf16 %v6679_v19, %v6679_v19  ;;  %v9352_v37 = vrot.slane %v6707_v46, 1  ;;  %v1971_v6 = vrot.slane %v6679_v19, 1  ;;  %v1246_v12 = vrot.slane %v6679_v19, 7 }
  0xe6   : > { %1066 = vperm.xlu2 %6252, %v792_v25   ;;  %1682 = vrot.lane.b32.xlu0 %v1538_v31, %s6302_s12 }
  0xe8   : > { %v6714_v54 = vpop.permute.xlu2 %841 }
  0xe9   : > { %v972_v57 = vpop.permute.xlu1 %971  ;;  %v822_v58 = vpop.permute.xlu0 %821 }
  0xea   : > { %v6725_v61 = vmul.f32 %v972_v57, %v701_v35  ;;  %v1175_v62 = vmul.f32 %v822_v58, %v671_v40  ;;  %v604_v35 = vadd.f32 %v6637_v45, %v528_v0 }
  0xec   : > { %v2002_v7 = vrot.slane %v6725_v61, 1  ;;  %v1247_v8 = vrot.slane %v1175_v62, 7  ;;  %v1972_v9 = vrot.slane %v1175_v62, 1  ;;  %v1277_v13 = vrot.slane %v6725_v61, 7 }
  0xed   : > { %v1539_v14 = vpack.c.bf16 %v1175_v62, %v1175_v62  ;;  %v601_v62 = vadd.f32 %v6637_v45, %v525_v5 }
  0xee   : > { %v2083_v16 = vsel %vm2043_vm5, %v2002_v7, %v2003_v53  ;;  %v2084_v17 = vsel %vm2043_vm5, %v9352_v37, %v2002_v7  ;;  %v2113_v20 = vsel %vm2043_vm5, %v1972_v9, %v1973_v2  ;;  %v2114_v21 = vsel %vm2043_vm5, %v1971_v6, %v1972_v9  ;;  %896 = vperm.xlu2 %6252, %v758_v3  }
  0xef   : > { %v2146_v25 = vpack.c.bf16 %v2084_v17, %v2084_v17  ;;  %v2147_v29 = vpack.c.bf16 %v2083_v16, %v2083_v16  ;;  %v2116_v30 = vpack.c.bf16 %v2114_v21, %v2114_v21  ;;  %1684 = vrot.lane.b32.xlu1 %v1539_v14, %s6302_s12  ;;  %v2117_v31 = vpack.c.bf16 %v2113_v20, %v2113_v20 }
  0xf0   : > { %851 = vperm.xlu0 %6250, %v749_v15   ;;  %v6766_v32 = vpop.permute.xlu2 %1016  ;;  %v1391_v40 = vsel %vm1320_vm6, %v1246_v12, %v1247_v8  ;;  %v1390_v10 = vsel %vm1320_vm6, %v1247_v8, %v1248_v11  ;;  %v1360_v55 = vsel %vm1320_vm6, %v1277_v13, %v1278_v50  ;;  %v1280_v3 = vrot.slane %v6718_v56, 7  ;;  %v783_v15 = vld [vmem:[%s9340_s1 + $0x148] sm:$0xff] }
  0xf1   : > { %2218 = vst.msk [vmem:[#allocation3 + $0x114] sm:$0xf] %vm1465_vm4, %v2146_v25  ;;  %v997_v33 = vpop.permute.xlu1 %996  ;;  %v992_v34 = vpop.permute.xlu0 %991  ;;  %v1394_v49 = vpack.c.bf16 %v1391_v40, %v1391_v40  ;;  %v1395_v0 = vpack.c.bf16 %v1390_v10, %v1390_v10  ;;  %v2005_v7 = vrot.slane %v6718_v56, 1  ;;  %v2008_v8 = vrot.slane %v6763_v24, 1 }
  0xf2   : > { %2219 = vst.msk [vmem:[#allocation3 + $0x11c] sm:$0xf] %vm1465_vm4, %v2147_v29  ;;  %v6787_v57 = vmul.f32 %v997_v33, %v706_v59  ;;  %v6789_v58 = vmul.f32 %v992_v34, %v705_v63  ;;  %v1540_v9 = vpack.c.bf16 %v6705_v42, %v6705_v42  ;;  %v794_v59 = vld [vmem:[%s9340_s1 + $0x1a0] sm:$0xff]  ;;  %v1425_v16 = vpack.c.bf16 %v1360_v55, %v1360_v55  ;;  %v485_v55 = vld [vmem:[#allocation2 + $0x138] sm:$0xff] }
  0xf3   : > { %2188 = vst.msk [vmem:[#allocation3 + $0x24] sm:$0xf] %vm1465_vm4, %v2116_v30  ;;  %v703_v17 = vmax.f32 %v6735_v4, 0.0  ;;  %v676_v20 = vmax.f32 %v604_v35, 0.0  ;;  %v6810_v21 = vadd.f32 %v6637_v45, %v526_v41  ;;  %v673_v29 = vmax.f32 %v601_v62, 0.0 }
  0xf4   : > { %2189 = vst.msk [vmem:[#allocation3 + $0x2c] sm:$0xf] %vm1465_vm4, %v2117_v31  ;;  %v2007_v63 = vrot.slane %v6787_v57, 1  ;;  %v1281_v5 = vrot.slane %v6789_v58, 7  ;;  %v2006_v14 = vrot.slane %v6789_v58, 1  ;;  %v6830_v30 = vmul.f32 %v6714_v54, %v675_v48 }
  0xf5   : > { %1467 = vst.msk [vmem:[#allocation3 + $0x28] sm:$0xf] %vm1465_vm4, %v1394_v49  ;;  %v6843_v54 = vadd.f32 %v6637_v45, %v6722_v60  ;;  %v674_v49 = vmax.f32 %v6810_v21, 0.0  ;;  %v760_v60 = vld [vmem:[%s9340_s1 + $0x90] sm:$0xff] }
  0xf6   : > { %v2078_v23 = vsel %vm2043_vm5, %v2007_v63, %v2008_v8  ;;  %v2079_v25 = vsel %vm2043_vm5, %v2006_v14, %v2007_v63  ;;  %v2080_v4 = vsel %vm2043_vm5, %v2005_v7, %v2006_v14  ;;  %1076 = vperm.xlu2 %6252, %v794_v59   ;;  %1468 = vst.msk [vmem:[#allocation3 + $0x30] sm:$0xf] %vm1465_vm4, %v1395_v0  ;;  %v708_v63 = vmax.f32 %v6813_v22, 0.0  ;;  %v517_v14 = vld [vmem:[#allocation2 + $0x238] sm:$0xff] }
  0xf7   : > { %v2152_v31 = vpack.c.bf16 %v2078_v23, %v2078_v23  ;;  %v2150_v35 = vpack.c.bf16 %v2080_v4, %v2080_v4  ;;  %v2151_v40 = vpack.c.bf16 %v2079_v25, %v2079_v25  ;;  %1021 = vperm.xlu1 %6251, %v783_v15   ;;  %1498 = vst.msk [vmem:[#allocation3 + $0x120] sm:$0xf] %vm1465_vm4, %v1425_v16  ;;  %v1251_v15 = vrot.slane %v6830_v30, 7 }
  0xf8   : > { %1686 = vrot.lane.b32.xlu0 %v1540_v9, %s6302_s12  ;;  %v847_v10 = vpop.permute.xlu2 %846  ;;  %v6047_v33 = vld [vmem:[#allocation3 + $0x114] sm:$0xf]  ;;  %v1357_v28 = vsel %vm1320_vm6, %v1280_v3, %v1281_v5  ;;  %v1976_v16 = vrot.slane %v6830_v30, 1  ;;  %v561_v22 = vmul.f32 %v6624_v39, %v485_v55 }
  0xf9   : > { %2224 = vst.msk [vmem:[#allocation3 + $0x144] sm:$0xf] %vm1465_vm4, %v2152_v31  ;;  %v982_v48 = vpop.permute.xlu1 %981  ;;  %v6845_v34 = vmul.f32 %v847_v10, %v676_v20  ;;  %v832_v41 = vpop.permute.xlu0 %831  ;;  %v5266_v47 = vld [vmem:[#allocation3 + $0x118] sm:$0xf0]  ;;  %v1428_v62 = vpack.c.bf16 %v1357_v28, %v1357_v28  ;;  %v751_v31 = vld [vmem:[%s9340_s1 + $0x48] sm:$0xff] }
  0xfa   : > { %2222 = vst.msk [vmem:[#allocation3 + $0x134] sm:$0xf] %vm1465_vm4, %v2150_v35  ;;  %v6849_v0 = vmul.f32 %v982_v48, %v703_v17  ;;  %v6851_v9 = vmul.f32 %v832_v41, %v673_v29  ;;  %v6853_v59 = vor.u32 %v6047_v33, %v5266_v47  ;;  %v593_v35 = vmul.f32 %v6624_v39, %v517_v14 }
  0xfb   : > { %2223 = vst.msk [vmem:[#allocation3 + $0x13c] sm:$0xf] %vm1465_vm4, %v2151_v40  ;;  %v1252_v17 = vrot.slane %v6845_v34, 7  ;;  %v1977_v20 = vrot.slane %v6845_v34, 1  ;;  %v9351_v41 = vrot.slane %v6707_v46, 7 }
  0xfc   : > { %9371 = vst [vmem:[#allocation4_spill] sm:$0xff] %v6853_v59  ;;  %v2004_v21 = vrot.slane %v6849_v0, 1  ;;  %v1249_v23 = vrot.slane %v6851_v9, 7  ;;  %v1974_v25 = vrot.slane %v6851_v9, 1  ;;  %5595 = vmatmul.msk.bf16.vlgmr.msra.gmra.mxu3 %vm2781_vm7, %v6853_v59  ;;  %v1541_v29 = vpack.c.bf16 %v6851_v9, %v6851_v9 }
  0xfd   : > { %v2109_v4 = vsel %vm2043_vm5, %v1976_v16, %v1977_v20  ;;  %v1386_v40 = vsel %vm1320_vm6, %v1251_v15, %v1252_v17  ;;  %1501 = vst.msk [vmem:[#allocation3 + $0x138] sm:$0xf] %vm1465_vm4, %v1428_v62 }
  0xfe   : > { %v2081_v10 = vsel %vm2043_vm5, %v2004_v21, %v2005_v7  ;;  %v2082_v33 = vsel %vm2043_vm5, %v2003_v53, %v2004_v21  ;;  %v2121_v28 = vpack.c.bf16 %v2109_v4, %v2109_v4  ;;  %v2112_v48 = vsel %vm2043_vm5, %v1973_v2, %v1974_v25  ;;  %906 = vperm.xlu2 %6252, %v760_v60  }
  0xff   : > { %v2148_v47 = vpack.c.bf16 %v2082_v33, %v2082_v33  ;;  %v2149_v55 = vpack.c.bf16 %v2081_v10, %v2081_v10  ;;  %v2118_v62 = vpack.c.bf16 %v2112_v48, %v2112_v48  ;;  %1688 = vrot.lane.b32.xlu1 %v1541_v29, %s6302_s12  ;;  %v637_v53 = vadd.f32 %v6637_v45, %v561_v22 }
 0x100   : > { %2193 = vst.msk [vmem:[#allocation3 + $0x4c] sm:$0xf] %vm1465_vm4, %v2121_v28  ;;  %861 = vperm.xlu0 %6250, %v751_v31   ;;  %v6902_v7 = vpop.permute.xlu2 %1026  ;;  %v1389_v2 = vsel %vm1320_vm6, %v1248_v11, %v1249_v23  ;;  %v669_v21 = vadd.f32 %v6637_v45, %v593_v35  ;;  %v1399_v29 = vpack.c.bf16 %v1386_v40, %v1386_v40  ;;  %v1283_v10 = vrot.slane %v6763_v24, 7  ;;  %v796_v40 = vld [vmem:[%s9340_s1 + $0x1b0] sm:$0xff] }
 0x101   : > { %2220 = vst.msk [vmem:[#allocation3 + $0x124] sm:$0xf] %vm1465_vm4, %v2148_v47  ;;  %v837_v9 = vpop.permute.xlu1 %836  ;;  %v1007_v60 = vpop.permute.xlu0 %1006  ;;  %v6051_v14 = vld [vmem:[#allocation3 + $0x134] sm:$0xf]  ;;  %v1396_v4 = vpack.c.bf16 %v1389_v2, %v1389_v2  ;;  %v1361_v22 = vsel %vm1320_vm6, %v9351_v41, %v1277_v13  ;;  %v710_v33 = vmax.f32 %v6843_v54, 0.0 }
 0x102   : > { %2221 = vst.msk [vmem:[#allocation3 + $0x12c] sm:$0xf] %vm1465_vm4, %v2149_v55  ;;  %v1178_v42 = vmul.f32 %v837_v9, %v674_v49  ;;  %v6918_v11 = vmul.f32 %v1007_v60, %v708_v63  ;;  %v5282_v31 = vld [vmem:[#allocation3 + $0x138] sm:$0xf0]  ;;  %v1424_v63 = vpack.c.bf16 %v1361_v22, %v1361_v22  ;;  %v709_v55 = vmax.f32 %v637_v53, 0.0 }
 0x103   : > { %2190 = vst.msk [vmem:[#allocation3 + $0x34] sm:$0xf] %vm1465_vm4, %v2118_v62  ;;  %v6923_v35 = vor.u32 %v6051_v14, %v5282_v31  ;;  %v785_v49 = vld [vmem:[%s9340_s1 + $0x158] sm:$0xff]  ;;  %v741_v62 = vmax.f32 %v669_v21, 0.0  ;;  %v6948_v53 = vmul.f32 %v6766_v32, %v710_v33 }
 0x104   : > { %v1250_v28 = vrot.slane %v1178_v42, 7  ;;  %v1975_v13 = vrot.slane %v1178_v42, 1  ;;  %v2009_v48 = vrot.slane %v6918_v11, 1  ;;  %1469 = vst.msk [vmem:[#allocation3 + $0x38] sm:$0xf] %vm1465_vm4, %v1396_v4  ;;  %v1284_v54 = vrot.slane %v6918_v11, 7 }
 0x105   : > { %5495 = vmatmul.msk.bf16.vlgmr.msra.gmra.mxu1 %vm2781_vm7, %v6923_v35  ;;  %v1542_v47 = vpack.c.bf16 %v1178_v42, %v1178_v42  ;;  %1472 = vst.msk [vmem:[#allocation3 + $0x50] sm:$0xf] %vm1465_vm4, %v1399_v29 }
 0x106   : > { %v2110_v2 = vsel %vm2043_vm5, %v1975_v13, %v1976_v16  ;;  %v2111_v9 = vsel %vm2043_vm5, %v1974_v25, %v1975_v13  ;;  %v2077_v60 = vsel %vm2043_vm5, %v2008_v8, %v2009_v48  ;;  %1086 = vperm.xlu2 %6252, %v796_v40   ;;  %v1388_v14 = vsel %vm1320_vm6, %v1249_v23, %v1250_v28 }
 0x107   : > { %v2119_v21 = vpack.c.bf16 %v2111_v9, %v2111_v9  ;;  %v2120_v4 = vpack.c.bf16 %v2110_v2, %v2110_v2  ;;  %v2153_v29 = vpack.c.bf16 %v2077_v60, %v2077_v60  ;;  %1031 = vperm.xlu1 %6251, %v785_v49   ;;  %v1387_v8 = vsel %vm1320_vm6, %v1250_v28, %v1251_v15  ;;  %v6092_v9 = vld [vmem:[%s6385_s14 + $0x38] sm:$0xff] }
 0x108   : > { %1690 = vrot.lane.b32.xlu0 %v1542_v47, %s6302_s12  ;;  %v6951_v16 = vpop.permute.xlu2 %856  ;;  %v6049_v25 = vld [vmem:[#allocation3 + $0x124] sm:$0xf]  ;;  %1497 = vst.msk [vmem:[#allocation3 + $0x118] sm:$0xf] %vm1465_vm4, %v1424_v63  ;;  %v1279_v23 = vrot.slane %v6849_v0, 7  ;;  %v1397_v31 = vpack.c.bf16 %v1388_v14, %v1388_v14  ;;  %v1354_v33 = vsel %vm1320_vm6, %v1283_v10, %v1284_v54  ;;  %v1398_v13 = vpack.c.bf16 %v1387_v8, %v1387_v8 }
 0x109   : > { %2191 = vst.msk [vmem:[#allocation3 + $0x3c] sm:$0xf] %vm1465_vm4, %v2119_v21  ;;  %v1012_v32 = vpop.permute.xlu1 %1011  ;;  %v1172_v22 = vpop.permute.xlu0 %1171  ;;  %v5274_v42 = vld [vmem:[#allocation3 + $0x128] sm:$0xf0]  ;;  %v1282_v49 = vrot.slane %v6787_v57, 7  ;;  %v2011_v63 = vrot.slane %v6948_v53, 1  ;;  %v1431_v60 = vpack.c.bf16 %v1354_v33, %v1354_v33  ;;  %3364 = vmatpush.bf16.msra.mxu2 %v6092_v9 }
 0x10a   : > { %2192 = vst.msk [vmem:[#allocation3 + $0x44] sm:$0xf] %vm1465_vm4, %v2120_v4  ;;  %v6967_v15 = vmul.f32 %v1012_v32, %v709_v55  ;;  %v6969_v40 = vmul.f32 %v1172_v22, %v741_v62  ;;  %v6971_v28 = vor.u32 %v6049_v25, %v5274_v42  ;;  %v762_v47 = vld [vmem:[%s9340_s1 + $0xa0] sm:$0xff]  ;;  %v1286_v14 = vrot.slane %v6948_v53, 7  ;;  %v6091_v33 = vld [vmem:[%s6385_s14 + $0x30] sm:$0xff] }
 0x10b   : > { %2225 = vst.msk [vmem:[#allocation3 + $0x14c] sm:$0xf] %vm1465_vm4, %v2153_v29  ;;  %v1543_v4 = vpack.c.bf16 %v6830_v30, %v6830_v30  ;;  %v753_v29 = vld [vmem:[%s9340_s1 + $0x58] sm:$0xff]  ;;  %v1358_v25 = vsel %vm1320_vm6, %v1279_v23, %v1280_v3 }
 0x10c   : > { %9372 = vst [vmem:[#allocation5_spill] sm:$0xff] %v6971_v28  ;;  %v2010_v2 = vrot.slane %v6967_v15, 1  ;;  %v9345_v55 = vrot.slane %v6969_v40, 7  ;;  %v9346_v62 = vrot.slane %v6969_v40, 1  ;;  %5596 = vmatmul.msk.bf16.gmra.mxu3 %vm2781_vm7, %v6971_v28  ;;  %v1285_v21 = vrot.slane %v6967_v15, 7 }
 0x10d   : > { %1470 = vst.msk [vmem:[#allocation3 + $0x40] sm:$0xf] %vm1465_vm4, %v1397_v31  ;;  %3365 = vmatpush.bf16.msra.mxu2 %v6091_v33  ;;  %v6088_v33 = vld [vmem:[%s6385_s14 + $0x18] sm:$0xff] }
 0x10e   : > { %v2075_v8 = vsel %vm2043_vm5, %v2010_v2, %v2011_v63  ;;  %v2076_v30 = vsel %vm2043_vm5, %v2009_v48, %v2010_v2  ;;  %v2115_v32 = vsel %vm2043_vm5, %v9346_v62, %v1971_v6  ;;  %916 = vperm.xlu2 %6252, %v762_v47   ;;  %1471 = vst.msk [vmem:[#allocation3 + $0x48] sm:$0xf] %vm1465_vm4, %v1398_v13 }
 0x10f   : > { %v2154_v3 = vpack.c.bf16 %v2076_v30, %v2076_v30  ;;  %v2155_v22 = vpack.c.bf16 %v2075_v8, %v2075_v8  ;;  %v2187_v42 = vpack.c.bf16 %v2115_v32, %v2115_v32  ;;  %1692 = vrot.lane.b32.xlu1 %v1543_v4, %s6302_s12  ;;  %v1355_v48 = vsel %vm1320_vm6, %v1282_v49, %v1283_v10  ;;  %v798_v4 = vld [vmem:[%s9340_s1 + $0x1c0] sm:$0xff]  ;;  %v787_v30 = vld [vmem:[%s9340_s1 + $0x168] sm:$0xff] }
 0x110   : > { %871 = vperm.xlu0 %6250, %v753_v29   ;;  %v7015_v31 = vpop.permute.xlu2 %1036  ;;  %v1392_v6 = vsel %vm1320_vm6, %v9345_v55, %v1246_v12  ;;  %1504 = vst.msk [vmem:[#allocation3 + $0x150] sm:$0xf] %vm1465_vm4, %v1431_v60  ;;  %v1359_v13 = vsel %vm1320_vm6, %v1278_v50, %v1279_v23  ;;  %v1427_v47 = vpack.c.bf16 %v1358_v25, %v1358_v25  ;;  %v6053_v12 = vld [vmem:[#allocation3 + $0x144] sm:$0xf]  ;;  %v6090_v29 = vld [vmem:[%s6385_s14 + $0x28] sm:$0xff]  ;;  %v6192_v55 = vld [vmem:[%s6385_s14 + $0xf8] sm:$0xff] }
 0x111   : > { %2226 = vst.msk [vmem:[#allocation3 + $0x154] sm:$0xf] %vm1465_vm4, %v2154_v3  ;;  %v1393_v10 = vpack.c.bf16 %v1392_v6, %v1392_v6  ;;  %v1352_v19 = vsel %vm1320_vm6, %v1285_v21, %v1286_v14  ;;  %v1430_v9 = vpack.c.bf16 %v1355_v48, %v1355_v48  ;;  %v1356_v50 = vsel %vm1320_vm6, %v1281_v5, %v1282_v49  ;;  %v454_v23 = vld [vmem:[#allocation2 + $0x40] sm:$0xff]  ;;  %v764_v48 = vld [vmem:[%s9340_s1 + $0xb0] sm:$0xff]  ;;  %v755_v6 = vld [vmem:[%s9340_s1 + $0x68] sm:$0xff] }
 0x112   : > { %2227 = vst.msk [vmem:[#allocation3 + $0x15c] sm:$0xf] %vm1465_vm4, %v2155_v22  ;;  %v5290_v2 = vld [vmem:[#allocation3 + $0x148] sm:$0xf0]  ;;  %v1426_v25 = vpack.c.bf16 %v1359_v13, %v1359_v13  ;;  %v1353_v8 = vsel %vm1320_vm6, %v1284_v54, %v1285_v21  ;;  %v1433_v5 = vpack.c.bf16 %v1352_v19, %v1352_v19  ;;  %v1429_v49 = vpack.c.bf16 %v1356_v50, %v1356_v50  ;;  %v6089_v22 = vld [vmem:[%s6385_s14 + $0x20] sm:$0xff]  ;;  %v800_v50 = vld [vmem:[%s9340_s1 + $0x1d0] sm:$0xff] }
 0x113   : > { %2259 = vst.msk [vmem:[#allocation3 + $0x25c] sm:$0xf] %vm1465_vm4, %v2187_v42  ;;  %v5293_v60 = vor.u32 %v6053_v12, %v5290_v2  ;;  %v530_v32 = vmul.f32 %v6624_v39, %v454_v23  ;;  %v1544_v3 = vpack.c.bf16 %v6845_v34, %v6845_v34  ;;  %3366 = vmatpush.bf16.msra.mxu2 %v6090_v29  ;;  %v6087_v12 = vld [vmem:[%s6385_s14 + $0x10] sm:$0xff]  ;;  %v6086_v23 = vld [vmem:[%s6385_s14 + $0x8] sm:$0xff] }
 0x114   : > { %1466 = vst.msk [vmem:[#allocation3 + $0x20] sm:$0xf] %vm1465_vm4, %v1393_v10  ;;  %v1432_v54 = vpack.c.bf16 %v1353_v8, %v1353_v8  ;;  %4343 = vmatpush.bf16.msrb.mxu1 %v6192_v55 }
 0x115   : > { %5496 = vmatmul.msk.bf16.gmra.mxu1 %vm2781_vm7, %v5293_v60  ;;  %1500 = vst.msk [vmem:[#allocation3 + $0x130] sm:$0xf] %vm1465_vm4, %v1427_v47  ;;  %v606_v42 = vadd.f32 %v6637_v45, %v530_v32  ;;  %v6014_v32 = vld [vmem:[#allocation3 + $0x4] sm:$0xf0] }
 0x116   : > { %1096 = vperm.xlu2 %6252, %v798_v4   ;;  %1503 = vst.msk [vmem:[#allocation3 + $0x148] sm:$0xf] %vm1465_vm4, %v1430_v9 }
 0x117   : > { %1041 = vperm.xlu1 %6251, %v787_v30   ;;  %1499 = vst.msk [vmem:[#allocation3 + $0x128] sm:$0xf] %vm1465_vm4, %v1426_v25  ;;  %3367 = vmatpush.bf16.msra.mxu2 %v6089_v22  ;;  %v678_v13 = vmax.f32 %v606_v42, 0.0  ;;  %v6085_v25 = vld [vmem:[%s6385_s14] sm:$0xff] }
 0x118   : > { %1694 = vrot.lane.b32.xlu0 %v1544_v3, %s6302_s12  ;;  %v867_v21 = vpop.permute.xlu2 %866  ;;  %1506 = vst.msk [vmem:[#allocation3 + $0x160] sm:$0xf] %vm1465_vm4, %v1433_v5  ;;  %v6055_v47 = vld [vmem:[#allocation3 + $0x154] sm:$0xf]  ;;  %v766_v30 = vld [vmem:[%s9340_s1 + $0xc0] sm:$0xff]  ;;  %v757_v3 = vld [vmem:[%s9340_s1 + $0x78] sm:$0xff] }
 0x119   : > { %1502 = vst.msk [vmem:[#allocation3 + $0x140] sm:$0xf] %vm1465_vm4, %v1429_v49  ;;  %v5298_v19 = vld [vmem:[#allocation3 + $0x158] sm:$0xf0]  ;;  %v7078_v2 = vmul.f32 %v6951_v16, %v678_v13  ;;  %v5516_v5 = vld [vmem:[#allocation3] sm:$0xf] }
 0x11a   : > { %1505 = vst.msk [vmem:[#allocation3 + $0x158] sm:$0xf] %vm1465_vm4, %v1432_v54  ;;  %v5301_v9 = vor.u32 %v6055_v47, %v5298_v19  ;;  %v6108_v49 = vld [vmem:[%s6385_s14 + $0x98] sm:$0xff]  ;;  %v5517_v54 = vor.u32 %v6014_v32, %v5516_v5  ;;  %v6102_v32 = vld [vmem:[%s6385_s14 + $0x68] sm:$0xff] }
 0x11b   : > { %3368 = vmatpush.bf16.msra.mxu2 %v6088_v33  ;;  %v1546_v29 = vpack.c.bf16 %v7078_v2, %v7078_v2  ;;  %2890 = vmatpush.bf16.msra.mxu0 %v6108_v49  ;;  %v802_v33 = vld [vmem:[%s9340_s1 + $0x1e0] sm:$0xff] }
 0x11c   : > { %5597 = vmatmul.msk.bf16.gmra.mxu3 %vm2781_vm7, %v6923_v35  ;;  %v456_v35 = vld [vmem:[#allocation2 + $0x50] sm:$0xff] }
 0x11d   : > { %v532_v4 = vmul.f32 %v6624_v39, %v456_v35  ;;  %v6104_v35 = vld [vmem:[%s6385_s14 + $0x78] sm:$0xff] }
 0x11e   : > { %926 = vperm.xlu2 %6252, %v764_v48   ;;  %v6107_v48 = vld [vmem:[%s6385_s14 + $0x90] sm:$0xff] }
 0x11f   : > { %3369 = vmatpush.bf16.msra.mxu2 %v6087_v12  ;;  %v608_v8 = vadd.f32 %v6637_v45, %v532_v4  ;;  %2891 = vmatpush.bf16.msra.mxu0 %v6107_v48  ;;  %v5524_v12 = vld [vmem:[#allocation3 + $0x10] sm:$0xf]  ;;  %v761_v48 = vld [vmem:[%s9340_s1 + $0x98] sm:$0xff] }
 0x120   : > { %881 = vperm.xlu0 %6250, %v755_v6   ;;  %v7074_v10 = vpop.permute.xlu2 %1046  ;;  %v6106_v6 = vld [vmem:[%s6385_s14 + $0x88] sm:$0xff] }
 0x121   : > { %v680_v22 = vmax.f32 %v608_v8, 0.0 }
 0x123   : > { %3370 = vmatpush.bf16.msra.mxu2 %v6086_v23  ;;  %2892 = vmatpush.bf16.msra.mxu0 %v6106_v6  ;;  %v759_v23 = vld [vmem:[%s9340_s1 + $0x88] sm:$0xff] }
 0x125   : > { %5497 = vmatmul.msk.bf16.gmra.mxu1 %vm2781_vm7, %v5301_v9 }
 0x126   : > { %1106 = vperm.xlu2 %6252, %v800_v50   ;;  %v6016_v50 = vld [vmem:[#allocation3 + $0x14] sm:$0xf0] }
 0x127   : > { %3371 = vmatpush.bf16.msra.mxu2 %v6085_v25  ;;  %v5525_v4 = vor.u32 %v6016_v50, %v5524_v12  ;;  %v6103_v25 = vld [vmem:[%s6385_s14 + $0x70] sm:$0xff]  ;;  %v807_v50 = vld [vmem:[%s9340_s1 + $0x208] sm:$0xff] }
 0x128   : > { %1698 = vrot.lane.b32.xlu0 %v1546_v29, %s6302_s12  ;;  %v877_v16 = vpop.permute.xlu2 %876 }
 0x12a   : > { %3372 = vmatmul.bf16.vlgmr.msra.gmra.mxu2 %v5517_v54  ;;  %v6101_v54 = vld [vmem:[%s6385_s14 + $0x60] sm:$0xff] }
 0x12b   : > { %3557 = vmatpush.bf16.msrb.mxu2 %v6615_v36  ;;  %v7104_v36 = vmul.f32 %v867_v21, %v680_v22  ;;  %v6105_v21 = vld [vmem:[%s6385_s14 + $0x80] sm:$0xff] }
 0x12c   : > { %5598 = vmatmul.msk.bf16.gmra.mxu3 %vm2781_vm7, %v5293_v60  ;;  %v458_v60 = vld [vmem:[#allocation2 + $0x60] sm:$0xff]  ;;  %2893 = vmatpush.bf16.msra.mxu0 %v6105_v21  ;;  %v453_v21 = vld [vmem:[#allocation2 + $0x38] sm:$0xff] }
 0x12d   : > { %v534_v13 = vmul.f32 %v6624_v39, %v458_v60  ;;  %v1548_v47 = vpack.c.bf16 %v7104_v36, %v7104_v36  ;;  %v770_v22 = vld [vmem:[%s9340_s1 + $0xe0] sm:$0xff] }
 0x12e   : > { %936 = vperm.xlu2 %6252, %v766_v30   ;;  %v804_v30 = vld [vmem:[%s9340_s1 + $0x1f0] sm:$0xff] }
 0x12f   : > { %3558 = vmatpush.bf16.msrb.mxu2 %v6621_v38  ;;  %v610_v19 = vadd.f32 %v6637_v45, %v534_v13  ;;  %v462_v13 = vld [vmem:[#allocation2 + $0x80] sm:$0xff] }
 0x130   : > { %891 = vperm.xlu0 %6250, %v757_v3   ;;  %v7100_v42 = vpop.permute.xlu2 %1056  ;;  %2894 = vmatpush.bf16.msra.mxu0 %v6104_v35 }
 0x133   : > { %3559 = vmatpush.bf16.msrb.mxu2 %v6634_v44  ;;  %v768_v44 = vld [vmem:[%s9340_s1 + $0xd0] sm:$0xff] }
 0x134   : > { %2895 = vmatpush.bf16.msra.mxu0 %v6103_v25 }
 0x136   : > { %1116 = vperm.xlu2 %6252, %v802_v33  }
 0x137   : > { %3560 = vmatpush.bf16.msrb.mxu2 %v6647_v52  ;;  %v682_v52 = vmax.f32 %v610_v19, 0.0  ;;  %v538_v19 = vmul.f32 %v6624_v39, %v462_v13  ;;  %v455_v13 = vld [vmem:[#allocation2 + $0x48] sm:$0xff] }
 0x138   : > { %1702 = vrot.lane.b32.xlu0 %v1548_v47, %s6302_s12  ;;  %v887_v38 = vpop.permute.xlu2 %886  ;;  %2896 = vmatpush.bf16.msra.mxu0 %v6102_v32  ;;  %v806_v47 = vld [vmem:[%s9340_s1 + $0x200] sm:$0xff] }
 0x139   : > { %v7129_v8 = vmul.f32 %v877_v16, %v682_v52  ;;  %v763_v52 = vld [vmem:[%s9340_s1 + $0xa8] sm:$0xff] }
 0x13a   : > { %3377 = vmatmul.bf16.gmra.mxu2 %v5525_v4  ;;  %v487_v4 = vld [vmem:[#allocation2 + $0x148] sm:$0xff] }
 0x13b   : > { %v1550_v49 = vpack.c.bf16 %v7129_v8, %v7129_v8 }
 0x13c   : > { %5599 = vmatmul.msk.bf16.gmra.mxu3 %vm2781_vm7, %v5301_v9  ;;  %v460_v9 = vld [vmem:[#allocation2 + $0x70] sm:$0xff]  ;;  %2897 = vmatpush.bf16.msra.mxu0 %v6101_v54 }
 0x13d   : > { %v536_v5 = vmul.f32 %v6624_v39, %v460_v9  ;;  %v563_v9 = vmul.f32 %v6624_v39, %v487_v4  ;;  %v464_v54 = vld [vmem:[#allocation2 + $0x90] sm:$0xff] }
 0x13e   : > { %946 = vperm.xlu2 %6252, %v768_v44   ;;  %v488_v44 = vld [vmem:[#allocation2 + $0x150] sm:$0xff] }
 0x13f   : > { %v612_v16 = vadd.f32 %v6637_v45, %v536_v5  ;;  %v564_v35 = vmul.f32 %v6624_v39, %v488_v44 }
 0x140   : > { %901 = vperm.xlu0 %6250, %v759_v23   ;;  %v7126_v29 = vpop.permute.xlu2 %1066  ;;  %3083 = vmatpush.bf16.msrb.mxu0 %v6631_v43 }
 0x141   : > { %v684_v60 = vmax.f32 %v612_v16, 0.0  ;;  %v640_v25 = vadd.f32 %v6637_v45, %v564_v35 }
 0x143   : > { %v7151_v6 = vmul.f32 %v887_v38, %v684_v60  ;;  %v712_v32 = vmax.f32 %v640_v25, 0.0 }
 0x144   : > { %3084 = vmatpush.bf16.msrb.mxu0 %v6644_v51  ;;  %v529_v51 = vmul.f32 %v6624_v39, %v453_v21  ;;  %v1979_v21 = vrot.slane %v7078_v2, 1 }
 0x145   : > { %v1552_v43 = vpack.c.bf16 %v7151_v6, %v7151_v6 }
 0x146   : > { %1126 = vperm.xlu2 %6252, %v804_v30   ;;  %v605_v23 = vadd.f32 %v6637_v45, %v529_v51 }
 0x148   : > { %1706 = vrot.lane.b32.xlu0 %v1550_v49, %s6302_s12  ;;  %v897_v3 = vpop.permute.xlu2 %896  ;;  %3085 = vmatpush.bf16.msrb.mxu0 %v6661_v1  ;;  %v614_v1 = vadd.f32 %v6637_v45, %v538_v19  ;;  %v677_v30 = vmax.f32 %v605_v23, 0.0  ;;  %v490_v19 = vld [vmem:[#allocation2 + $0x160] sm:$0xff] }
 0x149   : > { %v566_v25 = vmul.f32 %v6624_v39, %v490_v19 }
 0x14c   : > { %3086 = vmatpush.bf16.msrb.mxu0 %v6677_v18  ;;  %v686_v18 = vmax.f32 %v614_v1, 0.0 }
 0x14e   : > { %956 = vperm.xlu2 %6252, %v770_v22   ;;  %v7179_v16 = vmul.f32 %v897_v3, %v686_v18  ;;  %v7187_v3 = vmul.f32 %v6902_v7, %v712_v32 }
 0x150   : > { %911 = vperm.xlu0 %6250, %v761_v48   ;;  %v7148_v33 = vpop.permute.xlu2 %1076  ;;  %v639_v48 = vadd.f32 %v6637_v45, %v563_v9  ;;  %v1554_v35 = vpack.c.bf16 %v7179_v16, %v7179_v16 }
 0x152   : > { %v711_v1 = vmax.f32 %v639_v48, 0.0 }
 0x156   : > { %1136 = vperm.xlu2 %6252, %v806_v47   ;;  %v1254_v47 = vrot.slane %v7078_v2, 7 }
 0x158   : > { %1710 = vrot.lane.b32.xlu0 %v1552_v43, %s6302_s12  ;;  %v7162_v38 = vpop.permute.xlu2 %906  ;;  %v1683_v12 = vpop.permute.xlu0 %1682  ;;  %v540_v43 = vmul.f32 %v6624_v39, %v464_v54 }
 0x159   : > { %1899 = vst.msk [vmem:[#allocation3 + $0x20] sm:$0xf] %vm1898_vm8, %v1683_v12 }
 0x15e   : > { %1141 = vperm.xlu2 %6252, %v807_v50   ;;  %v531_v50 = vmul.f32 %v6624_v39, %v455_v13  ;;  %v489_v39 = vld [vmem:[#allocation2 + $0x158] sm:$0xff]  ;;  %v1288_v13 = vrot.slane %v7187_v3, 7 }
 0x160   : > { %921 = vperm.xlu0 %6250, %v763_v52   ;;  %v7177_v5 = vpop.permute.xlu2 %1086  ;;  %v5144_v32 = vld [vmem:[#allocation3 + $0x20] sm:$0xf]  ;;  %v607_v19 = vadd.f32 %v6637_v45, %v531_v50 }
 0x161   : > { %v1685_v49 = vpop.permute.xlu1 %1684  ;;  %v7235_v50 = vld [vmem:[%s6370_s30] ss:$0 sm:$0xff] }
 0x162   : > { %1900 = vst.msk [vmem:[#allocation3 + $0x28] sm:$0xf] %vm1898_vm8, %v1685_v49  ;;  %v852_v22 = vpop.permute.xlu0 %851 }
 0x163   : > { %v1181_v60 = vmul.f32 %v852_v22, %v677_v30 }
 0x165   : > { %v1253_v44 = vrot.slane %v1181_v60, 7  ;;  %v1978_v51 = vrot.slane %v1181_v60, 1  ;;  %v1545_v12 = vpack.c.bf16 %v1181_v60, %v1181_v60 }
 0x167   : > { %v2107_v23 = vsel %vm2043_vm5, %v1978_v51, %v1979_v21  ;;  %v2108_v4 = vsel %vm2043_vm5, %v1977_v20, %v1978_v51  ;;  %1696 = vrot.lane.b32.xlu1 %v1545_v12, %s6302_s12  ;;  %v1384_v7 = vsel %vm1320_vm6, %v1253_v44, %v1254_v47  ;;  %v1385_v52 = vsel %vm1320_vm6, %v1252_v17, %v1253_v44  ;;  %v7222_v44 = vld [vmem:[%s6380_s11] ss:$0 sm:$0xff] }
 0x168   : > { %v2122_v18 = vpack.c.bf16 %v2108_v4, %v2108_v4  ;;  %v2123_v9 = vpack.c.bf16 %v2107_v23, %v2107_v23  ;;  %1714 = vrot.lane.b32.xlu0 %v1554_v35, %s6302_s12  ;;  %v7211_v30 = vpop.permute.xlu2 %916  ;;  %v616_v20 = vadd.f32 %v6637_v45, %v540_v43  ;;  %v1401_v22 = vpack.c.bf16 %v1384_v7, %v1384_v7  ;;  %v765_v45 = vld [vmem:[%s9340_s1 + $0xb8] sm:$0xff] }
 0x169   : > { %v1022_v49 = vpop.permute.xlu1 %1021  ;;  %v6018_v54 = vld [vmem:[#allocation3 + $0x24] sm:$0xf0]  ;;  %v1400_v60 = vpack.c.bf16 %v1385_v52, %v1385_v52  ;;  %v2013_v43 = vrot.slane %v7187_v3, 1  ;;  %v642_v51 = vadd.f32 %v7222_v44, %v566_v25  ;;  %v565_v4 = vmul.f32 %v7235_v50, %v489_v39 }
 0x16a   : > { %2194 = vst.msk [vmem:[#allocation3 + $0x54] sm:$0xf] %vm1465_vm4, %v2122_v18  ;;  %v7215_v34 = vmul.f32 %v1022_v49, %v711_v1  ;;  %v1687_v17 = vpop.permute.xlu0 %1686  ;;  %v5145_v48 = vor.u32 %v6018_v54, %v5144_v32  ;;  %v789_v1 = vld [vmem:[%s9340_s1 + $0x178] sm:$0xff]  ;;  %v688_v23 = vmax.f32 %v616_v20, 0.0  ;;  %v679_v49 = vmax.f32 %v607_v19, 0.0 }
 0x16b   : > { %2195 = vst.msk [vmem:[#allocation3 + $0x5c] sm:$0xf] %vm1465_vm4, %v2123_v9  ;;  %v714_v32 = vmax.f32 %v642_v51, 0.0  ;;  %v641_v39 = vadd.f32 %v7222_v44, %v565_v4  ;;  %v457_v51 = vld [vmem:[#allocation2 + $0x58] sm:$0xff]  ;;  %v492_v4 = vld [vmem:[#allocation2 + $0x170] sm:$0xff] }
 0x16c   : > { %v1287_v12 = vrot.slane %v7215_v34, 7  ;;  %v2012_v35 = vrot.slane %v7215_v34, 1  ;;  %1901 = vst.msk [vmem:[#allocation3 + $0x30] sm:$0xf] %vm1898_vm8, %v1687_v17  ;;  %2898 = vmatmul.bf16.vlgmr.msra.gmra.mxu0 %v5145_v48  ;;  %3382 = vmatmul.bf16.gmra.mxu2 %v5145_v48 }
 0x16d   : > { %1474 = vst.msk [vmem:[#allocation3 + $0x60] sm:$0xf] %vm1465_vm4, %v1401_v22 }
 0x16e   : > { %v2073_v7 = vsel %vm2043_vm5, %v2012_v35, %v2013_v43  ;;  %v2074_v52 = vsel %vm2043_vm5, %v2011_v63, %v2012_v35  ;;  %1473 = vst.msk [vmem:[#allocation3 + $0x58] sm:$0xf] %vm1465_vm4, %v1400_v60  ;;  %v1351_v25 = vsel %vm1320_vm6, %v1286_v14, %v1287_v12  ;;  %v1350_v18 = vsel %vm1320_vm6, %v1287_v12, %v1288_v13  ;;  %v6196_v60 = vld [vmem:[%s6385_s14 + $0x118] sm:$0xff]  ;;  %v466_v12 = vld [vmem:[#allocation2 + $0xa0] sm:$0xff] }
 0x16f   : > { %v2156_v9 = vpack.c.bf16 %v2074_v52, %v2074_v52  ;;  %v2157_v20 = vpack.c.bf16 %v2073_v7, %v2073_v7  ;;  %1051 = vperm.xlu1 %6251, %v789_v1   ;;  %v1434_v54 = vpack.c.bf16 %v1351_v25, %v1351_v25  ;;  %v1435_v17 = vpack.c.bf16 %v1350_v18, %v1350_v18 }
 0x170   : > { %931 = vperm.xlu0 %6250, %v765_v45   ;;  %v7256_v63 = vpop.permute.xlu2 %1096  ;;  %v7260_v14 = vmul.f32 %v7162_v38, %v688_v23  ;;  %v7267_v35 = vmul.f32 %v7015_v31, %v714_v32  ;;  %v1256_v1 = vrot.slane %v7104_v36, 7  ;;  %4536 = vmatpush.bf16.msrb.mxu3 %v6196_v60  ;;  %v1981_v38 = vrot.slane %v7104_v36, 1 }
 0x171   : > { %2228 = vst.msk [vmem:[#allocation3 + $0x164] sm:$0xf] %vm1465_vm4, %v2156_v9  ;;  %v1689_v22 = vpop.permute.xlu1 %1688  ;;  %v542_v52 = vmul.f32 %v7235_v50, %v466_v12  ;;  %v713_v31 = vmax.f32 %v641_v39, 0.0  ;;  %v533_v18 = vmul.f32 %v7235_v50, %v457_v51  ;;  %v491_v12 = vld [vmem:[#allocation2 + $0x168] sm:$0xff] }
 0x172   : > { %2229 = vst.msk [vmem:[#allocation3 + $0x16c] sm:$0xf] %vm1465_vm4, %v2157_v20  ;;  %v862_v48 = vpop.permute.xlu0 %861  ;;  %v1556_v25 = vpack.c.bf16 %v7260_v14, %v7260_v14 }
 0x173   : > { %1902 = vst.msk [vmem:[#allocation3 + $0x38] sm:$0xf] %vm1898_vm8, %v1689_v22  ;;  %v1183_v19 = vmul.f32 %v862_v48, %v679_v49  ;;  %v618_v51 = vadd.f32 %v7222_v44, %v542_v52 }
 0x174   : > { %1507 = vst.msk [vmem:[#allocation3 + $0x168] sm:$0xf] %vm1465_vm4, %v1434_v54 }
 0x175   : > { %v1255_v23 = vrot.slane %v1183_v19, 7  ;;  %v1980_v45 = vrot.slane %v1183_v19, 1  ;;  %v1547_v7 = vpack.c.bf16 %v1183_v19, %v1183_v19  ;;  %1508 = vst.msk [vmem:[#allocation3 + $0x170] sm:$0xf] %vm1465_vm4, %v1435_v17 }
 0x177   : > { %v2105_v9 = vsel %vm2043_vm5, %v1980_v45, %v1981_v38  ;;  %v2106_v20 = vsel %vm2043_vm5, %v1979_v21, %v1980_v45  ;;  %1700 = vrot.lane.b32.xlu1 %v1547_v7, %s6302_s12  ;;  %v1382_v49 = vsel %vm1320_vm6, %v1255_v23, %v1256_v1  ;;  %v1383_v32 = vsel %vm1320_vm6, %v1254_v47, %v1255_v23  ;;  %v5152_v45 = vld [vmem:[#allocation3 + $0x30] sm:$0xf] }
 0x178   : > { %v2124_v54 = vpack.c.bf16 %v2106_v20, %v2106_v20  ;;  %v2125_v22 = vpack.c.bf16 %v2105_v9, %v2105_v9  ;;  %1718 = vrot.lane.b32.xlu0 %v1556_v25, %s6302_s12  ;;  %v7295_v17 = vpop.permute.xlu2 %926  ;;  %v6057_v48 = vld [vmem:[#allocation3 + $0x164] sm:$0xf]  ;;  %v568_v21 = vmul.f32 %v7235_v50, %v492_v4  ;;  %v1403_v19 = vpack.c.bf16 %v1382_v49, %v1382_v49 }
 0x179   : > { %v1032_v39 = vpop.permute.xlu1 %1031  ;;  %v5306_v60 = vld [vmem:[#allocation3 + $0x168] sm:$0xf0]  ;;  %v1402_v25 = vpack.c.bf16 %v1383_v32, %v1383_v32  ;;  %v1290_v9 = vrot.slane %v7267_v35, 7  ;;  %v609_v20 = vadd.f32 %v7222_v44, %v533_v18  ;;  %v2015_v49 = vrot.slane %v7267_v35, 1 }
 0x17a   : > { %2196 = vst.msk [vmem:[#allocation3 + $0x64] sm:$0xf] %vm1465_vm4, %v2124_v54  ;;  %v7300_v2 = vmul.f32 %v1032_v39, %v713_v31  ;;  %v1691_v47 = vpop.permute.xlu0 %1690  ;;  %v5309_v23 = vor.u32 %v6057_v48, %v5306_v60  ;;  %v6020_v7 = vld [vmem:[#allocation3 + $0x34] sm:$0xf0]  ;;  %v791_v32 = vld [vmem:[%s9340_s1 + $0x188] sm:$0xff]  ;;  %v644_v54 = vadd.f32 %v7222_v44, %v568_v21  ;;  %v690_v48 = vmax.f32 %v618_v51, 0.0 }
 0x17b   : > { %2197 = vst.msk [vmem:[#allocation3 + $0x6c] sm:$0xf] %vm1465_vm4, %v2125_v22  ;;  %v5153_v4 = vor.u32 %v6020_v7, %v5152_v45  ;;  %v767_v18 = vld [vmem:[%s9340_s1 + $0xc8] sm:$0xff]  ;;  %v567_v22 = vmul.f32 %v7235_v50, %v491_v12  ;;  %v681_v51 = vmax.f32 %v609_v20, 0.0 }
 0x17c   : > { %v1289_v52 = vrot.slane %v7300_v2, 7  ;;  %v2014_v31 = vrot.slane %v7300_v2, 1  ;;  %1903 = vst.msk [vmem:[#allocation3 + $0x40] sm:$0xf] %vm1898_vm8, %v1691_v47  ;;  %5498 = vmatmul.msk.bf16.gmra.mxu1 %vm2781_vm7, %v5309_v23  ;;  %5600 = vmatmul.msk.bf16.gmra.mxu3 %vm2781_vm7, %v5309_v23  ;;  %v716_v7 = vmax.f32 %v644_v54, 0.0 }
 0x17d   : > { %2903 = vmatmul.bf16.gmra.mxu0 %v5153_v4  ;;  %3387 = vmatmul.bf16.gmra.mxu2 %v5153_v4  ;;  %1476 = vst.msk [vmem:[#allocation3 + $0x70] sm:$0xf] %vm1465_vm4, %v1403_v19  ;;  %v468_v4 = vld [vmem:[#allocation2 + $0xb0] sm:$0xff] }
 0x17e   : > { %v2071_v39 = vsel %vm2043_vm5, %v2014_v31, %v2015_v49  ;;  %v2072_v21 = vsel %vm2043_vm5, %v2013_v43, %v2014_v31  ;;  %1475 = vst.msk [vmem:[#allocation3 + $0x68] sm:$0xf] %vm1465_vm4, %v1402_v25  ;;  %v1348_v60 = vsel %vm1320_vm6, %v1289_v52, %v1290_v9  ;;  %v1349_v47 = vsel %vm1320_vm6, %v1288_v13, %v1289_v52  ;;  %v459_v52 = vld [vmem:[#allocation2 + $0x68] sm:$0xff] }
 0x17f   : > { %v2158_v12 = vpack.c.bf16 %v2072_v21, %v2072_v21  ;;  %v2159_v19 = vpack.c.bf16 %v2071_v39, %v2071_v39  ;;  %1061 = vperm.xlu1 %6251, %v791_v32   ;;  %v1437_v55 = vpack.c.bf16 %v1348_v60, %v1348_v60  ;;  %v1436_v45 = vpack.c.bf16 %v1349_v47, %v1349_v47 }
 0x180   : > { %941 = vperm.xlu0 %6250, %v767_v18   ;;  %v7338_v23 = vpop.permute.xlu2 %1106  ;;  %v7342_v25 = vmul.f32 %v7211_v30, %v690_v48  ;;  %v643_v31 = vadd.f32 %v7222_v44, %v567_v22  ;;  %v1258_v32 = vrot.slane %v7129_v8, 7  ;;  %v1983_v18 = vrot.slane %v7129_v8, 1 }
 0x181   : > { %2230 = vst.msk [vmem:[#allocation3 + $0x174] sm:$0xf] %vm1465_vm4, %v2158_v12  ;;  %v1693_v43 = vpop.permute.xlu1 %1692  ;;  %v544_v54 = vmul.f32 %v7235_v50, %v468_v4  ;;  %v7353_v21 = vmul.f32 %v7074_v10, %v716_v7  ;;  %v535_v12 = vmul.f32 %v7235_v50, %v459_v52 }
 0x182   : > { %2231 = vst.msk [vmem:[#allocation3 + $0x17c] sm:$0xf] %vm1465_vm4, %v2159_v19  ;;  %v872_v20 = vpop.permute.xlu0 %871  ;;  %v1558_v22 = vpack.c.bf16 %v7342_v25, %v7342_v25  ;;  %v715_v60 = vmax.f32 %v643_v31, 0.0 }
 0x183   : > { %1904 = vst.msk [vmem:[#allocation3 + $0x48] sm:$0xf] %vm1898_vm8, %v1693_v43  ;;  %v1185_v13 = vmul.f32 %v872_v20, %v681_v51 }
 0x184   : > { %1510 = vst.msk [vmem:[#allocation3 + $0x180] sm:$0xf] %vm1465_vm4, %v1437_v55 }
 0x185   : > { %v1257_v30 = vrot.slane %v1185_v13, 7  ;;  %v1982_v48 = vrot.slane %v1185_v13, 1  ;;  %v1549_v39 = vpack.c.bf16 %v1185_v13, %v1185_v13  ;;  %1509 = vst.msk [vmem:[#allocation3 + $0x178] sm:$0xf] %vm1465_vm4, %v1436_v45 }
 0x187   : > { %v2103_v19 = vsel %vm2043_vm5, %v1982_v48, %v1983_v18  ;;  %v2104_v51 = vsel %vm2043_vm5, %v1981_v38, %v1982_v48  ;;  %1704 = vrot.lane.b32.xlu1 %v1549_v39, %s6302_s12  ;;  %v1380_v10 = vsel %vm1320_vm6, %v1257_v30, %v1258_v32  ;;  %v1381_v47 = vsel %vm1320_vm6, %v1256_v1, %v1257_v30  ;;  %v5160_v48 = vld [vmem:[#allocation3 + $0x40] sm:$0xf] }
 0x188   : > { %v2126_v55 = vpack.c.bf16 %v2104_v51, %v2104_v51  ;;  %v2127_v43 = vpack.c.bf16 %v2103_v19, %v2103_v19  ;;  %1722 = vrot.lane.b32.xlu0 %v1558_v22, %s6302_s12  ;;  %v7376_v45 = vpop.permute.xlu2 %936  ;;  %v6059_v7 = vld [vmem:[#allocation3 + $0x174] sm:$0xf]  ;;  %v620_v38 = vadd.f32 %v7222_v44, %v544_v54  ;;  %v1405_v31 = vpack.c.bf16 %v1380_v10, %v1380_v10 }
 0x189   : > { %v1042_v4 = vpop.permute.xlu1 %1041  ;;  %v5314_v20 = vld [vmem:[#allocation3 + $0x178] sm:$0xf0]  ;;  %v611_v30 = vadd.f32 %v7222_v44, %v535_v12  ;;  %v1404_v39 = vpack.c.bf16 %v1381_v47, %v1381_v47  ;;  %v1292_v22 = vrot.slane %v7353_v21, 7  ;;  %v2017_v54 = vrot.slane %v7353_v21, 1 }
 0x18a   : > { %2198 = vst.msk [vmem:[#allocation3 + $0x74] sm:$0xf] %vm1465_vm4, %v2126_v55  ;;  %v7380_v13 = vmul.f32 %v1042_v4, %v715_v60  ;;  %v1695_v36 = vpop.permute.xlu0 %1694  ;;  %v5317_v52 = vor.u32 %v6059_v7, %v5314_v20  ;;  %v6022_v1 = vld [vmem:[#allocation3 + $0x44] sm:$0xf0]  ;;  %v793_v60 = vld [vmem:[%s9340_s1 + $0x198] sm:$0xff]  ;;  %v692_v12 = vmax.f32 %v620_v38, 0.0 }
 0x18b   : > { %2199 = vst.msk [vmem:[#allocation3 + $0x7c] sm:$0xf] %vm1465_vm4, %v2127_v43  ;;  %v5161_v19 = vor.u32 %v6022_v1, %v5160_v48  ;;  %v769_v47 = vld [vmem:[%s9340_s1 + $0xd8] sm:$0xff]  ;;  %v683_v7 = vmax.f32 %v611_v30, 0.0  ;;  %v470_v30 = vld [vmem:[#allocation2 + $0xc0] sm:$0xff] }
 0x18c   : > { %v1291_v51 = vrot.slane %v7380_v13, 7  ;;  %v2016_v10 = vrot.slane %v7380_v13, 1  ;;  %1905 = vst.msk [vmem:[#allocation3 + $0x50] sm:$0xf] %vm1898_vm8, %v1695_v36  ;;  %5499 = vmatmul.msk.bf16.gmra.mxu1 %vm2781_vm7, %v5317_v52  ;;  %5601 = vmatmul.msk.bf16.gmra.mxu3 %vm2781_vm7, %v5317_v52  ;;  %v7419_v48 = vmul.f32 %v7295_v17, %v692_v12  ;;  %v546_v17 = vmul.f32 %v7235_v50, %v470_v30 }
 0x18d   : > { %2908 = vmatmul.bf16.gmra.mxu0 %v5161_v19  ;;  %3392 = vmatmul.bf16.gmra.mxu2 %v5161_v19  ;;  %1478 = vst.msk [vmem:[#allocation3 + $0x80] sm:$0xf] %vm1465_vm4, %v1405_v31  ;;  %v461_v19 = vld [vmem:[#allocation2 + $0x78] sm:$0xff] }
 0x18e   : > { %v2069_v55 = vsel %vm2043_vm5, %v2016_v10, %v2017_v54  ;;  %v2070_v43 = vsel %vm2043_vm5, %v2015_v49, %v2016_v10  ;;  %1477 = vst.msk [vmem:[#allocation3 + $0x78] sm:$0xf] %vm1465_vm4, %v1404_v39  ;;  %v1346_v38 = vsel %vm1320_vm6, %v1291_v51, %v1292_v22  ;;  %v1347_v36 = vsel %vm1320_vm6, %v1290_v9, %v1291_v51 }
 0x18f   : > { %v2160_v4 = vpack.c.bf16 %v2070_v43, %v2070_v43  ;;  %v2161_v20 = vpack.c.bf16 %v2069_v55, %v2069_v55  ;;  %1071 = vperm.xlu1 %6251, %v793_v60   ;;  %v1439_v31 = vpack.c.bf16 %v1346_v38, %v1346_v38  ;;  %v1438_v49 = vpack.c.bf16 %v1347_v36, %v1347_v36 }
 0x190   : > { %951 = vperm.xlu0 %6250, %v769_v47   ;;  %v7415_v52 = vpop.permute.xlu2 %1116  ;;  %v1260_v10 = vrot.slane %v7151_v6, 7  ;;  %v1985_v9 = vrot.slane %v7151_v6, 1  ;;  %v1560_v12 = vpack.c.bf16 %v7419_v48, %v7419_v48  ;;  %v537_v55 = vmul.f32 %v7235_v50, %v461_v19  ;;  %v795_v19 = vld [vmem:[%s9340_s1 + $0x1a8] sm:$0xff] }
 0x191   : > { %2232 = vst.msk [vmem:[#allocation3 + $0x184] sm:$0xf] %vm1465_vm4, %v2160_v4 }
 0x192   : > { %2233 = vst.msk [vmem:[#allocation3 + $0x18c] sm:$0xf] %vm1465_vm4, %v2161_v20  ;;  %v882_v1 = vpop.permute.xlu0 %881 }
 0x193   : > { %v1187_v39 = vmul.f32 %v882_v1, %v683_v7  ;;  %1512 = vst.msk [vmem:[#allocation3 + $0x190] sm:$0xf] %vm1465_vm4, %v1439_v31 }
 0x194   : > { %1511 = vst.msk [vmem:[#allocation3 + $0x188] sm:$0xf] %vm1465_vm4, %v1438_v49 }
 0x195   : > { %v1259_v51 = vrot.slane %v1187_v39, 7  ;;  %v1984_v60 = vrot.slane %v1187_v39, 1  ;;  %v1551_v47 = vpack.c.bf16 %v1187_v39, %v1187_v39 }
 0x197   : > { %v2101_v43 = vsel %vm2043_vm5, %v1984_v60, %v1985_v9  ;;  %v2102_v7 = vsel %vm2043_vm5, %v1983_v18, %v1984_v60  ;;  %1708 = vrot.lane.b32.xlu1 %v1551_v47, %s6302_s12  ;;  %v1378_v6 = vsel %vm1320_vm6, %v1259_v51, %v1260_v10  ;;  %v1379_v38 = vsel %vm1320_vm6, %v1258_v32, %v1259_v51  ;;  %v771_v51 = vld [vmem:[%s9340_s1 + $0xe8] sm:$0xff] }
 0x198   : > { %v2128_v4 = vpack.c.bf16 %v2102_v7, %v2102_v7  ;;  %v2129_v20 = vpack.c.bf16 %v2101_v43, %v2101_v43  ;;  %1726 = vrot.lane.b32.xlu0 %v1560_v12, %s6302_s12  ;;  %v7444_v31 = vpop.permute.xlu2 %946  ;;  %v6061_v36 = vld [vmem:[#allocation3 + $0x184] sm:$0xf]  ;;  %v1407_v1 = vpack.c.bf16 %v1378_v6, %v1378_v6  ;;  %v622_v18 = vadd.f32 %v7222_v44, %v546_v17  ;;  %v6191_v12 = vld [vmem:[%s6385_s14 + $0xf0] sm:$0xff]  ;;  %v463_v6 = vld [vmem:[#allocation2 + $0x88] sm:$0xff] }
 0x199   : > { %v5322_v49 = vld [vmem:[#allocation3 + $0x188] sm:$0xf0]  ;;  %v1406_v8 = vpack.c.bf16 %v1379_v38, %v1379_v38  ;;  %v613_v32 = vadd.f32 %v7222_v44, %v537_v55  ;;  %4344 = vmatpush.bf16.msrb.mxu1 %v6191_v12  ;;  %v1262_v38 = vrot.slane %v7179_v16, 7 }
 0x19a   : > { %2200 = vst.msk [vmem:[#allocation3 + $0x84] sm:$0xf] %vm1465_vm4, %v2128_v4  ;;  %v1699_v30 = vpop.permute.xlu0 %1698  ;;  %v5325_v39 = vor.u32 %v6061_v36, %v5322_v49  ;;  %v694_v60 = vmax.f32 %v622_v18, 0.0  ;;  %v1987_v4 = vrot.slane %v7179_v16, 1  ;;  %v539_v18 = vmul.f32 %v7235_v50, %v463_v6  ;;  %v511_v12 = vld [vmem:[#allocation2 + $0x208] sm:$0xff]  ;;  %v808_v6 = vld [vmem:[%s9340_s1 + $0x210] sm:$0xff] }
 0x19b   : > { %2201 = vst.msk [vmem:[#allocation3 + $0x8c] sm:$0xf] %vm1465_vm4, %v2129_v20  ;;  %v685_v47 = vmax.f32 %v613_v32, 0.0 }
 0x19c   : > { %1907 = vst.msk [vmem:[#allocation3 + $0x60] sm:$0xf] %vm1898_vm8, %v1699_v30  ;;  %5500 = vmatmul.msk.bf16.gmra.mxu1 %vm2781_vm7, %v5325_v39  ;;  %5602 = vmatmul.msk.bf16.gmra.mxu3 %vm2781_vm7, %v5325_v39  ;;  %v7465_v55 = vmul.f32 %v7376_v45, %v694_v60  ;;  %v510_v39 = vld [vmem:[#allocation2 + $0x200] sm:$0xff] }
 0x19d   : > { %1480 = vst.msk [vmem:[#allocation3 + $0x90] sm:$0xf] %vm1465_vm4, %v1407_v1 }
 0x19e   : > { %1479 = vst.msk [vmem:[#allocation3 + $0x88] sm:$0xf] %vm1465_vm4, %v1406_v8  ;;  %v1562_v1 = vpack.c.bf16 %v7465_v55, %v7465_v55 }
 0x19f   : > { %1081 = vperm.xlu1 %6251, %v795_v19  }
 0x1a0   : > { %961 = vperm.xlu0 %6250, %v771_v51   ;;  %v7461_v17 = vpop.permute.xlu2 %1126 }
 0x1a2   : > { %v892_v43 = vpop.permute.xlu0 %891 }
 0x1a3   : > { %v1189_v7 = vmul.f32 %v892_v43, %v685_v47 }
 0x1a5   : > { %v1261_v20 = vrot.slane %v1189_v7, 7  ;;  %v1986_v36 = vrot.slane %v1189_v7, 1  ;;  %v1553_v49 = vpack.c.bf16 %v1189_v7, %v1189_v7  ;;  %v615_v7 = vadd.f32 %v7222_v44, %v539_v18 }
 0x1a7   : > { %v2099_v45 = vsel %vm2043_vm5, %v1986_v36, %v1987_v4  ;;  %v2100_v30 = vsel %vm2043_vm5, %v1985_v9, %v1986_v36  ;;  %1712 = vrot.lane.b32.xlu1 %v1553_v49, %s6302_s12  ;;  %v1376_v16 = vsel %vm1320_vm6, %v1261_v20, %v1262_v38  ;;  %v1377_v8 = vsel %vm1320_vm6, %v1260_v10, %v1261_v20  ;;  %v797_v10 = vld [vmem:[%s9340_s1 + $0x1b8] sm:$0xff] }
 0x1a8   : > { %v2130_v32 = vpack.c.bf16 %v2100_v30, %v2100_v30  ;;  %v2131_v19 = vpack.c.bf16 %v2099_v45, %v2099_v45  ;;  %1730 = vrot.lane.b32.xlu0 %v1562_v1, %s6302_s12  ;;  %v7482_v51 = vpop.permute.xlu2 %956  ;;  %v1409_v60 = vpack.c.bf16 %v1376_v16, %v1376_v16  ;;  %v586_v9 = vmul.f32 %v7235_v50, %v510_v39  ;;  %v465_v16 = vld [vmem:[#allocation2 + $0x98] sm:$0xff] }
 0x1a9   : > { %v1408_v43 = vpack.c.bf16 %v1377_v8, %v1377_v8  ;;  %v587_v20 = vmul.f32 %v7235_v50, %v511_v12  ;;  %v687_v49 = vmax.f32 %v615_v7, 0.0  ;;  %v1264_v8 = vrot.slane %v7260_v14, 7 }
 0x1aa   : > { %2202 = vst.msk [vmem:[#allocation3 + $0x94] sm:$0xf] %vm1465_vm4, %v2130_v32  ;;  %v1703_v47 = vpop.permute.xlu0 %1702  ;;  %v662_v36 = vadd.f32 %v7222_v44, %v586_v9  ;;  %v1989_v32 = vrot.slane %v7260_v14, 1  ;;  %v809_v9 = vld [vmem:[%s9340_s1 + $0x218] sm:$0xff]  ;;  %v541_v7 = vmul.f32 %v7235_v50, %v465_v16 }
 0x1ab   : > { %2203 = vst.msk [vmem:[#allocation3 + $0x9c] sm:$0xf] %vm1465_vm4, %v2131_v19  ;;  %v663_v18 = vadd.f32 %v7222_v44, %v587_v20 }
 0x1ac   : > { %1909 = vst.msk [vmem:[#allocation3 + $0x70] sm:$0xf] %vm1898_vm8, %v1703_v47  ;;  %v734_v30 = vmax.f32 %v662_v36, 0.0 }
 0x1ad   : > { %1482 = vst.msk [vmem:[#allocation3 + $0xa0] sm:$0xf] %vm1465_vm4, %v1409_v60  ;;  %v735_v12 = vmax.f32 %v663_v18, 0.0 }
 0x1ae   : > { %1481 = vst.msk [vmem:[#allocation3 + $0x98] sm:$0xf] %vm1465_vm4, %v1408_v43 }
 0x1af   : > { %1091 = vperm.xlu1 %6251, %v797_v10  }
 0x1b0   : > { %1146 = vperm.xlu0 %6250, %v808_v6   ;;  %v1137_v1 = vpop.permute.xlu2 %1136 }
 0x1b1   : > { %v7505_v43 = vmul.f32 %v1137_v1, %v734_v30 }
 0x1b2   : > { %v902_v45 = vpop.permute.xlu0 %901 }
 0x1b3   : > { %v1191_v39 = vmul.f32 %v902_v45, %v687_v49 }
 0x1b5   : > { %v1263_v19 = vrot.slane %v1191_v39, 7  ;;  %v1988_v60 = vrot.slane %v1191_v39, 1  ;;  %v1555_v47 = vpack.c.bf16 %v1191_v39, %v1191_v39  ;;  %v9348_v39 = vrot.slane %v7505_v43, 1 }
 0x1b7   : > { %v2097_v10 = vsel %vm2043_vm5, %v1988_v60, %v1989_v32  ;;  %v2098_v6 = vsel %vm2043_vm5, %v1987_v4, %v1988_v60  ;;  %1716 = vrot.lane.b32.xlu1 %v1555_v47, %s6302_s12  ;;  %v1374_v14 = vsel %vm1320_vm6, %v1263_v19, %v1264_v8  ;;  %v1375_v20 = vsel %vm1320_vm6, %v1262_v38, %v1263_v19  ;;  %v799_v47 = vld [vmem:[%s9340_s1 + $0x1c8] sm:$0xff] }
 0x1b8   : > { %v2132_v36 = vpack.c.bf16 %v2098_v6, %v2098_v6  ;;  %v2133_v49 = vpack.c.bf16 %v2097_v10, %v2097_v10  ;;  %1151 = vperm.xlu0 %6250, %v809_v9   ;;  %v1142_v1 = vpop.permute.xlu2 %1141  ;;  %v1411_v45 = vpack.c.bf16 %v1374_v14, %v1374_v14  ;;  %v1410_v4 = vpack.c.bf16 %v1375_v20, %v1375_v20 }
 0x1b9   : > { %v7517_v18 = vmul.f32 %v1142_v1, %v735_v12  ;;  %v617_v19 = vadd.f32 %v7222_v44, %v541_v7  ;;  %v9347_v60 = vrot.slane %v7505_v43, 7  ;;  %v6195_v12 = vld [vmem:[%s6385_s14 + $0x110] sm:$0xff]  ;;  %v1266_v1 = vrot.slane %v7342_v25, 7 }
 0x1ba   : > { %2204 = vst.msk [vmem:[#allocation3 + $0xa4] sm:$0xf] %vm1465_vm4, %v2132_v36  ;;  %v1707_v30 = vpop.permute.xlu0 %1706  ;;  %4537 = vmatpush.bf16.msrb.mxu3 %v6195_v12 }
 0x1bb   : > { %2205 = vst.msk [vmem:[#allocation3 + $0xac] sm:$0xf] %vm1465_vm4, %v2133_v49  ;;  %v9349_v16 = vrot.slane %v7517_v18, 7  ;;  %v9350_v38 = vrot.slane %v7517_v18, 1  ;;  %v689_v6 = vmax.f32 %v617_v19, 0.0  ;;  %v467_v49 = vld [vmem:[#allocation2 + $0xa8] sm:$0xff] }
 0x1bc   : > { %1911 = vst.msk [vmem:[#allocation3 + $0x80] sm:$0xf] %vm1898_vm8, %v1707_v30  ;;  %v543_v62 = vmul.f32 %v7235_v50, %v467_v49  ;;  %v6190_v49 = vld [vmem:[%s6385_s14 + $0xe8] sm:$0xff] }
 0x1bd   : > { %v2050_v9 = vsel %vm2043_vm5, %v9348_v39, %v9350_v38  ;;  %1484 = vst.msk [vmem:[#allocation3 + $0xb0] sm:$0xf] %vm1465_vm4, %v1411_v45  ;;  %v1327_v7 = vsel %vm1320_vm6, %v9347_v60, %v9349_v16  ;;  %v1991_v45 = vrot.slane %v7342_v25, 1  ;;  %4345 = vmatpush.bf16.msrb.mxu1 %v6190_v49  ;;  %v7590_v60 = vpop.f32.mrf.mxu3  ;;  %v471_v16 = vld [vmem:[#allocation2 + $0xc8] sm:$0xff] }
 0x1be   : > { %v2180_v10 = vpack.c.bf16 %v2050_v9, %v2050_v9  ;;  %1483 = vst.msk [vmem:[#allocation3 + $0xa8] sm:$0xf] %vm1465_vm4, %v1410_v4  ;;  %v1458_v14 = vpack.c.bf16 %v1327_v7, %v1327_v7 }
 0x1bf   : > { %1101 = vperm.xlu1 %6251, %v799_v47  }
 0x1c0   : > { %2252 = vst.msk [vmem:[#allocation3 + $0x224] sm:$0xf] %vm1465_vm4, %v2180_v10 }
 0x1c1   : > { %1531 = vst.msk [vmem:[#allocation3 + $0x228] sm:$0xf] %vm1465_vm4, %v1458_v14 }
 0x1c2   : > { %v912_v20 = vpop.permute.xlu0 %911 }
 0x1c3   : > { %v1193_v36 = vmul.f32 %v912_v20, %v689_v6 }
 0x1c5   : > { %v1265_v30 = vrot.slane %v1193_v36, 7  ;;  %v1990_v4 = vrot.slane %v1193_v36, 1  ;;  %v1557_v9 = vpack.c.bf16 %v1193_v36, %v1193_v36  ;;  %v619_v36 = vadd.f32 %v7222_v44, %v543_v62  ;;  %v493_v62 = vld [vmem:[#allocation2 + $0x178] sm:$0xff] }
 0x1c7   : > { %v2095_v19 = vsel %vm2043_vm5, %v1990_v4, %v1991_v45  ;;  %v2096_v47 = vsel %vm2043_vm5, %v1989_v32, %v1990_v4  ;;  %1720 = vrot.lane.b32.xlu1 %v1557_v9, %s6302_s12  ;;  %v1372_v12 = vsel %vm1320_vm6, %v1265_v30, %v1266_v1  ;;  %v1373_v25 = vsel %vm1320_vm6, %v1264_v8, %v1265_v30  ;;  %v801_v32 = vld [vmem:[%s9340_s1 + $0x1d8] sm:$0xff]  ;;  %v494_v8 = vld [vmem:[#allocation2 + $0x180] sm:$0xff] }
 0x1c8   : > { %v2134_v10 = vpack.c.bf16 %v2096_v47, %v2096_v47  ;;  %v2135_v7 = vpack.c.bf16 %v2095_v19, %v2095_v19  ;;  %v1413_v6 = vpack.c.bf16 %v1372_v12, %v1372_v12  ;;  %v1412_v20 = vpack.c.bf16 %v1373_v25, %v1373_v25  ;;  %v469_v12 = vld [vmem:[#allocation2 + $0xb8] sm:$0xff] }
 0x1c9   : > { %v691_v30 = vmax.f32 %v619_v36, 0.0  ;;  %v570_v4 = vmul.f32 %v7235_v50, %v494_v8  ;;  %v1268_v47 = vrot.slane %v7419_v48, 7  ;;  %v1993_v25 = vrot.slane %v7419_v48, 1 }
 0x1ca   : > { %2206 = vst.msk [vmem:[#allocation3 + $0xb4] sm:$0xf] %vm1465_vm4, %v2134_v10  ;;  %v1711_v14 = vpop.permute.xlu0 %1710  ;;  %v545_v49 = vmul.f32 %v7235_v50, %v469_v12 }
 0x1cb   : > { %2207 = vst.msk [vmem:[#allocation3 + $0xbc] sm:$0xf] %vm1465_vm4, %v2135_v7 }
 0x1cc   : > { %1913 = vst.msk [vmem:[#allocation3 + $0x90] sm:$0xf] %vm1898_vm8, %v1711_v14  ;;  %v621_v12 = vadd.f32 %v7222_v44, %v545_v49 }
 0x1cd   : > { %1486 = vst.msk [vmem:[#allocation3 + $0xc0] sm:$0xf] %vm1465_vm4, %v1413_v6  ;;  %v646_v6 = vadd.f32 %v7222_v44, %v570_v4 }
 0x1ce   : > { %1485 = vst.msk [vmem:[#allocation3 + $0xb8] sm:$0xf] %vm1465_vm4, %v1412_v20  ;;  %v569_v20 = vmul.f32 %v7235_v50, %v493_v62 }
 0x1cf   : > { %1111 = vperm.xlu1 %6251, %v801_v32  }
 0x1d2   : > { %v922_v9 = vpop.permute.xlu0 %921 }
 0x1d3   : > { %v1195_v19 = vmul.f32 %v922_v9, %v691_v30 }
 0x1d5   : > { %v1267_v10 = vrot.slane %v1195_v19, 7  ;;  %v1992_v7 = vrot.slane %v1195_v19, 1  ;;  %v1559_v14 = vpack.c.bf16 %v1195_v19, %v1195_v19 }
 0x1d7   : > { %v2093_v36 = vsel %vm2043_vm5, %v1992_v7, %v1993_v25  ;;  %v2094_v32 = vsel %vm2043_vm5, %v1991_v45, %v1992_v7  ;;  %1724 = vrot.lane.b32.xlu1 %v1559_v14, %s6302_s12  ;;  %v1370_v8 = vsel %vm1320_vm6, %v1267_v10, %v1268_v47  ;;  %v1371_v9 = vsel %vm1320_vm6, %v1266_v1, %v1267_v10  ;;  %v803_v1 = vld [vmem:[%s9340_s1 + $0x1e8] sm:$0xff] }
 0x1d8   : > { %v2136_v30 = vpack.c.bf16 %v2094_v32, %v2094_v32  ;;  %v2137_v4 = vpack.c.bf16 %v2093_v36, %v2093_v36  ;;  %v645_v45 = vadd.f32 %v7222_v44, %v569_v20  ;;  %v1415_v7 = vpack.c.bf16 %v1370_v8, %v1370_v8  ;;  %v496_v32 = vld [vmem:[#allocation2 + $0x190] sm:$0xff] }
 0x1d9   : > { %v1697_v19 = vpop.permute.xlu1 %1696  ;;  %v718_v14 = vmax.f32 %v646_v6, 0.0  ;;  %v1414_v39 = vpack.c.bf16 %v1371_v9, %v1371_v9  ;;  %v472_v36 = vld [vmem:[#allocation2 + $0xd0] sm:$0xff]  ;;  %v572_v20 = vmul.f32 %v7235_v50, %v496_v32  ;;  %v693_v8 = vmax.f32 %v621_v12, 0.0 }
 0x1da   : > { %2208 = vst.msk [vmem:[#allocation3 + $0xc4] sm:$0xf] %vm1465_vm4, %v2136_v30  ;;  %v1715_v62 = vpop.permute.xlu0 %1714  ;;  %v717_v10 = vmax.f32 %v645_v45, 0.0  ;;  %v548_v49 = vmul.f32 %v7235_v50, %v472_v36  ;;  %v1270_v36 = vrot.slane %v7465_v55, 7  ;;  %v1995_v12 = vrot.slane %v7465_v55, 1 }
 0x1db   : > { %2209 = vst.msk [vmem:[#allocation3 + $0xcc] sm:$0xf] %vm1465_vm4, %v2137_v4  ;;  %v7601_v6 = vmul.f32 %v7100_v42, %v718_v14  ;;  %v648_v45 = vadd.f32 %v7222_v44, %v572_v20  ;;  %v5168_v14 = vld [vmem:[#allocation3 + $0x50] sm:$0xf] }
 0x1dc   : > { %1906 = vst.msk [vmem:[#allocation3 + $0x58] sm:$0xf] %vm1898_vm8, %v1697_v19  ;;  %v495_v19 = vld [vmem:[#allocation2 + $0x188] sm:$0xff]  ;;  %v624_v42 = vadd.f32 %v7222_v44, %v548_v49 }
 0x1dd   : > { %1915 = vst.msk [vmem:[#allocation3 + $0xa0] sm:$0xf] %vm1898_vm8, %v1715_v62  ;;  %v9353_v62 = vrot.slane %v7601_v6, 1  ;;  %v571_v20 = vmul.f32 %v7235_v50, %v495_v19 }
 0x1de   : > { %1488 = vst.msk [vmem:[#allocation3 + $0xd0] sm:$0xf] %vm1465_vm4, %v1415_v7 }
 0x1df   : > { %1121 = vperm.xlu1 %6251, %v803_v1   ;;  %1487 = vst.msk [vmem:[#allocation3 + $0xc8] sm:$0xf] %vm1465_vm4, %v1414_v39 }
 0x1e1   : > { %v1052_v30 = vpop.permute.xlu1 %1051 }
 0x1e2   : > { %v7606_v4 = vmul.f32 %v1052_v30, %v717_v10  ;;  %v932_v9 = vpop.permute.xlu0 %931  ;;  %v7614_v10 = vpop.f32.mrf.mxu3 }
 0x1e3   : > { %v1197_v7 = vmul.f32 %v932_v9, %v693_v8  ;;  %v6024_v32 = vld [vmem:[#allocation3 + $0x54] sm:$0xf0] }
 0x1e4   : > { %v2018_v39 = vrot.slane %v7606_v4, 1  ;;  %v5169_v1 = vor.u32 %v6024_v32, %v5168_v14  ;;  %v1293_v49 = vrot.slane %v7606_v4, 7  ;;  %v547_v14 = vmul.f32 %v7235_v50, %v471_v16 }
 0x1e5   : > { %v1269_v30 = vrot.slane %v1197_v7, 7  ;;  %v1994_v38 = vrot.slane %v1197_v7, 1  ;;  %v1561_v41 = vpack.c.bf16 %v1197_v7, %v1197_v7 }
 0x1e6   : > { %v2067_v8 = vsel %vm2043_vm5, %v2018_v39, %v9353_v62  ;;  %v2068_v9 = vsel %vm2043_vm5, %v2017_v54, %v2018_v39  ;;  %2913 = vmatmul.bf16.gmra.mxu0 %v5169_v1  ;;  %3397 = vmatmul.bf16.gmra.mxu2 %v5169_v1  ;;  %v9354_v39 = vrot.slane %v7601_v6, 7  ;;  %v623_v48 = vadd.f32 %v7222_v44, %v547_v14 }
 0x1e7   : > { %v2162_v32 = vpack.c.bf16 %v2068_v9, %v2068_v9  ;;  %v2163_v7 = vpack.c.bf16 %v2067_v8, %v2067_v8  ;;  %v2091_v19 = vsel %vm2043_vm5, %v1994_v38, %v1995_v12  ;;  %v2092_v37 = vsel %vm2043_vm5, %v1993_v25, %v1994_v38  ;;  %1728 = vrot.lane.b32.xlu1 %v1561_v41, %s6302_s12  ;;  %v498_v9 = vld [vmem:[#allocation2 + $0x1a0] sm:$0xff] }
 0x1e8   : > { %v2138_v62 = vpack.c.bf16 %v2092_v37, %v2092_v37  ;;  %v2139_v54 = vpack.c.bf16 %v2091_v19, %v2091_v19  ;;  %v1368_v16 = vsel %vm1320_vm6, %v1269_v30, %v1270_v36  ;;  %v1369_v8 = vsel %vm1320_vm6, %v1268_v47, %v1269_v30 }
 0x1e9   : > { %2234 = vst.msk [vmem:[#allocation3 + $0x194] sm:$0xf] %vm1465_vm4, %v2162_v32  ;;  %v1701_v1 = vpop.permute.xlu1 %1700  ;;  %v720_v38 = vmax.f32 %v648_v45, 0.0  ;;  %v647_v41 = vadd.f32 %v7222_v44, %v571_v20  ;;  %v1345_v25 = vsel %vm1320_vm6, %v1292_v22, %v1293_v49  ;;  %v696_v32 = vmax.f32 %v624_v42, 0.0  ;;  %v805_v45 = vld [vmem:[%s9340_s1 + $0x1f8] sm:$0xff]  ;;  %v474_v22 = vld [vmem:[#allocation2 + $0xe0] sm:$0xff] }
 0x1ea   : > { %2235 = vst.msk [vmem:[#allocation3 + $0x19c] sm:$0xf] %vm1465_vm4, %v2163_v7  ;;  %v1719_v37 = vpop.permute.xlu0 %1718  ;;  %v1417_v19 = vpack.c.bf16 %v1368_v16, %v1368_v16  ;;  %v1344_v47 = vsel %vm1320_vm6, %v1293_v49, %v9354_v39  ;;  %v1416_v30 = vpack.c.bf16 %v1369_v8, %v1369_v8  ;;  %v6189_v42 = vld [vmem:[%s6385_s14 + $0xe0] sm:$0xff]  ;;  %v574_v20 = vmul.f32 %v7235_v50, %v498_v9  ;;  %v497_v9 = vld [vmem:[#allocation2 + $0x198] sm:$0xff] }
 0x1eb   : > { %2210 = vst.msk [vmem:[#allocation3 + $0xd4] sm:$0xf] %vm1465_vm4, %v2138_v62  ;;  %v1440_v62 = vpack.c.bf16 %v1345_v25, %v1345_v25  ;;  %v719_v14 = vmax.f32 %v647_v41, 0.0  ;;  %v1441_v7 = vpack.c.bf16 %v1344_v47, %v1344_v47  ;;  %v7667_v49 = vmul.f32 %v7126_v29, %v720_v38  ;;  %4346 = vmatpush.bf16.msrb.mxu1 %v6189_v42 }
 0x1ec   : > { %2211 = vst.msk [vmem:[#allocation3 + $0xdc] sm:$0xf] %vm1465_vm4, %v2139_v54  ;;  %v7669_v54 = vpop.f32.mrf.mxu3  ;;  %v7672_v16 = vmul.f32 %v7444_v31, %v696_v32  ;;  %v695_v8 = vmax.f32 %v623_v48, 0.0  ;;  %v650_v48 = vadd.f32 %v7222_v44, %v574_v20 }
 0x1ed   : > { %1908 = vst.msk [vmem:[#allocation3 + $0x68] sm:$0xf] %vm1898_vm8, %v1701_v1  ;;  %v550_v1 = vmul.f32 %v7235_v50, %v474_v22  ;;  %v9355_v32 = vrot.slane %v7667_v49, 1 }
 0x1ee   : > { %1917 = vst.msk [vmem:[#allocation3 + $0xb0] sm:$0xf] %vm1898_vm8, %v1719_v37  ;;  %v9380_v59 = vrot.slane %v7672_v16, 1 }
 0x1ef   : > { %1131 = vperm.xlu1 %6251, %v805_v45   ;;  %1490 = vst.msk [vmem:[#allocation3 + $0xe0] sm:$0xf] %vm1465_vm4, %v1417_v19  ;;  %v473_v45 = vld [vmem:[#allocation2 + $0xd8] sm:$0xff]  ;;  %v626_v22 = vadd.f32 %v7222_v44, %v550_v1 }
 0x1f0   : > { %v6063_v25 = vld [vmem:[#allocation3 + $0x194] sm:$0xf]  ;;  %1489 = vst.msk [vmem:[#allocation3 + $0xd8] sm:$0xf] %vm1465_vm4, %v1416_v30  ;;  %v9357_v30 = vrot.slane %v7672_v16, 1  ;;  %v549_v39 = vmul.f32 %v7235_v50, %v473_v45 }
 0x1f1   : > { %v1062_v37 = vpop.permute.xlu1 %1061  ;;  %v5330_v41 = vld [vmem:[#allocation3 + $0x198] sm:$0xf0]  ;;  %1513 = vst.msk [vmem:[#allocation3 + $0x198] sm:$0xf] %vm1465_vm4, %v1440_v62  ;;  %v5176_v62 = vld [vmem:[#allocation3 + $0x60] sm:$0xf] }
 0x1f2   : > { %v7678_v29 = vmul.f32 %v1062_v37, %v719_v14  ;;  %v942_v38 = vpop.permute.xlu0 %941  ;;  %v5333_v31 = vor.u32 %v6063_v25, %v5330_v41  ;;  %1514 = vst.msk [vmem:[#allocation3 + $0x1a0] sm:$0xf] %vm1465_vm4, %v1441_v7  ;;  %v573_v7 = vmul.f32 %v7235_v50, %v497_v9 }
 0x1f3   : > { %v1199_v47 = vmul.f32 %v942_v38, %v695_v8  ;;  %v9373_v38 = vrot.slane %v7601_v6, 1 }
 0x1f4   : > { %v2020_v42 = vrot.slane %v7678_v29, 1  ;;  %5501 = vmatmul.msk.bf16.gmra.mxu1 %vm2781_vm7, %v5333_v31  ;;  %5603 = vmatmul.msk.bf16.gmra.mxu3 %vm2781_vm7, %v5333_v31  ;;  %v6026_v14 = vld [vmem:[#allocation3 + $0x64] sm:$0xf0]  ;;  %v1295_v8 = vrot.slane %v7678_v29, 7  ;;  %v7714_v45 = vpop.f32.mrf.mxu3 }
 0x1f5   : > { %v1271_v25 = vrot.slane %v1199_v47, 7  ;;  %v1996_v20 = vrot.slane %v1199_v47, 1  ;;  %v5177_v37 = vor.u32 %v6026_v14, %v5176_v62  ;;  %v1563_v41 = vpack.c.bf16 %v1199_v47, %v1199_v47  ;;  %9374 = vst [vmem:[#allocation6_spill] sm:$0xff] %v7714_v45 }
 0x1f6   : > { %v2065_v1 = vsel %vm2043_vm5, %v2020_v42, %v9355_v32  ;;  %v2066_v31 = vsel %vm2043_vm5, %v9373_v38, %v2020_v42  ;;  %v9356_v14 = vrot.slane %v7667_v49, 7  ;;  %v722_v38 = vmax.f32 %v650_v48, 0.0 }
 0x1f7   : > { %v2164_v19 = vpack.c.bf16 %v2066_v31, %v2066_v31  ;;  %v2165_v9 = vpack.c.bf16 %v2065_v1, %v2065_v1  ;;  %v2089_v47 = vsel %vm2043_vm5, %v1996_v20, %v9357_v30  ;;  %v2090_v62 = vsel %vm2043_vm5, %v1995_v12, %v1996_v20  ;;  %2918 = vmatmul.bf16.gmra.mxu0 %v5177_v37 }
 0x1f8   : > { %v2140_v32 = vpack.c.bf16 %v2090_v62, %v2090_v62  ;;  %v2141_v42 = vpack.c.bf16 %v2089_v47, %v2089_v47  ;;  %3402 = vmatmul.bf16.gmra.mxu2 %v5177_v37  ;;  %1732 = vrot.lane.b32.xlu1 %v1563_v41, %s6302_s12  ;;  %v1367_v50 = vsel %vm1320_vm6, %v1270_v36, %v1271_v25  ;;  %v9375_v12 = vrot.slane %v7672_v16, 7 }
 0x1f9   : > { %2236 = vst.msk [vmem:[#allocation3 + $0x1a4] sm:$0xf] %vm1465_vm4, %v2164_v19  ;;  %v1705_v1 = vpop.permute.xlu1 %1704  ;;  %v649_v41 = vadd.f32 %v7222_v44, %v573_v7  ;;  %v1342_v55 = vsel %vm1320_vm6, %v1295_v8, %v9356_v14  ;;  %v698_v36 = vmax.f32 %v626_v22, 0.0  ;;  %v7729_v19 = vld [vmem:[%s6380_s11] ss:$0 sm:$0xff]  ;;  %v1418_v47 = vpack.c.bf16 %v1367_v50, %v1367_v50  ;;  %v7736_v44 = vpop.f32.mrf.mxu1 }
 0x1fa   : > { %v1366_v20 = vsel %vm1320_vm6, %v1271_v25, %v9375_v12  ;;  %2237 = vst.msk [vmem:[#allocation3 + $0x1ac] sm:$0xf] %vm1465_vm4, %v2165_v9  ;;  %v1723_v37 = vpop.permute.xlu0 %1722  ;;  %v625_v31 = vadd.f32 %v7729_v19, %v549_v39  ;;  %v9376_v48 = vrot.slane %v7601_v6, 7  ;;  %v500_v9 = vld [vmem:[#allocation2 + $0x1b0] sm:$0xff]  ;;  %v1564_v39 = vpack.c.bf16 %v7672_v16, %v7672_v16 }
 0x1fb   : > { %2212 = vst.msk [vmem:[#allocation3 + $0xe4] sm:$0xf] %vm1465_vm4, %v2140_v32  ;;  %v1419_v7 = vpack.c.bf16 %v1366_v20, %v1366_v20  ;;  %v1443_v32 = vpack.c.bf16 %v1342_v55, %v1342_v55  ;;  %v721_v22 = vmax.f32 %v649_v41, 0.0  ;;  %v7744_v50 = vmul.f32 %v7148_v33, %v722_v38  ;;  %v499_v55 = vld [vmem:[#allocation2 + $0x1a8] sm:$0xff] }
 0x1fc   : > { %v1343_v25 = vsel %vm1320_vm6, %v9376_v48, %v1295_v8  ;;  %2213 = vst.msk [vmem:[#allocation3 + $0xec] sm:$0xf] %vm1465_vm4, %v2141_v42  ;;  %v7747_v8 = vmul.f32 %v7482_v51, %v698_v36  ;;  %v697_v12 = vmax.f32 %v625_v31, 0.0  ;;  %v7751_v42 = vld [vmem:[%s6370_s30] ss:$0 sm:$0xff]  ;;  %v7761_v31 = vpop.f32.mrf.mxu3 }
 0x1fd   : > { %1910 = vst.msk [vmem:[#allocation3 + $0x78] sm:$0xf] %vm1898_vm8, %v1705_v1  ;;  %v1442_v62 = vpack.c.bf16 %v1343_v25, %v1343_v25  ;;  %v576_v1 = vmul.f32 %v7751_v42, %v500_v9  ;;  %v9360_v36 = vrot.slane %v7744_v50, 1  ;;  %v475_v25 = vld [vmem:[#allocation2 + $0xe8] sm:$0xff] }
 0x1fe   : > { %1919 = vst.msk [vmem:[#allocation3 + $0xc0] sm:$0xf] %vm1898_vm8, %v1723_v37  ;;  %v9362_v9 = vrot.slane %v7747_v8, 1 }
 0x1ff   : > { %1491 = vst.msk [vmem:[#allocation3 + $0xe8] sm:$0xf] %vm1465_vm4, %v1418_v47  ;;  %v9378_v47 = vrot.slane %v7667_v49, 1 }
 0x200   : > { %1734 = vrot.lane.b32.xlu1 %v1564_v39, %s6302_s12  ;;  %v6065_v20 = vld [vmem:[#allocation3 + $0x1a4] sm:$0xf]  ;;  %1492 = vst.msk [vmem:[#allocation3 + $0xf0] sm:$0xf] %vm1465_vm4, %v1419_v7  ;;  %v652_v7 = vadd.f32 %v7729_v19, %v576_v1  ;;  %v5184_v39 = vld [vmem:[#allocation3 + $0x70] sm:$0xf] }
 0x201   : > { %v1072_v37 = vpop.permute.xlu1 %1071  ;;  %v5338_v41 = vld [vmem:[#allocation3 + $0x1a8] sm:$0xf0]  ;;  %1516 = vst.msk [vmem:[#allocation3 + $0x1b0] sm:$0xf] %vm1465_vm4, %v1443_v32 }
 0x202   : > { %v7757_v33 = vmul.f32 %v1072_v37, %v721_v22  ;;  %v952_v51 = vpop.permute.xlu0 %951  ;;  %v5341_v38 = vor.u32 %v6065_v20, %v5338_v41  ;;  %1515 = vst.msk [vmem:[#allocation3 + $0x1a8] sm:$0xf] %vm1465_vm4, %v1442_v62  ;;  %v575_v62 = vmul.f32 %v7751_v42, %v499_v55 }
 0x203   : > { %9377 = vst [vmem:[#allocation7_spill] sm:$0xff] %v7761_v31  ;;  %v1201_v48 = vmul.f32 %v952_v51, %v697_v12  ;;  %v810_v12 = vld [vmem:[%s9340_s1 + $0x220] sm:$0xff]  ;;  %v7773_v51 = vpop.f32.mrf.mxu1  ;;  %v9361_v31 = vrot.slane %v7744_v50, 7 }
 0x204   : > { %v2022_v32 = vrot.slane %v7757_v33, 1  ;;  %5502 = vmatmul.msk.bf16.gmra.mxu1 %vm2781_vm7, %v5341_v38  ;;  %5604 = vmatmul.msk.bf16.gmra.mxu3 %vm2781_vm7, %v5341_v38  ;;  %v6028_v22 = vld [vmem:[#allocation3 + $0x74] sm:$0xf0]  ;;  %v1297_v14 = vrot.slane %v7757_v33, 7 }
 0x205   : > { %v1273_v20 = vrot.slane %v1201_v48, 7  ;;  %v1998_v37 = vrot.slane %v1201_v48, 1  ;;  %v5185_v41 = vor.u32 %v6028_v22, %v5184_v39  ;;  %v1565_v1 = vpack.c.bf16 %v1201_v48, %v1201_v48  ;;  %v7785_v22 = vpop.f32.mrf.mxu2 }
 0x206   : > { %v2063_v38 = vsel %vm2043_vm5, %v2022_v32, %v9360_v36  ;;  %v2064_v55 = vsel %vm2043_vm5, %v9378_v47, %v2022_v32  ;;  %v551_v39 = vmul.f32 %v7751_v42, %v475_v25  ;;  %9379 = vst [vmem:[#allocation8_spill] sm:$0xff] %v7785_v22  ;;  %v9381_v25 = vrot.slane %v7672_v16, 7 }
 0x207   : > { %v2166_v30 = vpack.c.bf16 %v2064_v55, %v2064_v55  ;;  %v2167_v48 = vpack.c.bf16 %v2063_v38, %v2063_v38  ;;  %v2087_v28 = vsel %vm2043_vm5, %v1998_v37, %v9362_v9  ;;  %v2088_v36 = vsel %vm2043_vm5, %v9380_v59, %v1998_v37  ;;  %2923 = vmatmul.bf16.gmra.mxu0 %v5185_v41 }
 0x208   : > { %v2142_v47 = vpack.c.bf16 %v2088_v36, %v2088_v36  ;;  %v2143_v32 = vpack.c.bf16 %v2087_v28, %v2087_v28  ;;  %3407 = vmatmul.bf16.gmra.mxu2 %v5185_v41  ;;  %1156 = vperm.xlu1 %6251, %v810_v12   ;;  %v1365_v38 = vsel %vm1320_vm6, %v9381_v25, %v1273_v20  ;;  %v9382_v59 = vrot.slane %v7747_v8, 7  ;;  %v502_v25 = vld [vmem:[#allocation2 + $0x1c0] sm:$0xff] }
 0x209   : > { %2238 = vst.msk [vmem:[#allocation3 + $0x1b4] sm:$0xf] %vm1465_vm4, %v2166_v30  ;;  %1736 = vrot.lane.b32.xlu2 %v1565_v1, %s6302_s12  ;;  %v1709_v55 = vpop.permute.xlu1 %1708  ;;  %v651_v36 = vadd.f32 %v7729_v19, %v575_v62  ;;  %v1340_v16 = vsel %vm1320_vm6, %v1297_v14, %v9361_v31  ;;  %v627_v30 = vadd.f32 %v7729_v19, %v551_v39  ;;  %v9383_v12 = vrot.slane %v7667_v49, 7  ;;  %v811_v39 = vld [vmem:[%s9340_s1 + $0x228] sm:$0xff] }
 0x20a   : > { %v1364_v37 = vsel %vm1320_vm6, %v1273_v20, %v9382_v59  ;;  %2239 = vst.msk [vmem:[#allocation3 + $0x1bc] sm:$0xf] %vm1465_vm4, %v2167_v48  ;;  %v1727_v28 = vpop.permute.xlu0 %1726  ;;  %v1420_v41 = vpack.c.bf16 %v1365_v38, %v1365_v38  ;;  %v724_v1 = vmax.f32 %v652_v7, 0.0  ;;  %v6194_v48 = vld [vmem:[%s6385_s14 + $0x108] sm:$0xff]  ;;  %v7820_v59 = vpop.f32.mrf.mxu3  ;;  %v1566_v7 = vpack.c.bf16 %v7747_v8, %v7747_v8 }
 0x20b   : > { %2214 = vst.msk [vmem:[#allocation3 + $0xf4] sm:$0xf] %vm1465_vm4, %v2142_v47  ;;  %v1341_v20 = vsel %vm1320_vm6, %v9383_v12, %v1297_v14  ;;  %v1421_v62 = vpack.c.bf16 %v1364_v37, %v1364_v37  ;;  %v1445_v47 = vpack.c.bf16 %v1340_v16, %v1340_v16  ;;  %v723_v38 = vmax.f32 %v651_v36, 0.0  ;;  %4538 = vmatpush.bf16.msrb.mxu3 %v6194_v48  ;;  %v7834_v12 = vpop.f32.mrf.mxu1  ;;  %v6188_v48 = vld [vmem:[%s6385_s14 + $0xd8] sm:$0xff] }
 0x20c   : > { %2215 = vst.msk [vmem:[#allocation3 + $0xfc] sm:$0xf] %vm1465_vm4, %v2143_v32  ;;  %v1444_v14 = vpack.c.bf16 %v1341_v20, %v1341_v20  ;;  %v699_v32 = vmax.f32 %v627_v30, 0.0  ;;  %v7831_v37 = vmul.f32 %v7177_v5, %v724_v1  ;;  %v501_v20 = vld [vmem:[#allocation2 + $0x1b8] sm:$0xff]  ;;  %4347 = vmatpush.bf16.msrb.mxu1 %v6188_v48 }
 0x20d   : > { %9384 = vst [vmem:[#allocation9_spill] sm:$0xff] %v7820_v59  ;;  %v9389_v59 = vrot.slane %v7747_v8, 1 }
 0x20e   : > { %1912 = vst.msk [vmem:[#allocation3 + $0x88] sm:$0xf] %vm1898_vm8, %v1709_v55  ;;  %v578_v55 = vmul.f32 %v7751_v42, %v502_v25  ;;  %v9363_v31 = vrot.slane %v7831_v37, 1 }
 0x20f   : > { %1921 = vst.msk [vmem:[#allocation3 + $0xd0] sm:$0xf] %vm1898_vm8, %v1727_v28  ;;  %v7837_v28 = vpop.f32.mrf.mxu2 }
 0x210   : > { %1493 = vst.msk [vmem:[#allocation3 + $0xf8] sm:$0xf] %vm1465_vm4, %v1420_v41  ;;  %1161 = vperm.xlu1 %6251, %v811_v39   ;;  %v6067_v16 = vld [vmem:[#allocation3 + $0x1b4] sm:$0xf] }
 0x211   : > { %1494 = vst.msk [vmem:[#allocation3 + $0x100] sm:$0xf] %vm1465_vm4, %v1421_v62  ;;  %1738 = vrot.lane.b32.xlu2 %v1566_v7, %s6302_s12  ;;  %v1082_v36 = vpop.permute.xlu1 %1081  ;;  %v5346_v30 = vld [vmem:[#allocation3 + $0x1b8] sm:$0xf0]  ;;  %v1569_v62 = vpack.c.bf16 %v6725_v61, %v6725_v61  ;;  %v512_v39 = vld [vmem:[#allocation2 + $0x210] sm:$0xff]  ;;  %v654_v7 = vadd.f32 %v7729_v19, %v578_v55 }
 0x212   : > { %9385 = vst [vmem:[#allocation10_spill] sm:$0xff] %v7837_v28  ;;  %v7841_v41 = vmul.f32 %v1082_v36, %v723_v38  ;;  %v962_v5 = vpop.permute.xlu0 %961  ;;  %v5349_v1 = vor.u32 %v6067_v16, %v5346_v30  ;;  %v577_v16 = vmul.f32 %v7751_v42, %v501_v20  ;;  %v812_v20 = vld [vmem:[%s9340_s1 + $0x230] sm:$0xff]  ;;  %v9388_v28 = vrot.slane %v6707_v46, 1 }
 0x213   : > { %1518 = vst.msk [vmem:[#allocation3 + $0x1c0] sm:$0xf] %vm1465_vm4, %v1445_v47  ;;  %v1203_v25 = vmul.f32 %v962_v5, %v699_v32  ;;  %v5192_v47 = vld [vmem:[#allocation3 + $0x80] sm:$0xf]  ;;  %v9386_v5 = vrot.slane %v7744_v50, 1 }
 0x214   : > { %1517 = vst.msk [vmem:[#allocation3 + $0x1b8] sm:$0xf] %vm1465_vm4, %v1444_v14  ;;  %v2024_v9 = vrot.slane %v7841_v41, 1  ;;  %5503 = vmatmul.msk.bf16.gmra.mxu1 %vm2781_vm7, %v5349_v1  ;;  %5605 = vmatmul.msk.bf16.gmra.mxu3 %vm2781_vm7, %v5349_v1  ;;  %v1299_v61 = vrot.slane %v7841_v41, 7 }
 0x215   : > { %v6030_v38 = vld [vmem:[#allocation3 + $0x84] sm:$0xf0]  ;;  %v1275_v14 = vrot.slane %v1203_v25, 7  ;;  %v2000_v32 = vrot.slane %v1203_v25, 1  ;;  %v1567_v30 = vpack.c.bf16 %v1203_v25, %v1203_v25  ;;  %v7866_v25 = vpop.f32.mrf.mxu3 }
 0x216   : > { %v5193_v36 = vor.u32 %v6030_v38, %v5192_v47  ;;  %v2061_v55 = vsel %vm2043_vm5, %v2024_v9, %v9363_v31  ;;  %v2062_v1 = vsel %vm2043_vm5, %v9386_v5, %v2024_v9  ;;  %v588_v47 = vmul.f32 %v7751_v42, %v512_v39  ;;  %9387 = vst [vmem:[#allocation11_spill] sm:$0xff] %v7866_v25 }
 0x217   : > { %v2168_v48 = vpack.c.bf16 %v2062_v1, %v2062_v1  ;;  %v2169_v38 = vpack.c.bf16 %v2061_v55, %v2061_v55  ;;  %v2085_v31 = vsel %vm2043_vm5, %v2000_v32, %v9388_v28  ;;  %v2086_v9 = vsel %vm2043_vm5, %v9389_v59, %v2000_v32  ;;  %1740 = vrot.lane.b32.xlu0 %v1567_v30, %s6302_s12  ;;  %v7896_v30 = vpop.f32.mrf.mxu2 }
 0x218   : > { %2928 = vmatmul.bf16.gmra.mxu0 %v5193_v36  ;;  %v2144_v5 = vpack.c.bf16 %v2086_v9, %v2086_v9  ;;  %v2145_v22 = vpack.c.bf16 %v2085_v31, %v2085_v31  ;;  %3412 = vmatmul.bf16.gmra.mxu2 %v5193_v36  ;;  %v9390_v39 = vrot.slane %v7747_v8, 7  ;;  %v9364_v1 = vrot.slane %v7831_v37, 7  ;;  %9393 = vst [vmem:[#allocation12_spill] sm:$0xff] %v7896_v30 }
 0x219   : > { %1744 = vrot.lane.b32.xlu1 %v1569_v62, %s6302_s12  ;;  %2240 = vst.msk [vmem:[#allocation3 + $0x1c4] sm:$0xf] %vm1465_vm4, %v2168_v48  ;;  %1166 = vperm.xlu2 %6252, %v812_v20   ;;  %v1713_v28 = vpop.permute.xlu1 %1712  ;;  %v9391_v59 = vrot.slane %v6707_v46, 7  ;;  %v653_v8 = vadd.f32 %v7729_v19, %v577_v16  ;;  %v9392_v32 = vrot.slane %v7744_v50, 7  ;;  %v726_v48 = vmax.f32 %v654_v7, 0.0  ;;  %v7894_v20 = vpop.f32.mrf.mxu1 }
 0x21a   : > { %v1363_v55 = vsel %vm1320_vm6, %v9390_v39, %v1275_v14  ;;  %2241 = vst.msk [vmem:[#allocation3 + $0x1cc] sm:$0xf] %vm1465_vm4, %v2169_v38  ;;  %v1731_v62 = vpop.permute.xlu0 %1730  ;;  %v664_v9 = vadd.f32 %v7729_v19, %v588_v47  ;;  %v1338_v16 = vsel %vm1320_vm6, %v1299_v61, %v9364_v1  ;;  %v513_v38 = vld [vmem:[#allocation2 + $0x218] sm:$0xff]  ;;  %v1570_v47 = vpack.c.bf16 %v6689_v26, %v6689_v26 }
 0x21b   : > { %v1362_v31 = vsel %vm1320_vm6, %v1275_v14, %v9391_v59  ;;  %v1339_v36 = vsel %vm1320_vm6, %v9392_v32, %v1299_v61  ;;  %2216 = vst.msk [vmem:[#allocation3 + $0x104] sm:$0xf] %vm1465_vm4, %v2144_v5  ;;  %v1422_v14 = vpack.c.bf16 %v1363_v55, %v1363_v55  ;;  %v504_v59 = vld [vmem:[#allocation2 + $0x1d0] sm:$0xff]  ;;  %v1572_v5 = vpack.c.bf16 %v6718_v56, %v6718_v56 }
 0x21c   : > { %2217 = vst.msk [vmem:[#allocation3 + $0x10c] sm:$0xf] %vm1465_vm4, %v2145_v22  ;;  %v1423_v39 = vpack.c.bf16 %v1362_v31, %v1362_v31  ;;  %v1446_v7 = vpack.c.bf16 %v1339_v36, %v1339_v36  ;;  %v725_v55 = vmax.f32 %v653_v8, 0.0  ;;  %v1447_v32 = vpack.c.bf16 %v1338_v16, %v1338_v16 }
 0x21d   : > { %1914 = vst.msk [vmem:[#allocation3 + $0x98] sm:$0xf] %vm1898_vm8, %v1713_v28  ;;  %v7912_v61 = vmul.f32 %v7256_v63, %v726_v48  ;;  %v1568_v22 = vpack.c.bf16 %v6707_v46, %v6707_v46  ;;  %v736_v31 = vmax.f32 %v664_v9, 0.0  ;;  %v589_v28 = vmul.f32 %v7751_v42, %v513_v38  ;;  %v7921_v56 = vpop.f32.mrf.mxu3 }
 0x21e   : > { %1923 = vst.msk [vmem:[#allocation3 + $0xe0] sm:$0xf] %vm1898_vm8, %v1731_v62  ;;  %v580_v26 = vmul.f32 %v7751_v42, %v504_v59  ;;  %v1575_v9 = vpack.c.bf16 %v6763_v24, %v6763_v24  ;;  %v503_v59 = vld [vmem:[#allocation2 + $0x1c8] sm:$0xff]  ;;  %v5200_v24 = vld [vmem:[#allocation3 + $0x90] sm:$0xf] }
 0x21f   : > { %1495 = vst.msk [vmem:[#allocation3 + $0x108] sm:$0xf] %vm1465_vm4, %v1422_v14  ;;  %1742 = vrot.lane.b32.xlu0 %v1568_v22, %s6302_s12  ;;  %v1302_v14 = vrot.slane %v7912_v61, 7  ;;  %v9365_v16 = vrot.slane %v7912_v61, 1 }
 0x220   : > { %v6069_v62 = vld [vmem:[#allocation3 + $0x1c4] sm:$0xf]  ;;  %1496 = vst.msk [vmem:[#allocation3 + $0x110] sm:$0xf] %vm1465_vm4, %v1423_v39  ;;  %v665_v39 = vadd.f32 %v7729_v19, %v589_v28  ;;  %v656_v22 = vadd.f32 %v7729_v19, %v580_v26  ;;  %v7947_v28 = vpop.f32.mrf.mxu2  ;;  %v579_v26 = vmul.f32 %v7751_v42, %v503_v59  ;;  %v9399_v59 = vrot.slane %v7831_v37, 7 }
 0x221   : > { %1750 = vrot.lane.b32.xlu1 %v1572_v5, %s6302_s12  ;;  %9394 = vst [vmem:[#allocation13_spill] sm:$0xff] %v7921_v56  ;;  %1746 = vrot.lane.b32.xlu2 %v1570_v47, %s6302_s12  ;;  %v1092_v63 = vpop.permute.xlu1 %1091  ;;  %v5354_v46 = vld [vmem:[#allocation3 + $0x1c8] sm:$0xf0]  ;;  %v7968_v56 = vpop.f32.mrf.mxu0 }
 0x222   : > { %1519 = vst.msk [vmem:[#allocation3 + $0x1c8] sm:$0xf] %vm1465_vm4, %v1446_v7  ;;  %v7926_v8 = vmul.f32 %v1092_v63, %v725_v55  ;;  %v1147_v36 = vpop.permute.xlu0 %1146  ;;  %v5357_v48 = vor.u32 %v6069_v62, %v5354_v46  ;;  %v1573_v55 = vpack.c.bf16 %v6789_v58, %v6789_v58  ;;  %v9396_v58 = vrot.slane %v7831_v37, 1 }
 0x223   : > { %1520 = vst.msk [vmem:[#allocation3 + $0x1d0] sm:$0xf] %vm1465_vm4, %v1447_v32  ;;  %v7933_v38 = vmul.f32 %v1147_v36, %v736_v31  ;;  %v1571_v32 = vpack.c.bf16 %v6849_v0, %v6849_v0  ;;  %v7945_v31 = vpop.f32.mrf.mxu1 }
 0x224   : > { %v1301_v7 = vrot.slane %v7926_v8, 7  ;;  %v2026_v5 = vrot.slane %v7926_v8, 1  ;;  %5504 = vmatmul.msk.bf16.gmra.mxu1 %vm2781_vm7, %v5357_v48  ;;  %5606 = vmatmul.msk.bf16.gmra.mxu3 %vm2781_vm7, %v5357_v48  ;;  %v6032_v47 = vld [vmem:[#allocation3 + $0x94] sm:$0xf0]  ;;  %9395 = vst [vmem:[#allocation14_spill] sm:$0xff] %v7947_v28 }
 0x225   : > { %v1312_v62 = vrot.slane %v7933_v38, 7  ;;  %v2037_v63 = vrot.slane %v7933_v38, 1  ;;  %v5201_v46 = vor.u32 %v6032_v47, %v5200_v24  ;;  %v9397_v24 = vrot.slane %v7517_v18, 1  ;;  %9398 = vst [vmem:[#allocation15_spill] sm:$0xff] %v7968_v56 }
 0x226   : > { %v2059_v36 = vsel %vm2043_vm5, %v2026_v5, %v9365_v16  ;;  %v2060_v0 = vsel %vm2043_vm5, %v9396_v58, %v2026_v5  ;;  %v1336_v48 = vsel %vm1320_vm6, %v1301_v7, %v1302_v14  ;;  %v737_v16 = vmax.f32 %v665_v39, 0.0 }
 0x227   : > { %v2170_v1 = vpack.c.bf16 %v2060_v0, %v2060_v0  ;;  %v2171_v28 = vpack.c.bf16 %v2059_v36, %v2059_v36  ;;  %v2049_v47 = vsel %vm2043_vm5, %v9397_v24, %v2037_v63  ;;  %v1337_v5 = vsel %vm1320_vm6, %v9399_v59, %v1301_v7  ;;  %1748 = vrot.lane.b32.xlu0 %v1571_v32, %s6302_s12 }
 0x228   : > { %2933 = vmatmul.bf16.gmra.mxu0 %v5201_v46  ;;  %v2181_v30 = vpack.c.bf16 %v2049_v47, %v2049_v47  ;;  %3417 = vmatmul.bf16.gmra.mxu2 %v5201_v46  ;;  %v9400_v36 = vrot.slane %v7517_v18, 7  ;;  %v1449_v46 = vpack.c.bf16 %v1336_v48, %v1336_v48  ;;  %v728_v0 = vmax.f32 %v656_v22, 0.0  ;;  %v7984_v47 = vpop.f32.mrf.mxu3 }
 0x229   : > { %1756 = vrot.lane.b32.xlu1 %v1575_v9, %s6302_s12  ;;  %2242 = vst.msk [vmem:[#allocation3 + $0x1d4] sm:$0xf] %vm1465_vm4, %v2170_v1  ;;  %1752 = vrot.lane.b32.xlu2 %v1573_v55, %s6302_s12  ;;  %v1717_v39 = vpop.permute.xlu1 %1716  ;;  %v655_v24 = vadd.f32 %v7729_v19, %v579_v26  ;;  %v1448_v7 = vpack.c.bf16 %v1337_v5, %v1337_v5 }
 0x22a   : > { %v1326_v58 = vsel %vm1320_vm6, %v9400_v36, %v1312_v62  ;;  %2243 = vst.msk [vmem:[#allocation3 + $0x1dc] sm:$0xf] %vm1465_vm4, %v2171_v28  ;;  %v1152_v9 = vpop.permute.xlu0 %1151  ;;  %v7994_v22 = vmul.f32 %v7338_v23, %v728_v0  ;;  %v1578_v28 = vpack.c.bf16 %v6948_v53, %v6948_v53  ;;  %v1576_v5 = vpack.c.bf16 %v6918_v11, %v6918_v11  ;;  %v506_v36 = vld [vmem:[#allocation2 + $0x1e0] sm:$0xff]  ;;  %v8020_v0 = vpop.f32.mrf.mxu0 }
 0x22b   : > { %9401 = vst [vmem:[#allocation16_spill] sm:$0xff] %v7984_v47  ;;  %v7987_v59 = vmul.f32 %v1152_v9, %v737_v16  ;;  %v1459_v1 = vpack.c.bf16 %v1326_v58, %v1326_v58  ;;  %v727_v26 = vmax.f32 %v655_v24, 0.0  ;;  %v8001_v16 = vpop.f32.mrf.mxu2  ;;  %v1574_v23 = vpack.c.bf16 %v6787_v57, %v6787_v57  ;;  %v505_v24 = vld [vmem:[#allocation2 + $0x1d8] sm:$0xff] }
 0x22c   : > { %2253 = vst.msk [vmem:[#allocation3 + $0x22c] sm:$0xf] %vm1465_vm4, %v2181_v30  ;;  %v7999_v30 = vpop.f32.mrf.mxu1  ;;  %v1304_v57 = vrot.slane %v7994_v22, 7 }
 0x22d   : > { %1916 = vst.msk [vmem:[#allocation3 + $0xa8] sm:$0xf] %vm1898_vm8, %v1717_v39  ;;  %v9366_v55 = vrot.slane %v7987_v59, 7  ;;  %v9367_v32 = vrot.slane %v7987_v59, 1 }
 0x22e   : > { %1522 = vst.msk [vmem:[#allocation3 + $0x1e0] sm:$0xf] %vm1465_vm4, %v1449_v46 }
 0x22f   : > { %1521 = vst.msk [vmem:[#allocation3 + $0x1d8] sm:$0xf] %vm1465_vm4, %v1448_v7  ;;  %v2048_v48 = vsel %vm2043_vm5, %v2037_v63, %v9367_v32  ;;  %v1325_v53 = vsel %vm1320_vm6, %v1312_v62, %v9366_v55  ;;  %1754 = vrot.lane.b32.xlu0 %v1574_v23, %s6302_s12  ;;  %v582_v7 = vmul.f32 %v7751_v42, %v506_v36 }
 0x230   : > { %9402 = vst [vmem:[#allocation17_spill] sm:$0xff] %v8001_v16  ;;  %v2182_v58 = vpack.c.bf16 %v2048_v48, %v2048_v48  ;;  %v6071_v39 = vld [vmem:[#allocation3 + $0x1d4] sm:$0xf]  ;;  %v1460_v46 = vpack.c.bf16 %v1325_v53, %v1325_v53  ;;  %v2029_v48 = vrot.slane %v7994_v22, 1  ;;  %v8032_v53 = vpop.f32.mrf.mxu3  ;;  %v1581_v36 = vpack.c.bf16 %v7300_v2, %v7300_v2 }
 0x231   : > { %1532 = vst.msk [vmem:[#allocation3 + $0x230] sm:$0xf] %vm1465_vm4, %v1459_v1  ;;  %1762 = vrot.lane.b32.xlu1 %v1578_v28, %s6302_s12  ;;  %1758 = vrot.lane.b32.xlu2 %v1576_v5, %s6302_s12  ;;  %v1102_v11 = vpop.permute.xlu1 %1101  ;;  %v5362_v63 = vld [vmem:[#allocation3 + $0x1d8] sm:$0xf0]  ;;  %v5208_v1 = vld [vmem:[#allocation3 + $0xa0] sm:$0xf] }
 0x232   : > { %9403 = vst [vmem:[#allocation18_spill] sm:$0xff] %v8020_v0  ;;  %v8023_v62 = vmul.f32 %v1102_v11, %v727_v26  ;;  %v5365_v9 = vor.u32 %v6071_v39, %v5362_v63 }
 0x233   : > { %2254 = vst.msk [vmem:[#allocation3 + $0x234] sm:$0xf] %vm1465_vm4, %v2182_v58  ;;  %v581_v58 = vmul.f32 %v7751_v42, %v505_v24  ;;  %v8061_v32 = vpop.f32.mrf.mxu2 }
 0x234   : > { %v6034_v28 = vld [vmem:[#allocation3 + $0xa4] sm:$0xf0]  ;;  %1533 = vst.msk [vmem:[#allocation3 + $0x238] sm:$0xf] %vm1465_vm4, %v1460_v46  ;;  %v1303_v5 = vrot.slane %v8023_v62, 7  ;;  %v2028_v23 = vrot.slane %v8023_v62, 1  ;;  %5505 = vmatmul.msk.bf16.gmra.mxu1 %vm2781_vm7, %v5365_v9  ;;  %5607 = vmatmul.msk.bf16.gmra.mxu3 %vm2781_vm7, %v5365_v9  ;;  %v8053_v9 = vpop.f32.mrf.mxu1 }
 0x235   : > { %v5209_v26 = vor.u32 %v6034_v28, %v5208_v1  ;;  %9404 = vst [vmem:[#allocation19_spill] sm:$0xff] %v8032_v53  ;;  %v9405_v46 = vrot.slane %v7912_v61, 1  ;;  %v1579_v28 = vpack.c.bf16 %v7215_v34, %v7215_v34  ;;  %v6187_v34 = vld [vmem:[%s6385_s14 + $0xd0] sm:$0xff] }
 0x236   : > { %v2057_v39 = vsel %vm2043_vm5, %v2028_v23, %v2029_v48  ;;  %v1334_v63 = vsel %vm1320_vm6, %v1303_v5, %v1304_v57  ;;  %v1335_v2 = vsel %vm1320_vm6, %v1302_v14, %v1303_v5  ;;  %9406 = vst [vmem:[#allocation20_spill] sm:$0xff] %v8061_v32  ;;  %4348 = vmatpush.bf16.msrb.mxu1 %v6187_v34 }
 0x237   : > { %v2058_v11 = vsel %vm2043_vm5, %v9405_v46, %v2028_v23  ;;  %v2173_v1 = vpack.c.bf16 %v2057_v39, %v2057_v39  ;;  %v1577_v23 = vpack.c.bf16 %v6967_v15, %v6967_v15  ;;  %v658_v46 = vadd.f32 %v7729_v19, %v582_v7 }
 0x238   : > { %v2172_v24 = vpack.c.bf16 %v2058_v11, %v2058_v11  ;;  %2938 = vmatmul.bf16.gmra.mxu0 %v5209_v26  ;;  %3422 = vmatmul.bf16.gmra.mxu2 %v5209_v26  ;;  %v1451_v55 = vpack.c.bf16 %v1334_v63, %v1334_v63  ;;  %v1450_v5 = vpack.c.bf16 %v1335_v2, %v1335_v2  ;;  %v8070_v26 = vpop.f32.mrf.mxu0 }
 0x239   : > { %1768 = vrot.lane.b32.xlu1 %v1581_v36, %s6302_s12  ;;  %1764 = vrot.lane.b32.xlu2 %v1579_v28, %s6302_s12  ;;  %v1721_v14 = vpop.permute.xlu1 %1720  ;;  %2245 = vst.msk [vmem:[#allocation3 + $0x1ec] sm:$0xf] %vm1465_vm4, %v2173_v1  ;;  %v657_v15 = vadd.f32 %v7729_v19, %v581_v58  ;;  %v730_v7 = vmax.f32 %v658_v46, 0.0  ;;  %v8073_v36 = vpop.f32.mrf.mxu3  ;;  %v1584_v39 = vpack.c.bf16 %v7353_v21, %v7353_v21  ;;  %v5216_v46 = vld [vmem:[#allocation3 + $0xb0] sm:$0xf] }
 0x23a   : > { %2244 = vst.msk [vmem:[#allocation3 + $0x1e4] sm:$0xf] %vm1465_vm4, %v2172_v24  ;;  %1760 = vrot.lane.b32.xlu0 %v1577_v23, %s6302_s12  ;;  %v1582_v58 = vpack.c.bf16 %v7267_v35, %v7267_v35  ;;  %v1580_v63 = vpack.c.bf16 %v7187_v3, %v7187_v3  ;;  %v508_v24 = vld [vmem:[#allocation2 + $0x1f0] sm:$0xff] }
 0x23b   : > { %1918 = vst.msk [vmem:[#allocation3 + $0xb8] sm:$0xf] %vm1898_vm8, %v1721_v14  ;;  %v729_v11 = vmax.f32 %v657_v15, 0.0  ;;  %v8083_v2 = vmul.f32 %v7415_v52, %v730_v7  ;;  %v8092_v14 = vpop.f32.mrf.mxu2  ;;  %v584_v34 = vmul.f32 %v7751_v42, %v508_v24 }
 0x23c   : > { %9407 = vst [vmem:[#allocation21_spill] sm:$0xff] %v8070_v26  ;;  %v8086_v1 = vpop.f32.mrf.mxu1 }
 0x23d   : > { %1524 = vst.msk [vmem:[#allocation3 + $0x1f0] sm:$0xf] %vm1465_vm4, %v1451_v55  ;;  %v2031_v15 = vrot.slane %v8083_v2, 1 }
 0x23e   : > { %9408 = vst [vmem:[#allocation22_spill] sm:$0xff] %v8073_v36 }
 0x23f   : > { %1523 = vst.msk [vmem:[#allocation3 + $0x1e8] sm:$0xf] %vm1465_vm4, %v1450_v5  ;;  %v507_v5 = vld [vmem:[#allocation2 + $0x1e8] sm:$0xff] }
 0x240   : > { %v5370_v28 = vld [vmem:[#allocation3 + $0x1e8] sm:$0xf0]  ;;  %9409 = vst [vmem:[#allocation23_spill] sm:$0xff] %v8092_v14 }
 0x241   : > { %1774 = vrot.lane.b32.xlu1 %v1584_v39, %s6302_s12  ;;  %v6073_v55 = vld [vmem:[#allocation3 + $0x1e4] sm:$0xf]  ;;  %1770 = vrot.lane.b32.xlu2 %v1582_v58, %s6302_s12  ;;  %v1112_v21 = vpop.permute.xlu1 %1111  ;;  %v1587_v58 = vpack.c.bf16 %v7678_v29, %v7678_v29 }
 0x242   : > { %1766 = vrot.lane.b32.xlu0 %v1580_v63, %s6302_s12  ;;  %v8090_v23 = vmul.f32 %v1112_v21, %v729_v11  ;;  %v5373_v35 = vor.u32 %v6073_v55, %v5370_v28  ;;  %v6036_v3 = vld [vmem:[#allocation3 + $0xb4] sm:$0xf0]  ;;  %v1306_v11 = vrot.slane %v8083_v2, 7  ;;  %v1583_v63 = vpack.c.bf16 %v7380_v13, %v7380_v13  ;;  %v8105_v55 = vpop.f32.mrf.mxu0  ;;  %v8120_v13 = vpop.f32.mrf.mxu3 }
 0x243   : > { %v5217_v52 = vor.u32 %v6036_v3, %v5216_v46  ;;  %9410 = vst [vmem:[#allocation24_spill] sm:$0xff] %v8105_v55  ;;  %v583_v28 = vmul.f32 %v7751_v42, %v507_v5  ;;  %v1585_v3 = vpack.c.bf16 %v7606_v4, %v7606_v4  ;;  %v660_v5 = vadd.f32 %v7729_v19, %v584_v34  ;;  %v8139_v34 = vpop.f32.mrf.mxu2 }
 0x244   : > { %v1305_v7 = vrot.slane %v8090_v23, 7  ;;  %v2030_v39 = vrot.slane %v8090_v23, 1  ;;  %5506 = vmatmul.msk.bf16.gmra.mxu1 %vm2781_vm7, %v5373_v35  ;;  %5608 = vmatmul.msk.bf16.gmra.mxu3 %vm2781_vm7, %v5373_v35  ;;  %9411 = vst [vmem:[#allocation25_spill] sm:$0xff] %v8120_v13 }
 0x245   : > { %v659_v4 = vadd.f32 %v7729_v19, %v583_v28  ;;  %9412 = vst [vmem:[#allocation26_spill] sm:$0xff] %v8139_v34  ;;  %v1586_v28 = vpack.c.bf16 %v7601_v6, %v7601_v6  ;;  %v5224_v6 = vld [vmem:[#allocation3 + $0xc0] sm:$0xf] }
 0x246   : > { %v2055_v24 = vsel %vm2043_vm5, %v2030_v39, %v2031_v15  ;;  %v2056_v21 = vsel %vm2043_vm5, %v2029_v48, %v2030_v39  ;;  %v1333_v29 = vsel %vm1320_vm6, %v1304_v57, %v1305_v7  ;;  %v1332_v48 = vsel %vm1320_vm6, %v1305_v7, %v1306_v11 }
 0x247   : > { %v2174_v35 = vpack.c.bf16 %v2056_v21, %v2056_v21  ;;  %v2175_v46 = vpack.c.bf16 %v2055_v24, %v2055_v24  ;;  %v1452_v39 = vpack.c.bf16 %v1333_v29, %v1333_v29  ;;  %v1453_v24 = vpack.c.bf16 %v1332_v48, %v1332_v48  ;;  %v8135_v21 = vpop.f32.mrf.mxu1 }
 0x248   : > { %2943 = vmatmul.bf16.gmra.mxu0 %v5217_v52  ;;  %3427 = vmatmul.bf16.gmra.mxu2 %v5217_v52  ;;  %v732_v52 = vmax.f32 %v660_v5, 0.0  ;;  %v1590_v7 = vpack.c.bf16 %v7744_v50, %v7744_v50 }
 0x249   : > { %1780 = vrot.lane.b32.xlu1 %v1587_v58, %s6302_s12  ;;  %2246 = vst.msk [vmem:[#allocation3 + $0x1f4] sm:$0xf] %vm1465_vm4, %v2174_v35  ;;  %1776 = vrot.lane.b32.xlu2 %v1585_v3, %s6302_s12  ;;  %v1725_v57 = vpop.permute.xlu1 %1724  ;;  %v731_v58 = vmax.f32 %v659_v4, 0.0 }
 0x24a   : > { %1772 = vrot.lane.b32.xlu0 %v1583_v63, %s6302_s12  ;;  %2247 = vst.msk [vmem:[#allocation3 + $0x1fc] sm:$0xf] %vm1465_vm4, %v2175_v46  ;;  %v1588_v63 = vpack.c.bf16 %v7667_v49, %v7667_v49  ;;  %v8149_v29 = vmul.f32 %v7461_v17, %v732_v52  ;;  %v8151_v35 = vpop.f32.mrf.mxu0  ;;  %v8154_v3 = vpop.f32.mrf.mxu3 }
 0x24b   : > { %1920 = vst.msk [vmem:[#allocation3 + $0xc8] sm:$0xf] %vm1898_vm8, %v1725_v57  ;;  %v509_v57 = vld [vmem:[#allocation2 + $0x1f8] sm:$0xff] }
 0x24c   : > { %1525 = vst.msk [vmem:[#allocation3 + $0x1f8] sm:$0xf] %vm1465_vm4, %v1452_v39  ;;  %v2033_v4 = vrot.slane %v8149_v29, 1 }
 0x24d   : > { %1526 = vst.msk [vmem:[#allocation3 + $0x200] sm:$0xf] %vm1465_vm4, %v1453_v24  ;;  %v9368_v24 = vrot.slane %v8149_v29, 7 }
 0x24e   : > { %9413 = vst [vmem:[#allocation27_spill] sm:$0xff] %v8151_v35 }
 0x24f   : > { %9414 = vst [vmem:[#allocation28_spill] sm:$0xff] %v8154_v3 }
 0x250   : > { %v6075_v46 = vld [vmem:[#allocation3 + $0x1f4] sm:$0xf] }
 0x251   : > { %1786 = vrot.lane.b32.xlu1 %v1590_v7, %s6302_s12  ;;  %1782 = vrot.lane.b32.xlu2 %v1588_v63, %s6302_s12  ;;  %v1122_v50 = vpop.permute.xlu1 %1121  ;;  %v5378_v48 = vld [vmem:[#allocation3 + $0x1f8] sm:$0xf0]  ;;  %v8166_v63 = vpop.f32.mrf.mxu1 }
 0x252   : > { %1778 = vrot.lane.b32.xlu0 %v1586_v28, %s6302_s12  ;;  %v8158_v49 = vmul.f32 %v1122_v50, %v731_v58  ;;  %v5381_v5 = vor.u32 %v6075_v46, %v5378_v48  ;;  %v6038_v39 = vld [vmem:[#allocation3 + $0xc4] sm:$0xf0]  ;;  %v1593_v58 = vpack.c.bf16 %v7926_v8, %v7926_v8  ;;  %v1589_v28 = vpack.c.bf16 %v7757_v33, %v7757_v33 }
 0x253   : > { %v5225_v17 = vor.u32 %v6038_v39, %v5224_v6  ;;  %v585_v48 = vmul.f32 %v7751_v42, %v509_v57  ;;  %v1591_v39 = vpack.c.bf16 %v7841_v41, %v7841_v41 }
 0x254   : > { %v1307_v52 = vrot.slane %v8158_v49, 7  ;;  %v2032_v7 = vrot.slane %v8158_v49, 1  ;;  %5507 = vmatmul.msk.bf16.gmra.mxu1 %vm2781_vm7, %v5381_v5  ;;  %5609 = vmatmul.msk.bf16.gmra.mxu3 %vm2781_vm7, %v5381_v5  ;;  %v8185_v5 = vpop.f32.mrf.mxu2 }
 0x255   : > { %9415 = vst [vmem:[#allocation29_spill] sm:$0xff] %v8185_v5  ;;  %v661_v41 = vadd.f32 %v7729_v19, %v585_v48  ;;  %v1592_v48 = vpack.c.bf16 %v7831_v37, %v7831_v37 }
 0x256   : > { %v2053_v46 = vsel %vm2043_vm5, %v2032_v7, %v2033_v4  ;;  %v2054_v50 = vsel %vm2043_vm5, %v2031_v15, %v2032_v7  ;;  %v1330_v8 = vsel %vm1320_vm6, %v1307_v52, %v9368_v24  ;;  %v1331_v15 = vsel %vm1320_vm6, %v1306_v11, %v1307_v52  ;;  %v8201_v24 = vpop.f32.mrf.mxu3  ;;  %v6193_v11 = vld [vmem:[%s6385_s14 + $0x100] sm:$0xff] }
 0x257   : > { %v2176_v33 = vpack.c.bf16 %v2054_v50, %v2054_v50  ;;  %v2177_v6 = vpack.c.bf16 %v2053_v46, %v2053_v46  ;;  %v1455_v57 = vpack.c.bf16 %v1330_v8, %v1330_v8  ;;  %v1454_v46 = vpack.c.bf16 %v1331_v15, %v1331_v15  ;;  %v8199_v50 = vpop.f32.mrf.mxu0  ;;  %9417 = vst [vmem:[#allocation31_spill] sm:$0xff] %v8201_v24 }
 0x258   : > { %2948 = vmatmul.bf16.gmra.mxu0 %v5225_v17  ;;  %3432 = vmatmul.bf16.gmra.mxu2 %v5225_v17  ;;  %9416 = vst [vmem:[#allocation30_spill] sm:$0xff] %v8199_v50  ;;  %v1596_v17 = vpack.c.bf16 %v7994_v22, %v7994_v22  ;;  %v733_v52 = vmax.f32 %v661_v41, 0.0 }
 0x259   : > { %1792 = vrot.lane.b32.xlu1 %v1593_v58, %s6302_s12  ;;  %2248 = vst.msk [vmem:[#allocation3 + $0x204] sm:$0xf] %vm1465_vm4, %v2176_v33  ;;  %1788 = vrot.lane.b32.xlu2 %v1591_v39, %s6302_s12  ;;  %v1729_v7 = vpop.permute.xlu1 %1728  ;;  %v8209_v58 = vpop.f32.mrf.mxu1 }
 0x25a   : > { %1784 = vrot.lane.b32.xlu0 %v1589_v28, %s6302_s12  ;;  %2249 = vst.msk [vmem:[#allocation3 + $0x20c] sm:$0xf] %vm1465_vm4, %v2177_v6  ;;  %4539 = vmatpush.bf16.msrb.mxu3 %v6193_v11  ;;  %v1594_v28 = vpack.c.bf16 %v7912_v61, %v7912_v61  ;;  %v6186_v61 = vld [vmem:[%s6385_s14 + $0xc8] sm:$0xff] }
 0x25b   : > { %1922 = vst.msk [vmem:[#allocation3 + $0xd8] sm:$0xf] %vm1898_vm8, %v1729_v7  ;;  %4349 = vmatpush.bf16.msrb.mxu1 %v6186_v61 }
 0x25c   : > { %1528 = vst.msk [vmem:[#allocation3 + $0x210] sm:$0xf] %vm1465_vm4, %v1455_v57  ;;  %v8216_v33 = vpop.f32.mrf.mxu2  ;;  %v5232_v57 = vld [vmem:[#allocation3 + $0xd0] sm:$0xf] }
 0x25d   : > { %1527 = vst.msk [vmem:[#allocation3 + $0x208] sm:$0xf] %vm1465_vm4, %v1454_v46 }
 0x25e   : > { %9418 = vst [vmem:[#allocation32_spill] sm:$0xff] %v8216_v33 }
 0x260   : > { %v6077_v8 = vld [vmem:[#allocation3 + $0x204] sm:$0xf] }
 0x261   : > { %1798 = vrot.lane.b32.xlu1 %v1596_v17, %s6302_s12  ;;  %1794 = vrot.lane.b32.xlu2 %v1594_v28, %s6302_s12  ;;  %v1132_v22 = vpop.permute.xlu1 %1131  ;;  %v5386_v6 = vld [vmem:[#allocation3 + $0x208] sm:$0xf0]  ;;  %v1595_v28 = vpack.c.bf16 %v8023_v62, %v8023_v62 }
 0x262   : > { %1790 = vrot.lane.b32.xlu0 %v1592_v48, %s6302_s12  ;;  %v8220_v39 = vmul.f32 %v1132_v22, %v733_v52  ;;  %v5389_v15 = vor.u32 %v6077_v8, %v5386_v6  ;;  %v6040_v7 = vld [vmem:[#allocation3 + $0xd4] sm:$0xf0]  ;;  %v8230_v52 = vpop.f32.mrf.mxu3  ;;  %v516_v48 = vld [vmem:[#allocation2 + $0x230] sm:$0xff]  ;;  %v9421_v8 = vrot.slane %v7505_v43, 1 }
 0x263   : > { %v1737_v46 = vpop.permute.xlu2 %1736  ;;  %v8223_v41 = vpop.f32.mrf.mxu0  ;;  %v5233_v37 = vor.u32 %v6040_v7, %v5232_v57  ;;  %9420 = vst [vmem:[#allocation34_spill] sm:$0xff] %v8230_v52  ;;  %v9422_v57 = vrot.slane %v7505_v43, 7 }
 0x264   : > { %9419 = vst [vmem:[#allocation33_spill] sm:$0xff] %v8223_v41  ;;  %v1309_v11 = vrot.slane %v8220_v39, 7  ;;  %v2034_v17 = vrot.slane %v8220_v39, 1  ;;  %5508 = vmatmul.msk.bf16.gmra.mxu1 %vm2781_vm7, %v5389_v15  ;;  %5610 = vmatmul.msk.bf16.gmra.mxu3 %vm2781_vm7, %v5389_v15  ;;  %v1599_v15 = vpack.c.bf16 %v8158_v49, %v8158_v49  ;;  %v592_v49 = vmul.f32 %v7751_v42, %v516_v48 }
 0x265   : > { %1926 = vst.msk [vmem:[#allocation3 + $0xf8] sm:$0xf] %vm1898_vm8, %v1737_v46  ;;  %v1597_v46 = vpack.c.bf16 %v8090_v23, %v8090_v23 }
 0x266   : > { %v2051_v22 = vsel %vm2043_vm5, %v2034_v17, %v9421_v8  ;;  %v2052_v6 = vsel %vm2043_vm5, %v2033_v4, %v2034_v17  ;;  %v1328_v62 = vsel %vm1320_vm6, %v1309_v11, %v9422_v57  ;;  %v9423_v8 = vrot.slane %v8149_v29, 7  ;;  %v8256_v4 = vpop.f32.mrf.mxu1 }
 0x267   : > { %v2178_v7 = vpack.c.bf16 %v2052_v6, %v2052_v6  ;;  %v2179_v61 = vpack.c.bf16 %v2051_v22, %v2051_v22  ;;  %v1457_v23 = vpack.c.bf16 %v1328_v62, %v1328_v62  ;;  %v668_v48 = vadd.f32 %v7729_v19, %v592_v49 }
 0x268   : > { %2953 = vmatmul.bf16.gmra.mxu0 %v5233_v37  ;;  %v1329_v52 = vsel %vm1320_vm6, %v9423_v8, %v1309_v11  ;;  %3437 = vmatmul.bf16.gmra.mxu2 %v5233_v37  ;;  %v1598_v62 = vpack.c.bf16 %v8083_v2, %v8083_v2 }
 0x269   : > { %1804 = vrot.lane.b32.xlu1 %v1599_v15, %s6302_s12  ;;  %2250 = vst.msk [vmem:[#allocation3 + $0x214] sm:$0xf] %vm1465_vm4, %v2178_v7  ;;  %1800 = vrot.lane.b32.xlu2 %v1597_v46, %s6302_s12  ;;  %v8261_v17 = vpop.f32.mrf.mxu2  ;;  %v1456_v11 = vpack.c.bf16 %v1329_v52, %v1329_v52  ;;  %v514_v15 = vld [vmem:[#allocation2 + $0x220] sm:$0xff]  ;;  %v1600_v52 = vpack.c.bf16 %v8149_v29, %v8149_v29 }
 0x26a   : > { %1796 = vrot.lane.b32.xlu0 %v1595_v28, %s6302_s12  ;;  %9424 = vst [vmem:[#allocation35_spill] sm:$0xff] %v8261_v17  ;;  %v1733_v22 = vpop.permute.xlu1 %1732  ;;  %v1602_v28 = vpack.c.bf16 %v7505_v43, %v7505_v43  ;;  %v8273_v57 = vpop.f32.mrf.mxu3  ;;  %v590_v7 = vmul.f32 %v7751_v42, %v514_v15 }
 0x26b   : > { %2251 = vst.msk [vmem:[#allocation3 + $0x21c] sm:$0xf] %vm1465_vm4, %v2179_v61  ;;  %v1739_v37 = vpop.permute.xlu2 %1738  ;;  %v8265_v6 = vpop.f32.mrf.mxu0  ;;  %v740_v61 = vmax.f32 %v668_v48, 0.0 }
 0x26c   : > { %1924 = vst.msk [vmem:[#allocation3 + $0xe8] sm:$0xf] %vm1898_vm8, %v1733_v22  ;;  %v5240_v22 = vld [vmem:[#allocation3 + $0xe0] sm:$0xf]  ;;  %v666_v48 = vadd.f32 %v7729_v19, %v590_v7  ;;  %v1603_v19 = vpack.c.bf16 %v7517_v18, %v7517_v18  ;;  %v1601_v7 = vpack.c.bf16 %v8220_v39, %v8220_v39 }
 0x26d   : > { %9425 = vst [vmem:[#allocation36_spill] sm:$0xff] %v8265_v6 }
 0x26e   : > { %1927 = vst.msk [vmem:[#allocation3 + $0x100] sm:$0xf] %vm1898_vm8, %v1739_v37 }
 0x26f   : > { %1530 = vst.msk [vmem:[#allocation3 + $0x220] sm:$0xf] %vm1465_vm4, %v1457_v23 }
 0x270   : > { %1529 = vst.msk [vmem:[#allocation3 + $0x218] sm:$0xf] %vm1465_vm4, %v1456_v11  ;;  %v6079_v46 = vld [vmem:[#allocation3 + $0x214] sm:$0xf] }
 0x271   : > { %9426 = vst [vmem:[#allocation37_spill] sm:$0xff] %v8273_v57  ;;  %1810 = vrot.lane.b32.xlu1 %v1602_v28, %s6302_s12  ;;  %1806 = vrot.lane.b32.xlu2 %v1600_v52, %s6302_s12  ;;  %v8283_v43 = vpop.f32.mrf.mxu2  ;;  %v8285_v8 = vpop.f32.mrf.mxu1  ;;  %v515_v52 = vld [vmem:[#allocation2 + $0x228] sm:$0xff] }
 0x272   : > { %1802 = vrot.lane.b32.xlu0 %v1598_v62, %s6302_s12  ;;  %9427 = vst [vmem:[#allocation38_spill] sm:$0xff] %v8283_v43  ;;  %v5394_v49 = vld [vmem:[#allocation3 + $0x218] sm:$0xf0]  ;;  %v1735_v23 = vpop.permute.xlu1 %1734 }
 0x273   : > { %v5397_v29 = vor.u32 %v6079_v46, %v5394_v49  ;;  %v6042_v11 = vld [vmem:[#allocation3 + $0xe4] sm:$0xf0]  ;;  %1925 = vst.msk [vmem:[#allocation3 + $0xf0] sm:$0xf] %vm1898_vm8, %v1735_v23  ;;  %v1167_v2 = vpop.permute.xlu2 %1166  ;;  %v1605_v49 = vpack.c.bf16 %v7987_v59, %v7987_v59 }
 0x274   : > { %v5241_v37 = vor.u32 %v6042_v11, %v5240_v22  ;;  %v8289_v15 = vmul.f32 %v1167_v2, %v740_v61  ;;  %v8291_v28 = vpop.f32.mrf.mxu0  ;;  %v738_v61 = vmax.f32 %v666_v48, 0.0  ;;  %v9430_v22 = vrot.slane %v6969_v40, 1 }
 0x275   : > { %9428 = vst [vmem:[#allocation39_spill] sm:$0xff] %v8291_v28  ;;  %5509 = vmatmul.msk.bf16.gmra.mxu1 %vm2781_vm7, %v5397_v29  ;;  %5611 = vmatmul.msk.bf16.gmra.mxu3 %vm2781_vm7, %v5397_v29  ;;  %v591_v29 = vmul.f32 %v7751_v42, %v515_v52  ;;  %v9431_v2 = vrot.slane %v6969_v40, 7 }
 0x276   : > { %v9370_v62 = vrot.slane %v8289_v15, 7  ;;  %v9369_v46 = vrot.slane %v8289_v15, 1 }
 0x277   : > { %v8299_v23 = vpop.f32.mrf.mxu3 }
 0x278   : > { %2958 = vmatmul.bf16.gmra.mxu0 %v5241_v37  ;;  %9429 = vst [vmem:[#allocation40_spill] sm:$0xff] %v8299_v23  ;;  %v2044_v11 = vsel %vm2043_vm5, %v9369_v46, %v9430_v22  ;;  %3442 = vmatmul.bf16.gmra.mxu2 %v5241_v37  ;;  %v1321_v18 = vsel %vm1320_vm6, %v9370_v62, %v9431_v2  ;;  %v6259_v46 = vld [vmem:[%s6380_s11] ss:$0 sm:$0xff] }
 0x279   : > { %1816 = vrot.lane.b32.xlu1 %v1605_v49, %s6302_s12  ;;  %v2186_v39 = vpack.c.bf16 %v2044_v11, %v2044_v11  ;;  %1812 = vrot.lane.b32.xlu2 %v1603_v19, %s6302_s12  ;;  %v8321_v42 = vpop.f32.mrf.mxu1  ;;  %v1464_v48 = vpack.c.bf16 %v1321_v18, %v1321_v18  ;;  %v667_v23 = vadd.f32 %v6259_v46, %v591_v29  ;;  %v9434_v18 = vrot.slane %v7987_v59, 1 }
 0x27a   : > { %1808 = vrot.lane.b32.xlu0 %v1601_v7, %s6302_s12  ;;  %v1157_v52 = vpop.permute.xlu1 %1156  ;;  %v1608_v7 = vpack.c.bf16 %v8289_v15, %v8289_v15  ;;  %v1604_v46 = vpack.c.bf16 %v7933_v38, %v7933_v38 }
 0x27b   : > { %2258 = vst.msk [vmem:[#allocation3 + $0x254] sm:$0xf] %vm1465_vm4, %v2186_v39  ;;  %v8324_v37 = vpop.f32.mrf.mxu2  ;;  %v1242_v49 = vmul.f32 %v1157_v52, %v738_v61  ;;  %v1747_v22 = vpop.permute.xlu2 %1746  ;;  %v739_v29 = vmax.f32 %v667_v23, 0.0  ;;  %v5402_v52 = vld [vmem:[#allocation3 + $0x228] sm:$0xf0] }
 0x27c   : > { %9432 = vst [vmem:[#allocation41_spill] sm:$0xff] %v8324_v37  ;;  %v8328_v2 = vpop.f32.mrf.mxu0 }
 0x27d   : > { %1931 = vst.msk [vmem:[#allocation3 + $0x120] sm:$0xf] %vm1898_vm8, %v1747_v22  ;;  %v1314_v11 = vrot.slane %v1242_v49, 7  ;;  %v2039_v19 = vrot.slane %v1242_v49, 1  ;;  %v1606_v62 = vpack.c.bf16 %v1242_v49, %v1242_v49  ;;  %v9436_v22 = vrot.slane %v7987_v59, 7 }
 0x27e   : > { %9433 = vst [vmem:[#allocation42_spill] sm:$0xff] %v8328_v2  ;;  %v5248_v59 = vld [vmem:[#allocation3 + $0xf0] sm:$0xf] }
 0x27f   : > { %1537 = vst.msk [vmem:[#allocation3 + $0x258] sm:$0xf] %vm1465_vm4, %v1464_v48  ;;  %v2047_v61 = vsel %vm2043_vm5, %v9434_v18, %v2039_v19  ;;  %v8337_v39 = vpop.f32.mrf.mxu3  ;;  %v1324_v48 = vsel %vm1320_vm6, %v9436_v22, %v1314_v11 }
 0x280   : > { %9435 = vst [vmem:[#allocation43_spill] sm:$0xff] %v8337_v39  ;;  %v2183_v49 = vpack.c.bf16 %v2047_v61, %v2047_v61  ;;  %v1461_v37 = vpack.c.bf16 %v1324_v48, %v1324_v48  ;;  %v6081_v39 = vld [vmem:[#allocation3 + $0x224] sm:$0xf] }
 0x281   : > { %1822 = vrot.lane.b32.xlu1 %v1608_v7, %s6302_s12  ;;  %1818 = vrot.lane.b32.xlu2 %v1606_v62, %s6302_s12  ;;  %v8348_v18 = vpop.f32.mrf.mxu1  ;;  %v5405_v23 = vor.u32 %v6081_v39, %v5402_v52  ;;  %v6044_v7 = vld [vmem:[#allocation3 + $0xf4] sm:$0xf0]  ;;  %v6185_v52 = vld [vmem:[%s6385_s14 + $0xc0] sm:$0xff] }
 0x282   : > { %1814 = vrot.lane.b32.xlu0 %v1604_v46, %s6302_s12  ;;  %2255 = vst.msk [vmem:[#allocation3 + $0x23c] sm:$0xf] %vm1465_vm4, %v2183_v49  ;;  %v1162_v38 = vpop.permute.xlu1 %1161  ;;  %v5249_v49 = vor.u32 %v6044_v7, %v5248_v59  ;;  %4350 = vmatpush.bf16.msrb.mxu1 %v6185_v52  ;;  %v9441_v59 = vrot.slane %v8289_v15, 7 }
 0x283   : > { %v8351_v43 = vpop.f32.mrf.mxu2  ;;  %v1243_v22 = vmul.f32 %v1162_v38, %v739_v29  ;;  %v1753_v61 = vpop.permute.xlu2 %1752  ;;  %1534 = vst.msk [vmem:[#allocation3 + $0x240] sm:$0xf] %vm1465_vm4, %v1461_v37 }
 0x284   : > { %9437 = vst [vmem:[#allocation44_spill] sm:$0xff] %v8351_v43  ;;  %v8355_v62 = vpop.f32.mrf.mxu0  ;;  %v9439_v43 = vrot.slane %v8289_v15, 1 }
 0x285   : > { %1934 = vst.msk [vmem:[#allocation3 + $0x138] sm:$0xf] %vm1898_vm8, %v1753_v61  ;;  %5510 = vmatmul.msk.bf16.gmra.mxu1 %vm2781_vm7, %v5405_v23  ;;  %5612 = vmatmul.msk.bf16.gmra.mxu3 %vm2781_vm7, %v5405_v23  ;;  %v1315_v46 = vrot.slane %v1243_v22, 7  ;;  %v2040_v48 = vrot.slane %v1243_v22, 1  ;;  %v1607_v39 = vpack.c.bf16 %v1243_v22, %v1243_v22  ;;  %v1609_v23 = vpack.c.bf16 %v6969_v40, %v6969_v40 }
 0x286   : > { %9438 = vst [vmem:[#allocation45_spill] sm:$0xff] %v8355_v62 }
 0x287   : > { %v2045_v29 = vsel %vm2043_vm5, %v2040_v48, %v9439_v43  ;;  %v2046_v37 = vsel %vm2043_vm5, %v2039_v19, %v2040_v48  ;;  %v8366_v38 = vpop.f32.mrf.mxu3  ;;  %v1322_v22 = vsel %vm1320_vm6, %v1315_v46, %v9441_v59  ;;  %v1323_v19 = vsel %vm1320_vm6, %v1314_v11, %v1315_v46  ;;  %v6083_v46 = vld [vmem:[#allocation3 + $0x234] sm:$0xf] }
 0x288   : > { %2963 = vmatmul.bf16.gmra.mxu0 %v5249_v49  ;;  %9440 = vst [vmem:[#allocation46_spill] sm:$0xff] %v8366_v38  ;;  %v2184_v61 = vpack.c.bf16 %v2046_v37, %v2046_v37  ;;  %v2185_v57 = vpack.c.bf16 %v2045_v29, %v2045_v29  ;;  %3447 = vmatmul.bf16.gmra.mxu2 %v5249_v49 }
 0x289   : > { %1824 = vrot.lane.b32.xlu2 %v1609_v23, %s6302_s12  ;;  %v8376_v43 = vpop.f32.mrf.mxu1  ;;  %v1463_v48 = vpack.c.bf16 %v1322_v22, %v1322_v22  ;;  %v1741_v49 = vpop.permute.xlu0 %1740  ;;  %v5410_v11 = vld [vmem:[#allocation3 + $0x238] sm:$0xf0] }
 0x28a   : > { %1820 = vrot.lane.b32.xlu0 %v1607_v39, %s6302_s12  ;;  %2256 = vst.msk [vmem:[#allocation3 + $0x244] sm:$0xf] %vm1465_vm4, %v2184_v61  ;;  %v1462_v39 = vpack.c.bf16 %v1323_v19, %v1323_v19  ;;  %v5413_v37 = vor.u32 %v6083_v46, %v5410_v11  ;;  %v5256_v19 = vld [vmem:[#allocation3 + $0x100] sm:$0xf] }
 0x28b   : > { %v1745_v40 = vpop.permute.xlu1 %1744  ;;  %2257 = vst.msk [vmem:[#allocation3 + $0x24c] sm:$0xf] %vm1465_vm4, %v2185_v57  ;;  %v8382_v7 = vpop.f32.mrf.mxu2 }
 0x28c   : > { %9442 = vst [vmem:[#allocation47_spill] sm:$0xff] %v8382_v7  ;;  %v1759_v15 = vpop.permute.xlu2 %1758  ;;  %v8385_v52 = vpop.f32.mrf.mxu0 }
 0x28d   : > { %1930 = vst.msk [vmem:[#allocation3 + $0x118] sm:$0xf] %vm1898_vm8, %v1745_v40 }
 0x28e   : > { %9443 = vst [vmem:[#allocation48_spill] sm:$0xff] %v8385_v52 }
 0x28f   : > { %1937 = vst.msk [vmem:[#allocation3 + $0x150] sm:$0xf] %vm1898_vm8, %v1759_v15  ;;  %v8389_v27 = vpop.f32.mrf.mxu3 }
 0x290   : > { %1928 = vst.msk [vmem:[#allocation3 + $0x108] sm:$0xf] %vm1898_vm8, %v1741_v49 }
 0x291   : > { %9444 = vst [vmem:[#allocation49_spill] sm:$0xff] %v8389_v27  ;;  %v8393_v57 = vpop.f32.mrf.mxu1  ;;  %v1743_v59 = vpop.permute.xlu0 %1742 }
 0x292   : > { %1536 = vst.msk [vmem:[#allocation3 + $0x250] sm:$0xf] %vm1465_vm4, %v1463_v48 }
 0x293   : > { %1535 = vst.msk [vmem:[#allocation3 + $0x248] sm:$0xf] %vm1465_vm4, %v1462_v39  ;;  %v1751_v29 = vpop.permute.xlu1 %1750  ;;  %v8395_v23 = vpop.f32.mrf.mxu2 }
 0x294   : > { %9445 = vst [vmem:[#allocation50_spill] sm:$0xff] %v8395_v23  ;;  %v1765_v61 = vpop.permute.xlu2 %1764 }
 0x295   : > { %1933 = vst.msk [vmem:[#allocation3 + $0x130] sm:$0xf] %vm1898_vm8, %v1751_v29  ;;  %v8399_v22 = vpop.f32.mrf.mxu0  ;;  %5511 = vmatmul.msk.bf16.gmra.mxu1 %vm2781_vm7, %v5413_v37  ;;  %5613 = vmatmul.msk.bf16.gmra.mxu3 %vm2781_vm7, %v5413_v37 }
 0x296   : > { %1940 = vst.msk [vmem:[#allocation3 + $0x168] sm:$0xf] %vm1898_vm8, %v1765_v61 }
 0x297   : > { %9446 = vst [vmem:[#allocation51_spill] sm:$0xff] %v8399_v22  ;;  %v6046_v40 = vld [vmem:[#allocation3 + $0x104] sm:$0xf0]  ;;  %v8404_v48 = vpop.f32.mrf.mxu3 }
 0x298   : > { %1929 = vst.msk [vmem:[#allocation3 + $0x110] sm:$0xf] %vm1898_vm8, %v1743_v59  ;;  %v5257_v15 = vor.u32 %v6046_v40, %v5256_v19  ;;  %v6097_v59 = vld [vmem:[#allocation3 + $0x244] sm:$0xf]  ;;  %v5418_v19 = vld [vmem:[#allocation3 + $0x248] sm:$0xf0] }
 0x299   : > { %9447 = vst [vmem:[#allocation52_spill] sm:$0xff] %v8404_v48  ;;  %v8406_v49 = vpop.f32.mrf.mxu1  ;;  %v1749_v29 = vpop.permute.xlu0 %1748  ;;  %v6113_v40 = vld [vmem:[#allocation3 + $0x44] sm:$0xf]  ;;  %v5642_v48 = vld [vmem:[#allocation3 + $0x48] sm:$0xf0] }
 0x29a   : > { %2968 = vmatmul.bf16.gmra.mxu0 %v5257_v15  ;;  %3452 = vmatmul.bf16.gmra.mxu2 %v5257_v15  ;;  %1932 = vst.msk [vmem:[#allocation3 + $0x128] sm:$0xf] %vm1898_vm8, %v1749_v29  ;;  %v5645_v27 = vor.u32 %v6113_v40, %v5642_v48 }
 0x29b   : > { %v1757_v39 = vpop.permute.xlu1 %1756  ;;  %v8408_v11 = vpop.f32.mrf.mxu2 }
 0x29c   : > { %9448 = vst [vmem:[#allocation53_spill] sm:$0xff] %v8408_v11  ;;  %v1771_v46 = vpop.permute.xlu2 %1770  ;;  %v5421_v11 = vor.u32 %v6097_v59, %v5418_v19  ;;  %v5280_v17 = vld [vmem:[#allocation3 + $0x130] sm:$0xf] }
 0x29d   : > { %1936 = vst.msk [vmem:[#allocation3 + $0x148] sm:$0xf] %vm1898_vm8, %v1757_v39  ;;  %v8412_v37 = vpop.f32.mrf.mxu0 }
 0x29e   : > { %1943 = vst.msk [vmem:[#allocation3 + $0x180] sm:$0xf] %vm1898_vm8, %v1771_v46 }
 0x29f   : > { %9449 = vst [vmem:[#allocation54_spill] sm:$0xff] %v8412_v37  ;;  %v8415_v61 = vpop.f32.mrf.mxu3  ;;  %v5264_v7 = vld [vmem:[#allocation3 + $0x110] sm:$0xf] }
 0x2a0   : > { %9450 = vst [vmem:[#allocation55_spill] sm:$0xff] %v8415_v61  ;;  %v6048_v61 = vld [vmem:[#allocation3 + $0x114] sm:$0xf0] }
 0x2a1   : > { %v8417_v15 = vpop.f32.mrf.mxu1  ;;  %v1755_v29 = vpop.permute.xlu0 %1754  ;;  %v5265_v59 = vor.u32 %v6048_v61, %v5264_v7  ;;  %v6099_v61 = vld [vmem:[#allocation3 + $0x254] sm:$0xf]  ;;  %v6050_v22 = vld [vmem:[#allocation3 + $0x124] sm:$0xf0] }
 0x2a2   : > { %1935 = vst.msk [vmem:[#allocation3 + $0x140] sm:$0xf] %vm1898_vm8, %v1755_v29  ;;  %v6115_v29 = vld [vmem:[#allocation3 + $0x54] sm:$0xf] }
 0x2a3   : > { %v1763_v23 = vpop.permute.xlu1 %1762  ;;  %v8419_v39 = vpop.f32.mrf.mxu2 }
 0x2a4   : > { %9451 = vst [vmem:[#allocation56_spill] sm:$0xff] %v8419_v39  ;;  %v1777_v46 = vpop.permute.xlu2 %1776  ;;  %v5426_v39 = vld [vmem:[#allocation3 + $0x258] sm:$0xf0] }
 0x2a5   : > { %1939 = vst.msk [vmem:[#allocation3 + $0x160] sm:$0xf] %vm1898_vm8, %v1763_v23  ;;  %v8423_v38 = vpop.f32.mrf.mxu0  ;;  %5512 = vmatmul.msk.bf16.gmra.mxu1 %vm2781_vm7, %v5421_v11  ;;  %5974 = vmatmul.msk.bf16.vlgmr.msrb.gmra.mxu3 %vm2781_vm7, %v5645_v27 }
 0x2a6   : > { %1946 = vst.msk [vmem:[#allocation3 + $0x198] sm:$0xf] %vm1898_vm8, %v1777_v46 }
 0x2a7   : > { %9452 = vst [vmem:[#allocation57_spill] sm:$0xff] %v8423_v38  ;;  %v8428_v48 = vpop.f32.mrf.mxu3 }
 0x2a8   : > { %9453 = vst [vmem:[#allocation58_spill] sm:$0xff] %v8428_v48 }
 0x2a9   : > { %v8430_v23 = vpop.f32.mrf.mxu1  ;;  %v5288_v33 = vld [vmem:[#allocation3 + $0x140] sm:$0xf] }
 0x2aa   : > { %2973 = vmatmul.bf16.gmra.mxu0 %v5265_v59  ;;  %3457 = vmatmul.bf16.gmra.mxu2 %v5265_v59  ;;  %v5650_v59 = vld [vmem:[#allocation3 + $0x58] sm:$0xf0] }
 0x2ab   : > { %v1769_v19 = vpop.permute.xlu1 %1768  ;;  %v8432_v40 = vpop.f32.mrf.mxu2  ;;  %v5653_v37 = vor.u32 %v6115_v29, %v5650_v59 }
 0x2ac   : > { %9454 = vst [vmem:[#allocation59_spill] sm:$0xff] %v8432_v40  ;;  %v1783_v46 = vpop.permute.xlu2 %1782  ;;  %v1761_v11 = vpop.permute.xlu0 %1760  ;;  %v5429_v40 = vor.u32 %v6099_v61, %v5426_v39 }
 0x2ad   : > { %1942 = vst.msk [vmem:[#allocation3 + $0x178] sm:$0xf] %vm1898_vm8, %v1769_v19  ;;  %v8436_v27 = vpop.f32.mrf.mxu0 }
 0x2ae   : > { %1949 = vst.msk [vmem:[#allocation3 + $0x1b0] sm:$0xf] %vm1898_vm8, %v1783_v46 }
 0x2af   : > { %9455 = vst [vmem:[#allocation60_spill] sm:$0xff] %v8436_v27  ;;  %v8439_v7 = vpop.f32.mrf.mxu3 }
 0x2b0   : > { %1938 = vst.msk [vmem:[#allocation3 + $0x158] sm:$0xf] %vm1898_vm8, %v1761_v11 }
 0x2b1   : > { %9456 = vst [vmem:[#allocation61_spill] sm:$0xff] %v8439_v7  ;;  %v8441_v48 = vpop.f32.mrf.mxu1  ;;  %v5272_v7 = vld [vmem:[#allocation3 + $0x120] sm:$0xf] }
 0x2b2   : > { %v5273_v39 = vor.u32 %v6050_v22, %v5272_v7  ;;  %v6114_v7 = vld [vmem:[#allocation3 + $0x44] sm:$0xf0] }
 0x2b3   : > { %v1775_v38 = vpop.permute.xlu1 %1774  ;;  %v8443_v19 = vpop.f32.mrf.mxu2 }
 0x2b4   : > { %9457 = vst [vmem:[#allocation62_spill] sm:$0xff] %v8443_v19  ;;  %v1789_v46 = vpop.permute.xlu2 %1788  ;;  %v1767_v11 = vpop.permute.xlu0 %1766  ;;  %v5640_v19 = vld [vmem:[#allocation3 + $0x40] sm:$0xf] }
 0x2b5   : > { %1945 = vst.msk [vmem:[#allocation3 + $0x190] sm:$0xf] %vm1898_vm8, %v1775_v38  ;;  %v8447_v27 = vpop.f32.mrf.mxu0  ;;  %5513 = vmatmul.msk.bf16.gmra.mxu1 %vm2781_vm7, %v5429_v40  ;;  %5975 = vmatmul.msk.bf16.gmra.mxu3 %vm2781_vm7, %v5653_v37 }
 0x2b6   : > { %1952 = vst.msk [vmem:[#allocation3 + $0x1c8] sm:$0xf] %vm1898_vm8, %v1789_v46 }
 0x2b7   : > { %9458 = vst [vmem:[#allocation63_spill] sm:$0xff] %v8447_v27  ;;  %v8452_v61 = vpop.f32.mrf.mxu3  ;;  %v6056_v24 = vld [vmem:[#allocation3 + $0x154] sm:$0xf0] }
 0x2b8   : > { %1941 = vst.msk [vmem:[#allocation3 + $0x170] sm:$0xf] %vm1898_vm8, %v1767_v11  ;;  %v6117_v11 = vld [vmem:[#allocation3 + $0x64] sm:$0xf] }
 0x2b9   : > { %9459 = vst [vmem:[#allocation64_spill] sm:$0xff] %v8452_v61  ;;  %v8454_v38 = vpop.f32.mrf.mxu1 }
 0x2ba   : > { %2978 = vmatmul.bf16.gmra.mxu0 %v5273_v39  ;;  %3462 = vmatmul.bf16.gmra.mxu2 %v5273_v39  ;;  %v5658_v39 = vld [vmem:[#allocation3 + $0x68] sm:$0xf0] }
 0x2bb   : > { %v1781_v29 = vpop.permute.xlu1 %1780  ;;  %v8456_v59 = vpop.f32.mrf.mxu2  ;;  %v5661_v52 = vor.u32 %v6117_v11, %v5658_v39 }
 0x2bc   : > { %9460 = vst [vmem:[#allocation65_spill] sm:$0xff] %v8456_v59  ;;  %v1795_v46 = vpop.permute.xlu2 %1794  ;;  %v1773_v40 = vpop.permute.xlu0 %1772  ;;  %v5641_v59 = vor.u32 %v6114_v7, %v5640_v19 }
 0x2bd   : > { %1948 = vst.msk [vmem:[#allocation3 + $0x1a8] sm:$0xf] %vm1898_vm8, %v1781_v29  ;;  %v8460_v37 = vpop.f32.mrf.mxu0 }
 0x2be   : > { %1955 = vst.msk [vmem:[#allocation3 + $0x1e0] sm:$0xf] %vm1898_vm8, %v1795_v46 }
 0x2bf   : > { %9461 = vst [vmem:[#allocation66_spill] sm:$0xff] %v8460_v37  ;;  %v8463_v22 = vpop.f32.mrf.mxu3 }
 0x2c0   : > { %1944 = vst.msk [vmem:[#allocation3 + $0x188] sm:$0xf] %vm1898_vm8, %v1773_v40 }
 0x2c1   : > { %9462 = vst [vmem:[#allocation67_spill] sm:$0xff] %v8463_v22  ;;  %v8465_v61 = vpop.f32.mrf.mxu1  ;;  %v6052_v22 = vld [vmem:[#allocation3 + $0x134] sm:$0xf0] }
 0x2c2   : > { %v5281_v62 = vor.u32 %v6052_v22, %v5280_v17  ;;  %v6116_v22 = vld [vmem:[#allocation3 + $0x54] sm:$0xf0] }
 0x2c3   : > { %v1787_v27 = vpop.permute.xlu1 %1786  ;;  %v8467_v29 = vpop.f32.mrf.mxu2 }
 0x2c4   : > { %9463 = vst [vmem:[#allocation68_spill] sm:$0xff] %v8467_v29  ;;  %v1801_v46 = vpop.permute.xlu2 %1800  ;;  %v1779_v40 = vpop.permute.xlu0 %1778 }
 0x2c5   : > { %1951 = vst.msk [vmem:[#allocation3 + $0x1c0] sm:$0xf] %vm1898_vm8, %v1787_v27  ;;  %v8471_v37 = vpop.f32.mrf.mxu0  ;;  %4351 = vmatmul.bf16.vlgmr.msrb.gmra.mxu1 %v5641_v59  ;;  %5976 = vmatmul.msk.bf16.gmra.mxu3 %vm2781_vm7, %v5661_v52 }
 0x2c6   : > { %1958 = vst.msk [vmem:[#allocation3 + $0x1f8] sm:$0xf] %vm1898_vm8, %v1801_v46  ;;  %v6119_v46 = vld [vmem:[#allocation3 + $0x74] sm:$0xf] }
 0x2c7   : > { %9464 = vst [vmem:[#allocation69_spill] sm:$0xff] %v8471_v37  ;;  %v8475_v19 = vpop.f32.mrf.mxu3 }
 0x2c8   : > { %1947 = vst.msk [vmem:[#allocation3 + $0x1a0] sm:$0xf] %vm1898_vm8, %v1779_v40 }
 0x2c9   : > { %9465 = vst [vmem:[#allocation70_spill] sm:$0xff] %v8475_v19  ;;  %v8477_v7 = vpop.f32.mrf.mxu1  ;;  %v5648_v19 = vld [vmem:[#allocation3 + $0x50] sm:$0xf] }
 0x2ca   : > { %2983 = vmatmul.bf16.gmra.mxu0 %v5281_v62  ;;  %3467 = vmatmul.bf16.gmra.mxu2 %v5281_v62  ;;  %v5666_v62 = vld [vmem:[#allocation3 + $0x78] sm:$0xf0] }
 0x2cb   : > { %v1793_v27 = vpop.permute.xlu1 %1792  ;;  %v8479_v11 = vpop.f32.mrf.mxu2  ;;  %v5669_v37 = vor.u32 %v6119_v46, %v5666_v62 }
 0x2cc   : > { %9466 = vst [vmem:[#allocation71_spill] sm:$0xff] %v8479_v11  ;;  %v1807_v39 = vpop.permute.xlu2 %1806  ;;  %v1785_v59 = vpop.permute.xlu0 %1784  ;;  %v5649_v11 = vor.u32 %v6116_v22, %v5648_v19 }
 0x2cd   : > { %1954 = vst.msk [vmem:[#allocation3 + $0x1d8] sm:$0xf] %vm1898_vm8, %v1793_v27  ;;  %v8483_v52 = vpop.f32.mrf.mxu0 }
 0x2ce   : > { %1961 = vst.msk [vmem:[#allocation3 + $0x210] sm:$0xf] %vm1898_vm8, %v1807_v39 }
 0x2cf   : > { %9467 = vst [vmem:[#allocation72_spill] sm:$0xff] %v8483_v52  ;;  %v8486_v17 = vpop.f32.mrf.mxu3  ;;  %v5336_v53 = vld [vmem:[#allocation3 + $0x1a0] sm:$0xf] }
 0x2d0   : > { %1950 = vst.msk [vmem:[#allocation3 + $0x1b8] sm:$0xf] %vm1898_vm8, %v1785_v59 }
 0x2d1   : > { %9468 = vst [vmem:[#allocation73_spill] sm:$0xff] %v8486_v17  ;;  %v8488_v40 = vpop.f32.mrf.mxu1  ;;  %v6054_v17 = vld [vmem:[#allocation3 + $0x144] sm:$0xf0] }
 0x2d2   : > { %v5289_v2 = vor.u32 %v6054_v17, %v5288_v33  ;;  %v6118_v17 = vld [vmem:[#allocation3 + $0x64] sm:$0xf0] }
 0x2d3   : > { %v1799_v29 = vpop.permute.xlu1 %1798  ;;  %v8490_v27 = vpop.f32.mrf.mxu2 }
 0x2d4   : > { %9469 = vst [vmem:[#allocation74_spill] sm:$0xff] %v8490_v27  ;;  %v1813_v39 = vpop.permute.xlu2 %1812  ;;  %v1791_v59 = vpop.permute.xlu0 %1790 }
 0x2d5   : > { %1957 = vst.msk [vmem:[#allocation3 + $0x1f0] sm:$0xf] %vm1898_vm8, %v1799_v29  ;;  %v8494_v52 = vpop.f32.mrf.mxu0  ;;  %4356 = vmatmul.bf16.gmra.mxu1 %v5649_v11  ;;  %5977 = vmatmul.msk.bf16.gmra.mxu3 %vm2781_vm7, %v5669_v37 }
 0x2d6   : > { %1964 = vst.msk [vmem:[#allocation3 + $0x228] sm:$0xf] %vm1898_vm8, %v1813_v39  ;;  %v6121_v39 = vld [vmem:[#allocation3 + $0x84] sm:$0xf] }
 0x2d7   : > { %9470 = vst [vmem:[#allocation75_spill] sm:$0xff] %v8494_v52  ;;  %v8498_v19 = vpop.f32.mrf.mxu3 }
 0x2d8   : > { %1953 = vst.msk [vmem:[#allocation3 + $0x1d0] sm:$0xf] %vm1898_vm8, %v1791_v59 }
 0x2d9   : > { %9471 = vst [vmem:[#allocation76_spill] sm:$0xff] %v8498_v19  ;;  %v8500_v22 = vpop.f32.mrf.mxu1  ;;  %v5656_v19 = vld [vmem:[#allocation3 + $0x60] sm:$0xf] }
 0x2da   : > { %2988 = vmatmul.bf16.gmra.mxu0 %v5289_v2  ;;  %3472 = vmatmul.bf16.gmra.mxu2 %v5289_v2  ;;  %v5674_v2 = vld [vmem:[#allocation3 + $0x88] sm:$0xf0] }
 0x2db   : > { %v1805_v29 = vpop.permute.xlu1 %1804  ;;  %v8502_v46 = vpop.f32.mrf.mxu2  ;;  %v5677_v52 = vor.u32 %v6121_v39, %v5674_v2 }
 0x2dc   : > { %9472 = vst [vmem:[#allocation77_spill] sm:$0xff] %v8502_v46  ;;  %v1819_v62 = vpop.permute.xlu2 %1818  ;;  %v1797_v11 = vpop.permute.xlu0 %1796  ;;  %v5657_v46 = vor.u32 %v6118_v17, %v5656_v19 }
 0x2dd   : > { %1960 = vst.msk [vmem:[#allocation3 + $0x208] sm:$0xf] %vm1898_vm8, %v1805_v29  ;;  %v8506_v37 = vpop.f32.mrf.mxu0 }
 0x2de   : > { %1967 = vst.msk [vmem:[#allocation3 + $0x240] sm:$0xf] %vm1898_vm8, %v1819_v62 }
 0x2df   : > { %9473 = vst [vmem:[#allocation78_spill] sm:$0xff] %v8506_v37  ;;  %v8509_v33 = vpop.f32.mrf.mxu3 }
 0x2e0   : > { %1956 = vst.msk [vmem:[#allocation3 + $0x1e8] sm:$0xf] %vm1898_vm8, %v1797_v11 }
 0x2e1   : > { %9474 = vst [vmem:[#allocation79_spill] sm:$0xff] %v8509_v33  ;;  %v8511_v59 = vpop.f32.mrf.mxu1  ;;  %v5296_v33 = vld [vmem:[#allocation3 + $0x150] sm:$0xf] }
 0x2e2   : > { %v5297_v5 = vor.u32 %v6056_v24, %v5296_v33  ;;  %v6123_v24 = vld [vmem:[#allocation3 + $0x94] sm:$0xf]  ;;  %v5682_v33 = vld [vmem:[#allocation3 + $0x98] sm:$0xf0] }
 0x2e3   : > { %v1811_v27 = vpop.permute.xlu1 %1810  ;;  %v8513_v29 = vpop.f32.mrf.mxu2 }
 0x2e4   : > { %9475 = vst [vmem:[#allocation80_spill] sm:$0xff] %v8513_v29  ;;  %v1825_v62 = vpop.permute.xlu2 %1824  ;;  %v1803_v11 = vpop.permute.xlu0 %1802 }
 0x2e5   : > { %1963 = vst.msk [vmem:[#allocation3 + $0x220] sm:$0xf] %vm1898_vm8, %v1811_v27  ;;  %v8517_v37 = vpop.f32.mrf.mxu0  ;;  %4361 = vmatmul.bf16.gmra.mxu1 %v5657_v46  ;;  %5978 = vmatmul.msk.bf16.gmra.mxu3 %vm2781_vm7, %v5677_v52  ;;  %v6120_v46 = vld [vmem:[#allocation3 + $0x74] sm:$0xf0] }
 0x2e6   : > { %1970 = vst.msk [vmem:[#allocation3 + $0x258] sm:$0xf] %vm1898_vm8, %v1825_v62 }
 0x2e7   : > { %9476 = vst [vmem:[#allocation81_spill] sm:$0xff] %v8517_v37  ;;  %v8521_v19 = vpop.f32.mrf.mxu3  ;;  %v5685_v37 = vor.u32 %v6123_v24, %v5682_v33 }
 0x2e8   : > { %1959 = vst.msk [vmem:[#allocation3 + $0x200] sm:$0xf] %vm1898_vm8, %v1803_v11 }
 0x2e9   : > { %9477 = vst [vmem:[#allocation82_spill] sm:$0xff] %v8521_v19  ;;  %v8523_v17 = vpop.f32.mrf.mxu1 }
 0x2ea   : > { %2993 = vmatmul.bf16.gmra.mxu0 %v5297_v5  ;;  %3477 = vmatmul.bf16.gmra.mxu2 %v5297_v5  ;;  %v5664_v5 = vld [vmem:[#allocation3 + $0x70] sm:$0xf] }
 0x2eb   : > { %v1817_v27 = vpop.permute.xlu1 %1816  ;;  %v8525_v39 = vpop.f32.mrf.mxu2  ;;  %v5665_v29 = vor.u32 %v6120_v46, %v5664_v5  ;;  %v6125_v5 = vld [vmem:[#allocation3 + $0xa4] sm:$0xf] }
 0x2ec   : > { %9478 = vst [vmem:[#allocation83_spill] sm:$0xff] %v8525_v39  ;;  %v1809_v2 = vpop.permute.xlu0 %1808 }
 0x2ed   : > { %1966 = vst.msk [vmem:[#allocation3 + $0x238] sm:$0xf] %vm1898_vm8, %v1817_v27  ;;  %v8528_v62 = vpop.f32.mrf.mxu0  ;;  %v5304_v27 = vld [vmem:[#allocation3 + $0x160] sm:$0xf] }
 0x2ee   : > { %9479 = vst [vmem:[#allocation84_spill] sm:$0xff] %v8528_v62 }
 0x2ef   : > { %1962 = vst.msk [vmem:[#allocation3 + $0x218] sm:$0xf] %vm1898_vm8, %v1809_v2  ;;  %v8531_v52 = vpop.f32.mrf.mxu3  ;;  %v6058_v2 = vld [vmem:[#allocation3 + $0x164] sm:$0xf0] }
 0x2f0   : > { %9480 = vst [vmem:[#allocation85_spill] sm:$0xff] %v8531_v52  ;;  %v5305_v52 = vor.u32 %v6058_v2, %v5304_v27  ;;  %v5672_v27 = vld [vmem:[#allocation3 + $0x80] sm:$0xf] }
 0x2f2   : > { %v8533_v11 = vpop.f32.mrf.mxu1 }
 0x2f3   : > { %v1823_v19 = vpop.permute.xlu1 %1822  ;;  %v8535_v28 = vpop.f32.mrf.mxu2 }
 0x2f4   : > { %9481 = vst [vmem:[#allocation86_spill] sm:$0xff] %v8535_v28  ;;  %v1815_v39 = vpop.permute.xlu0 %1814 }
 0x2f5   : > { %1969 = vst.msk [vmem:[#allocation3 + $0x250] sm:$0xf] %vm1898_vm8, %v1823_v19  ;;  %v8538_v62 = vpop.f32.mrf.mxu0  ;;  %4366 = vmatmul.bf16.gmra.mxu1 %v5665_v29  ;;  %5979 = vmatmul.msk.bf16.gmra.mxu3 %vm2781_vm7, %v5685_v37  ;;  %v6122_v37 = vld [vmem:[#allocation3 + $0x84] sm:$0xf0] }
 0x2f6   : > { %9482 = vst [vmem:[#allocation87_spill] sm:$0xff] %v8538_v62  ;;  %v5673_v2 = vor.u32 %v6122_v37, %v5672_v27  ;;  %v5312_v62 = vld [vmem:[#allocation3 + $0x170] sm:$0xf]  ;;  %v6127_v27 = vld [vmem:[#allocation3 + $0xb4] sm:$0xf] }
 0x2f7   : > { %1965 = vst.msk [vmem:[#allocation3 + $0x230] sm:$0xf] %vm1898_vm8, %v1815_v39  ;;  %v5690_v39 = vld [vmem:[#allocation3 + $0xa8] sm:$0xf0] }
 0x2f8   : > { %v8542_v3 = vpop.f32.mrf.mxu3 }
 0x2f9   : > { %9483 = vst [vmem:[#allocation88_spill] sm:$0xff] %v8542_v3  ;;  %v5693_v3 = vor.u32 %v6125_v5, %v5690_v39  ;;  %v6124_v39 = vld [vmem:[#allocation3 + $0x94] sm:$0xf0] }
 0x2fa   : > { %2998 = vmatmul.bf16.gmra.mxu0 %v5305_v52  ;;  %3482 = vmatmul.bf16.gmra.mxu2 %v5305_v52  ;;  %v8544_v46 = vpop.f32.mrf.mxu1 }
 0x2fb   : > { %v8546_v24 = vpop.f32.mrf.mxu2 }
 0x2fc   : > { %9484 = vst [vmem:[#allocation89_spill] sm:$0xff] %v8546_v24  ;;  %v1821_v19 = vpop.permute.xlu0 %1820  ;;  %v6060_v24 = vld [vmem:[#allocation3 + $0x174] sm:$0xf0] }
 0x2fd   : > { %v8548_v33 = vpop.f32.mrf.mxu0  ;;  %1968 = vst.msk [vmem:[#allocation3 + $0x248] sm:$0xf] %vm1898_vm8, %v1821_v19  ;;  %v5313_v19 = vor.u32 %v6060_v24, %v5312_v62 }
 0x2fe   : > { %9485 = vst [vmem:[#allocation90_spill] sm:$0xff] %v8548_v33 }
 0x300   : > { %v8551_v29 = vpop.f32.mrf.mxu3 }
 0x301   : > { %9486 = vst [vmem:[#allocation91_spill] sm:$0xff] %v8551_v29 }
 0x302   : > { %v8553_v28 = vpop.f32.mrf.mxu1 }
 0x303   : > { %v8555_v52 = vpop.f32.mrf.mxu2 }
 0x304   : > { %9487 = vst [vmem:[#allocation92_spill] sm:$0xff] %v8555_v52  ;;  %v5698_v52 = vld [vmem:[#allocation3 + $0xb8] sm:$0xf0] }
 0x305   : > { %v8557_v34 = vpop.f32.mrf.mxu0  ;;  %4371 = vmatmul.bf16.gmra.mxu1 %v5673_v2  ;;  %5980 = vmatmul.msk.bf16.gmra.mxu3 %vm2781_vm7, %v5693_v3  ;;  %v5680_v3 = vld [vmem:[#allocation3 + $0x90] sm:$0xf]  ;;  %v5701_v62 = vor.u32 %v6127_v27, %v5698_v52  ;;  %v6126_v27 = vld [vmem:[#allocation3 + $0xa4] sm:$0xf0] }
 0x306   : > { %9488 = vst [vmem:[#allocation93_spill] sm:$0xff] %v8557_v34  ;;  %v5681_v34 = vor.u32 %v6124_v39, %v5680_v3  ;;  %v5706_v3 = vld [vmem:[#allocation3 + $0xc8] sm:$0xf0] }
 0x308   : > { %v8560_v33 = vpop.f32.mrf.mxu3 }
 0x309   : > { %9489 = vst [vmem:[#allocation94_spill] sm:$0xff] %v8560_v33  ;;  %v6062_v33 = vld [vmem:[#allocation3 + $0x184] sm:$0xf0] }
 0x30a   : > { %3003 = vmatmul.bf16.gmra.mxu0 %v5313_v19  ;;  %3487 = vmatmul.bf16.gmra.mxu2 %v5313_v19  ;;  %v8562_v29 = vpop.f32.mrf.mxu1 }
 0x30b   : > { %v8564_v6 = vpop.f32.mrf.mxu2 }
 0x30c   : > { %9490 = vst [vmem:[#allocation95_spill] sm:$0xff] %v8564_v6  ;;  %v5320_v6 = vld [vmem:[#allocation3 + $0x180] sm:$0xf] }
 0x30d   : > { %v8566_v37 = vpop.f32.mrf.mxu0 }
 0x30e   : > { %9491 = vst [vmem:[#allocation96_spill] sm:$0xff] %v8566_v37  ;;  %v5321_v37 = vor.u32 %v6062_v33, %v5320_v6 }
 0x310   : > { %v8568_v5 = vpop.f32.mrf.mxu3 }
 0x311   : > { %9492 = vst [vmem:[#allocation97_spill] sm:$0xff] %v8568_v5 }
 0x312   : > { %v8570_v2 = vpop.f32.mrf.mxu1 }
 0x313   : > { %v8572_v24 = vpop.f32.mrf.mxu2 }
 0x314   : > { %9493 = vst [vmem:[#allocation98_spill] sm:$0xff] %v8572_v24  ;;  %v5688_v24 = vld [vmem:[#allocation3 + $0xa0] sm:$0xf] }
 0x315   : > { %4376 = vmatmul.bf16.gmra.mxu1 %v5681_v34  ;;  %5981 = vmatmul.msk.bf16.gmra.mxu3 %vm2781_vm7, %v5701_v62  ;;  %v6129_v34 = vld [vmem:[#allocation3 + $0xc4] sm:$0xf] }
 0x316   : > { %v5709_v6 = vor.u32 %v6129_v34, %v5706_v3  ;;  %v6131_v34 = vld [vmem:[#allocation3 + $0xd4] sm:$0xf]  ;;  %v5714_v3 = vld [vmem:[#allocation3 + $0xd8] sm:$0xf0] }
 0x317   : > { %v8575_v19 = vpop.f32.mrf.mxu0  ;;  %v5717_v50 = vor.u32 %v6131_v34, %v5714_v3  ;;  %v6133_v34 = vld [vmem:[#allocation3 + $0xe4] sm:$0xf]  ;;  %v5722_v3 = vld [vmem:[#allocation3 + $0xe8] sm:$0xf0] }
 0x318   : > { %9494 = vst [vmem:[#allocation99_spill] sm:$0xff] %v8575_v19  ;;  %v8577_v13 = vpop.f32.mrf.mxu3  ;;  %v5689_v19 = vor.u32 %v6126_v27, %v5688_v24  ;;  %v6128_v27 = vld [vmem:[#allocation3 + $0xb4] sm:$0xf0] }
 0x319   : > { %9495 = vst [vmem:[#allocation100_spill] sm:$0xff] %v8577_v13  ;;  %v5328_v13 = vld [vmem:[#allocation3 + $0x190] sm:$0xf] }
 0x31a   : > { %3008 = vmatmul.bf16.gmra.mxu0 %v5321_v37  ;;  %3492 = vmatmul.bf16.gmra.mxu2 %v5321_v37  ;;  %v8579_v5 = vpop.f32.mrf.mxu1 }
 0x31d   : > { %v8581_v14 = vpop.f32.mrf.mxu2 }
 0x31e   : > { %9496 = vst [vmem:[#allocation101_spill] sm:$0xff] %v8581_v14  ;;  %v6064_v14 = vld [vmem:[#allocation3 + $0x194] sm:$0xf0] }
 0x31f   : > { %v8583_v39 = vpop.f32.mrf.mxu0 }
 0x320   : > { %9497 = vst [vmem:[#allocation102_spill] sm:$0xff] %v8583_v39  ;;  %v8585_v52 = vpop.f32.mrf.mxu3  ;;  %v5329_v39 = vor.u32 %v6064_v14, %v5328_v13  ;;  %v6066_v13 = vld [vmem:[#allocation3 + $0x1a4] sm:$0xf0] }
 0x321   : > { %9498 = vst [vmem:[#allocation103_spill] sm:$0xff] %v8585_v52 }
 0x322   : > { %v8587_v62 = vpop.f32.mrf.mxu1 }
 0x325   : > { %v8589_v33 = vpop.f32.mrf.mxu2  ;;  %4381 = vmatmul.bf16.gmra.mxu1 %v5689_v19  ;;  %5982 = vmatmul.msk.bf16.gmra.mxu3 %vm2781_vm7, %v5709_v6  ;;  %v5696_v19 = vld [vmem:[#allocation3 + $0xb0] sm:$0xf] }
 0x326   : > { %9499 = vst [vmem:[#allocation104_spill] sm:$0xff] %v8589_v33  ;;  %v5697_v6 = vor.u32 %v6128_v27, %v5696_v19  ;;  %v6130_v27 = vld [vmem:[#allocation3 + $0xc4] sm:$0xf0] }
 0x327   : > { %v8592_v37 = vpop.f32.mrf.mxu0 }
 0x328   : > { %9500 = vst [vmem:[#allocation105_spill] sm:$0xff] %v8592_v37  ;;  %v4541_v41 = vpop.f32.mrf.mxu3 }
 0x32a   : > { %3013 = vmatmul.bf16.gmra.mxu0 %v5329_v39  ;;  %3497 = vmatmul.bf16.gmra.mxu2 %v5329_v39  ;;  %v8594_v52 = vpop.f32.mrf.mxu1  ;;  %v5337_v39 = vor.u32 %v6066_v13, %v5336_v53  ;;  %v6068_v53 = vld [vmem:[#allocation3 + $0x1b4] sm:$0xf0] }
 0x32d   : > { %v3458_v36 = vpop.f32.mrf.mxu2 }
 0x32f   : > { %v8596_v32 = vpop.f32.mrf.mxu0 }
 0x330   : > { %9501 = vst [vmem:[#allocation106_spill] sm:$0xff] %v8596_v32  ;;  %v4543_v24 = vpop.f32.mrf.mxu3 }
 0x332   : > { %v8598_v33 = vpop.f32.mrf.mxu1 }
 0x333   : > { %9502 = vst [vmem:[#allocation107_spill] sm:$0xff] %v8598_v33 }
 0x335   : > { %v3460_v37 = vpop.f32.mrf.mxu2  ;;  %4386 = vmatmul.bf16.gmra.mxu1 %v5697_v6  ;;  %5983 = vmatmul.msk.bf16.gmra.mxu3 %vm2781_vm7, %v5717_v50  ;;  %v5704_v6 = vld [vmem:[#allocation3 + $0xc0] sm:$0xf] }
 0x336   : > { %v5705_v50 = vor.u32 %v6130_v27, %v5704_v6  ;;  %v6132_v6 = vld [vmem:[#allocation3 + $0xd4] sm:$0xf0] }
 0x337   : > { %v8601_v14 = vpop.f32.mrf.mxu0 }
 0x338   : > { %9503 = vst [vmem:[#allocation108_spill] sm:$0xff] %v8601_v14  ;;  %v4546_v16 = vpop.f32.mrf.mxu3  ;;  %v5725_v14 = vor.u32 %v6133_v34, %v5722_v3 }
 0x33a   : > { %3018 = vmatmul.bf16.gmra.mxu0 %v5337_v39  ;;  %3502 = vmatmul.bf16.gmra.mxu2 %v5337_v39  ;;  %v8603_v32 = vpop.f32.mrf.mxu1  ;;  %v5344_v39 = vld [vmem:[#allocation3 + $0x1b0] sm:$0xf] }
 0x33b   : > { %9504 = vst [vmem:[#allocation109_spill] sm:$0xff] %v8603_v32 }
 0x33d   : > { %v3463_v35 = vpop.f32.mrf.mxu2 }
 0x33f   : > { %v8605_v47 = vpop.f32.mrf.mxu0 }
 0x340   : > { %9505 = vst [vmem:[#allocation110_spill] sm:$0xff] %v8605_v47  ;;  %v4548_v55 = vpop.f32.mrf.mxu3  ;;  %v5345_v47 = vor.u32 %v6068_v53, %v5344_v39  ;;  %v5712_v53 = vld [vmem:[#allocation3 + $0xd0] sm:$0xf]  ;;  %v5352_v39 = vld [vmem:[#allocation3 + $0x1c0] sm:$0xf] }
 0x342   : > { %v4352_v19 = vpop.f32.mrf.mxu1 }
 0x343   : > { %v8607_v26 = vadd.f32 %v4541_v41, %v4352_v19 }
 0x345   : > { %9506 = vst [vmem:[#allocation111_spill] sm:$0xff] %v8607_v26  ;;  %v3465_v25 = vpop.f32.mrf.mxu2  ;;  %4391 = vmatmul.bf16.gmra.mxu1 %v5705_v50  ;;  %5984 = vmatmul.msk.bf16.gmra.mxu3 %vm2781_vm7, %v5725_v14  ;;  %v6135_v14 = vld [vmem:[#allocation3 + $0xf4] sm:$0xf]  ;;  %v5730_v50 = vld [vmem:[#allocation3 + $0xf8] sm:$0xf0] }
 0x347   : > { %v2984_v13 = vpop.f32.mrf.mxu0 }
 0x348   : > { %v3174_v0 = vadd.f32 %v7736_v44, %v2984_v13  ;;  %v4551_v56 = vpop.f32.mrf.mxu3 }
 0x34a   : > { %v8611_v32 = vadd.f32 %v3458_v36, %v3174_v0  ;;  %3023 = vmatmul.bf16.gmra.mxu0 %v5345_v47  ;;  %3507 = vmatmul.bf16.gmra.mxu2 %v5345_v47  ;;  %v4354_v45 = vpop.f32.mrf.mxu1  ;;  %v5713_v0 = vor.u32 %v6132_v6, %v5712_v53  ;;  %v5733_v36 = vor.u32 %v6135_v14, %v5730_v50  ;;  %v6137_v53 = vld [vmem:[#allocation3 + $0x104] sm:$0xf] }
 0x34b   : > { %v8613_v41 = vadd.f32 %v4543_v24, %v4354_v45  ;;  %v6070_v24 = vld [vmem:[#allocation3 + $0x1c4] sm:$0xf0] }
 0x34d   : > { %9507 = vst [vmem:[#allocation112_spill] sm:$0xff] %v8613_v41  ;;  %v3468_v27 = vpop.f32.mrf.mxu2 }
 0x34f   : > { %v2986_v34 = vpop.f32.mrf.mxu0 }
 0x350   : > { %v3176_v3 = vadd.f32 %v7773_v51, %v2986_v34  ;;  %v4553_v19 = vpop.f32.mrf.mxu3  ;;  %v5353_v34 = vor.u32 %v6070_v24, %v5352_v39  ;;  %v5720_v39 = vld [vmem:[#allocation3 + $0xe0] sm:$0xf] }
 0x352   : > { %v8616_v26 = vadd.f32 %v3460_v37, %v3176_v3  ;;  %v4357_v44 = vpop.f32.mrf.mxu1 }
 0x353   : > { %v8618_v13 = vadd.f32 %v4546_v16, %v4357_v44  ;;  %v6134_v44 = vld [vmem:[#allocation3 + $0xe4] sm:$0xf0] }
 0x355   : > { %9508 = vst [vmem:[#allocation113_spill] sm:$0xff] %v8618_v13  ;;  %v3470_v47 = vpop.f32.mrf.mxu2  ;;  %4396 = vmatmul.bf16.gmra.mxu1 %v5713_v0  ;;  %5985 = vmatmul.msk.bf16.gmra.mxu3 %vm2781_vm7, %v5733_v36  ;;  %v5738_v0 = vld [vmem:[#allocation3 + $0x108] sm:$0xf0] }
 0x356   : > { %v5741_v24 = vor.u32 %v6137_v53, %v5738_v0 }
 0x357   : > { %v2989_v45 = vpop.f32.mrf.mxu0 }
 0x358   : > { %v3179_v51 = vadd.f32 %v7834_v12, %v2989_v45  ;;  %v4556_v41 = vpop.f32.mrf.mxu3 }
 0x35a   : > { %v8622_v33 = vadd.f32 %v3463_v35, %v3179_v51  ;;  %3028 = vmatmul.bf16.gmra.mxu0 %v5353_v34  ;;  %3512 = vmatmul.bf16.gmra.mxu2 %v5353_v34  ;;  %v4359_v37 = vpop.f32.mrf.mxu1  ;;  %v5721_v35 = vor.u32 %v6134_v44, %v5720_v39  ;;  %v5360_v34 = vld [vmem:[#allocation3 + $0x1d0] sm:$0xf]  ;;  %v6139_v39 = vld [vmem:[#allocation3 + $0x114] sm:$0xf] }
 0x35b   : > { %v8624_v16 = vadd.f32 %v4548_v55, %v4359_v37  ;;  %v6072_v37 = vld [vmem:[#allocation3 + $0x1d4] sm:$0xf0] }
 0x35d   : > { %9509 = vst [vmem:[#allocation114_spill] sm:$0xff] %v8624_v16  ;;  %v3473_v3 = vpop.f32.mrf.mxu2 }
 0x35f   : > { %v2991_v6 = vpop.f32.mrf.mxu0 }
 0x360   : > { %v3181_v14 = vadd.f32 %v7894_v20, %v2991_v6  ;;  %v4558_v50 = vpop.f32.mrf.mxu3  ;;  %v5361_v6 = vor.u32 %v6072_v37, %v5360_v34  ;;  %v6136_v34 = vld [vmem:[#allocation3 + $0xf4] sm:$0xf0] }
 0x362   : > { %v8627_v36 = vadd.f32 %v3465_v25, %v3181_v14  ;;  %v4362_v12 = vpop.f32.mrf.mxu1 }
 0x363   : > { %v8629_v45 = vadd.f32 %v4551_v56, %v4362_v12  ;;  %v5728_v12 = vld [vmem:[#allocation3 + $0xf0] sm:$0xf] }
 0x365   : > { %9510 = vst [vmem:[#allocation115_spill] sm:$0xff] %v8629_v45  ;;  %v3475_v51 = vpop.f32.mrf.mxu2  ;;  %4401 = vmatmul.bf16.gmra.mxu1 %v5721_v35  ;;  %5986 = vmatmul.msk.bf16.gmra.mxu3 %vm2781_vm7, %v5741_v24  ;;  %v5746_v35 = vld [vmem:[#allocation3 + $0x118] sm:$0xf0] }
 0x366   : > { %v5749_v37 = vor.u32 %v6139_v39, %v5746_v35 }
 0x367   : > { %v2994_v55 = vpop.f32.mrf.mxu0 }
 0x368   : > { %v3184_v20 = vadd.f32 %v7945_v31, %v2994_v55  ;;  %v4561_v16 = vpop.f32.mrf.mxu3 }
 0x36a   : > { %v8633_v13 = vadd.f32 %v3468_v27, %v3184_v20  ;;  %3033 = vmatmul.bf16.gmra.mxu0 %v5361_v6  ;;  %3517 = vmatmul.bf16.gmra.mxu2 %v5361_v6  ;;  %v4364_v25 = vpop.f32.mrf.mxu1  ;;  %v5729_v27 = vor.u32 %v6136_v34, %v5728_v12  ;;  %v6074_v6 = vld [vmem:[#allocation3 + $0x1e4] sm:$0xf0]  ;;  %v6141_v34 = vld [vmem:[#allocation3 + $0x124] sm:$0xf] }
 0x36b   : > { %v8635_v56 = vadd.f32 %v4553_v19, %v4364_v25  ;;  %v5368_v25 = vld [vmem:[#allocation3 + $0x1e0] sm:$0xf] }
 0x36d   : > { %9511 = vst [vmem:[#allocation116_spill] sm:$0xff] %v8635_v56  ;;  %v3478_v14 = vpop.f32.mrf.mxu2 }
 0x36f   : > { %v2996_v44 = vpop.f32.mrf.mxu0 }
 0x370   : > { %v3186_v53 = vadd.f32 %v7999_v30, %v2996_v44  ;;  %v4563_v0 = vpop.f32.mrf.mxu3  ;;  %v5369_v44 = vor.u32 %v6074_v6, %v5368_v25  ;;  %v5736_v6 = vld [vmem:[#allocation3 + $0x100] sm:$0xf] }
 0x372   : > { %v8638_v24 = vadd.f32 %v3470_v47, %v3186_v53  ;;  %v4367_v31 = vpop.f32.mrf.mxu1 }
 0x373   : > { %v8640_v55 = vadd.f32 %v4556_v41, %v4367_v31  ;;  %v6138_v31 = vld [vmem:[#allocation3 + $0x104] sm:$0xf0] }
 0x375   : > { %9512 = vst [vmem:[#allocation117_spill] sm:$0xff] %v8640_v55  ;;  %v3480_v20 = vpop.f32.mrf.mxu2  ;;  %4406 = vmatmul.bf16.gmra.mxu1 %v5729_v27  ;;  %5987 = vmatmul.msk.bf16.gmra.mxu3 %vm2781_vm7, %v5749_v37  ;;  %v5754_v27 = vld [vmem:[#allocation3 + $0x128] sm:$0xf0] }
 0x376   : > { %v5757_v25 = vor.u32 %v6141_v34, %v5754_v27 }
 0x377   : > { %v2999_v19 = vpop.f32.mrf.mxu0 }
 0x378   : > { %v3189_v30 = vadd.f32 %v8053_v9, %v2999_v19  ;;  %v4566_v56 = vpop.f32.mrf.mxu3 }
 0x37a   : > { %v8644_v45 = vadd.f32 %v3473_v3, %v3189_v30  ;;  %3038 = vmatmul.bf16.gmra.mxu0 %v5369_v44  ;;  %3522 = vmatmul.bf16.gmra.mxu2 %v5369_v44  ;;  %v4369_v47 = vpop.f32.mrf.mxu1  ;;  %v5737_v3 = vor.u32 %v6138_v31, %v5736_v6  ;;  %v5376_v44 = vld [vmem:[#allocation3 + $0x1f0] sm:$0xf]  ;;  %v6143_v6 = vld [vmem:[#allocation3 + $0x134] sm:$0xf] }
 0x37b   : > { %v8646_v41 = vadd.f32 %v4558_v50, %v4369_v47  ;;  %v6076_v47 = vld [vmem:[#allocation3 + $0x1f4] sm:$0xf0] }
 0x37d   : > { %9513 = vst [vmem:[#allocation118_spill] sm:$0xff] %v8646_v41  ;;  %v3483_v53 = vpop.f32.mrf.mxu2 }
 0x37f   : > { %v3001_v12 = vpop.f32.mrf.mxu0 }
 0x380   : > { %v3191_v39 = vadd.f32 %v8086_v1, %v3001_v12  ;;  %v4568_v35 = vpop.f32.mrf.mxu3  ;;  %v5377_v12 = vor.u32 %v6076_v47, %v5376_v44  ;;  %v6140_v44 = vld [vmem:[#allocation3 + $0x114] sm:$0xf0] }
 0x382   : > { %v8649_v37 = vadd.f32 %v3475_v51, %v3191_v39  ;;  %v4372_v9 = vpop.f32.mrf.mxu1 }
 0x383   : > { %v8651_v19 = vadd.f32 %v4561_v16, %v4372_v9  ;;  %v5744_v9 = vld [vmem:[#allocation3 + $0x110] sm:$0xf] }
 0x385   : > { %9514 = vst [vmem:[#allocation119_spill] sm:$0xff] %v8651_v19  ;;  %v3485_v30 = vpop.f32.mrf.mxu2  ;;  %4411 = vmatmul.bf16.gmra.mxu1 %v5737_v3  ;;  %5988 = vmatmul.msk.bf16.gmra.mxu3 %vm2781_vm7, %v5757_v25  ;;  %v5762_v3 = vld [vmem:[#allocation3 + $0x138] sm:$0xf0] }
 0x386   : > { %v5765_v47 = vor.u32 %v6143_v6, %v5762_v3 }
 0x387   : > { %v3004_v50 = vpop.f32.mrf.mxu0 }
 0x388   : > { %v3194_v1 = vadd.f32 %v8135_v21, %v3004_v50  ;;  %v4571_v41 = vpop.f32.mrf.mxu3 }
 0x38a   : > { %v8655_v55 = vadd.f32 %v3478_v14, %v3194_v1  ;;  %3043 = vmatmul.bf16.gmra.mxu0 %v5377_v12  ;;  %3527 = vmatmul.bf16.gmra.mxu2 %v5377_v12  ;;  %v4374_v51 = vpop.f32.mrf.mxu1  ;;  %v5745_v14 = vor.u32 %v6140_v44, %v5744_v9  ;;  %v5384_v12 = vld [vmem:[#allocation3 + $0x200] sm:$0xf]  ;;  %v5770_v44 = vld [vmem:[#allocation3 + $0x148] sm:$0xf0] }
 0x38b   : > { %v8657_v16 = vadd.f32 %v4563_v0, %v4374_v51  ;;  %v6078_v51 = vld [vmem:[#allocation3 + $0x204] sm:$0xf0] }
 0x38d   : > { %9515 = vst [vmem:[#allocation120_spill] sm:$0xff] %v8657_v16  ;;  %v3488_v39 = vpop.f32.mrf.mxu2 }
 0x38f   : > { %v3006_v31 = vpop.f32.mrf.mxu0 }
 0x390   : > { %v3196_v34 = vadd.f32 %v8166_v63, %v3006_v31  ;;  %v4573_v27 = vpop.f32.mrf.mxu3  ;;  %v5385_v31 = vor.u32 %v6078_v51, %v5384_v12  ;;  %v6145_v12 = vld [vmem:[#allocation3 + $0x144] sm:$0xf] }
 0x391   : > { %v5773_v51 = vor.u32 %v6145_v12, %v5770_v44  ;;  %v5760_v12 = vld [vmem:[#allocation3 + $0x130] sm:$0xf] }
 0x392   : > { %v8660_v25 = vadd.f32 %v3480_v20, %v3196_v34  ;;  %v4377_v21 = vpop.f32.mrf.mxu1 }
 0x393   : > { %v8662_v50 = vadd.f32 %v4566_v56, %v4377_v21  ;;  %v6142_v21 = vld [vmem:[#allocation3 + $0x124] sm:$0xf0] }
 0x395   : > { %9516 = vst [vmem:[#allocation121_spill] sm:$0xff] %v8662_v50  ;;  %v3490_v1 = vpop.f32.mrf.mxu2  ;;  %4416 = vmatmul.bf16.gmra.mxu1 %v5745_v14  ;;  %5989 = vmatmul.msk.bf16.gmra.mxu3 %vm2781_vm7, %v5765_v47 }
 0x397   : > { %v3009_v0 = vpop.f32.mrf.mxu0 }
 0x398   : > { %v3199_v63 = vadd.f32 %v8209_v58, %v3009_v0  ;;  %v4576_v16 = vpop.f32.mrf.mxu3  ;;  %v5752_v58 = vld [vmem:[#allocation3 + $0x120] sm:$0xf] }
 0x39a   : > { %v8666_v19 = vadd.f32 %v3483_v53, %v3199_v63  ;;  %3048 = vmatmul.bf16.gmra.mxu0 %v5385_v31  ;;  %3532 = vmatmul.bf16.gmra.mxu2 %v5385_v31  ;;  %v4379_v20 = vpop.f32.mrf.mxu1  ;;  %v5753_v53 = vor.u32 %v6142_v21, %v5752_v58  ;;  %v6080_v31 = vld [vmem:[#allocation3 + $0x214] sm:$0xf0] }
 0x39b   : > { %v8668_v56 = vadd.f32 %v4568_v35, %v4379_v20  ;;  %v5392_v20 = vld [vmem:[#allocation3 + $0x210] sm:$0xf] }
 0x39d   : > { %9517 = vst [vmem:[#allocation122_spill] sm:$0xff] %v8668_v56  ;;  %v3493_v34 = vpop.f32.mrf.mxu2 }
 0x39f   : > { %v3011_v9 = vpop.f32.mrf.mxu0 }
 0x3a0   : > { %v3201_v6 = vadd.f32 %v8256_v4, %v3011_v9  ;;  %v4578_v3 = vpop.f32.mrf.mxu3  ;;  %v5393_v9 = vor.u32 %v6080_v31, %v5392_v20  ;;  %v6144_v31 = vld [vmem:[#allocation3 + $0x134] sm:$0xf0] }
 0x3a2   : > { %v8671_v14 = vadd.f32 %v3485_v30, %v3201_v6  ;;  %v4382_v47 = vpop.f32.mrf.mxu1 }
 0x3a3   : > { %v8673_v0 = vadd.f32 %v4571_v41, %v4382_v47 }
 0x3a5   : > { %9518 = vst [vmem:[#allocation123_spill] sm:$0xff] %v8673_v0  ;;  %v3495_v63 = vpop.f32.mrf.mxu2  ;;  %4421 = vmatmul.bf16.gmra.mxu1 %v5753_v53  ;;  %5990 = vmatmul.msk.bf16.gmra.mxu3 %vm2781_vm7, %v5773_v51  ;;  %v6147_v53 = vld [vmem:[#allocation3 + $0x154] sm:$0xf]  ;;  %v5778_v51 = vld [vmem:[#allocation3 + $0x158] sm:$0xf0] }
 0x3a6   : > { %v5781_v20 = vor.u32 %v6147_v53, %v5778_v51 }
 0x3a7   : > { %v3014_v35 = vpop.f32.mrf.mxu0 }
 0x3a8   : > { %v3204_v4 = vadd.f32 %v8285_v8, %v3014_v35  ;;  %v4581_v56 = vpop.f32.mrf.mxu3 }
 0x3aa   : > { %v8677_v30 = vadd.f32 %v3488_v39, %v3204_v4  ;;  %3053 = vmatmul.bf16.gmra.mxu0 %v5393_v9  ;;  %3537 = vmatmul.bf16.gmra.mxu2 %v5393_v9  ;;  %v4384_v6 = vpop.f32.mrf.mxu1  ;;  %v5761_v39 = vor.u32 %v6144_v31, %v5760_v12  ;;  %v5400_v9 = vld [vmem:[#allocation3 + $0x220] sm:$0xf]  ;;  %v6149_v31 = vld [vmem:[#allocation3 + $0x164] sm:$0xf] }
 0x3ab   : > { %v8679_v41 = vadd.f32 %v4573_v27, %v4384_v6  ;;  %v6082_v6 = vld [vmem:[#allocation3 + $0x224] sm:$0xf0] }
 0x3ad   : > { %9519 = vst [vmem:[#allocation124_spill] sm:$0xff] %v8679_v41  ;;  %v3498_v21 = vpop.f32.mrf.mxu2 }
 0x3af   : > { %v3016_v44 = vpop.f32.mrf.mxu0 }
 0x3b0   : > { %v3206_v47 = vadd.f32 %v8321_v42, %v3016_v44  ;;  %v4583_v58 = vpop.f32.mrf.mxu3  ;;  %v5401_v44 = vor.u32 %v6082_v6, %v5400_v9  ;;  %v6146_v9 = vld [vmem:[#allocation3 + $0x144] sm:$0xf0] }
 0x3b2   : > { %v8682_v0 = vadd.f32 %v3490_v1, %v3206_v47  ;;  %v4387_v8 = vpop.f32.mrf.mxu1 }
 0x3b3   : > { %v8684_v35 = vadd.f32 %v4576_v16, %v4387_v8  ;;  %v5768_v8 = vld [vmem:[#allocation3 + $0x140] sm:$0xf] }
 0x3b5   : > { %9520 = vst [vmem:[#allocation125_spill] sm:$0xff] %v8684_v35  ;;  %v3500_v4 = vpop.f32.mrf.mxu2  ;;  %4426 = vmatmul.bf16.gmra.mxu1 %v5761_v39  ;;  %5991 = vmatmul.msk.bf16.gmra.mxu3 %vm2781_vm7, %v5781_v20  ;;  %v5786_v39 = vld [vmem:[#allocation3 + $0x168] sm:$0xf0] }
 0x3b6   : > { %v5789_v6 = vor.u32 %v6149_v31, %v5786_v39 }
 0x3b7   : > { %v3019_v27 = vpop.f32.mrf.mxu0 }
 0x3b8   : > { %v3209_v42 = vadd.f32 %v8348_v18, %v3019_v27  ;;  %v4586_v41 = vpop.f32.mrf.mxu3 }
 0x3ba   : > { %v8688_v50 = vadd.f32 %v3493_v34, %v3209_v42  ;;  %3058 = vmatmul.bf16.gmra.mxu0 %v5401_v44  ;;  %3542 = vmatmul.bf16.gmra.mxu2 %v5401_v44  ;;  %v4389_v1 = vpop.f32.mrf.mxu1  ;;  %v5769_v34 = vor.u32 %v6146_v9, %v5768_v8  ;;  %v5408_v44 = vld [vmem:[#allocation3 + $0x230] sm:$0xf]  ;;  %v6151_v9 = vld [vmem:[#allocation3 + $0x174] sm:$0xf] }
 0x3bb   : > { %v8690_v16 = vadd.f32 %v4578_v3, %v4389_v1  ;;  %v6084_v1 = vld [vmem:[#allocation3 + $0x234] sm:$0xf0] }
 0x3bd   : > { %9521 = vst [vmem:[#allocation126_spill] sm:$0xff] %v8690_v16  ;;  %v3503_v47 = vpop.f32.mrf.mxu2 }
 0x3bf   : > { %v3021_v12 = vpop.f32.mrf.mxu0 }
 0x3c0   : > { %v3211_v53 = vadd.f32 %v8376_v43, %v3021_v12  ;;  %v4588_v51 = vpop.f32.mrf.mxu3  ;;  %v5409_v12 = vor.u32 %v6084_v1, %v5408_v44  ;;  %v5776_v44 = vld [vmem:[#allocation3 + $0x150] sm:$0xf] }
 0x3c2   : > { %v8693_v20 = vadd.f32 %v3495_v63, %v3211_v53  ;;  %v4392_v18 = vpop.f32.mrf.mxu1 }
 0x3c3   : > { %v8695_v27 = vadd.f32 %v4581_v56, %v4392_v18  ;;  %v6148_v18 = vld [vmem:[#allocation3 + $0x154] sm:$0xf0] }
 0x3c5   : > { %9522 = vst [vmem:[#allocation127_spill] sm:$0xff] %v8695_v27  ;;  %v3505_v42 = vpop.f32.mrf.mxu2  ;;  %4431 = vmatmul.bf16.gmra.mxu1 %v5769_v34  ;;  %5992 = vmatmul.msk.bf16.gmra.mxu3 %vm2781_vm7, %v5789_v6  ;;  %v5794_v34 = vld [vmem:[#allocation3 + $0x178] sm:$0xf0] }
 0x3c7   : > { %v3024_v3 = vpop.f32.mrf.mxu0 }
 0x3c8   : > { %v3214_v43 = vadd.f32 %v8393_v57, %v3024_v3  ;;  %v4591_v16 = vpop.f32.mrf.mxu3  ;;  %v6013_v3 = vld [vmem:[#allocation3 + $0x4] sm:$0xf] }
 0x3ca   : > { %v8699_v35 = vadd.f32 %v3498_v21, %v3214_v43  ;;  %3063 = vmatmul.bf16.gmra.mxu0 %v5409_v12  ;;  %3547 = vmatmul.bf16.gmra.mxu2 %v5409_v12  ;;  %v4394_v63 = vpop.f32.mrf.mxu1  ;;  %v5518_v21 = vld [vmem:[#allocation3 + $0x8] sm:$0xf0]  ;;  %v5777_v43 = vor.u32 %v6148_v18, %v5776_v44  ;;  %v5797_v12 = vor.u32 %v6151_v9, %v5794_v34 }
 0x3cb   : > { %v8701_v56 = vadd.f32 %v4583_v58, %v4394_v63  ;;  %v6098_v63 = vld [vmem:[#allocation3 + $0x244] sm:$0xf0] }
 0x3cd   : > { %9523 = vst [vmem:[#allocation128_spill] sm:$0xff] %v8701_v56  ;;  %v3508_v53 = vpop.f32.mrf.mxu2  ;;  %v5416_v56 = vld [vmem:[#allocation3 + $0x240] sm:$0xf] }
 0x3cf   : > { %v3026_v8 = vpop.f32.mrf.mxu0 }
 0x3d0   : > { %v3216_v31 = vadd.f32 %v8406_v49, %v3026_v8  ;;  %v4593_v39 = vpop.f32.mrf.mxu3  ;;  %v5521_v49 = vor.u32 %v6013_v3, %v5518_v21  ;;  %v5784_v3 = vld [vmem:[#allocation3 + $0x160] sm:$0xf]  ;;  %v6153_v21 = vld [vmem:[#allocation3 + $0x184] sm:$0xf] }
 0x3d2   : > { %v8704_v6 = vadd.f32 %v3500_v4, %v3216_v31  ;;  %v4397_v57 = vpop.f32.mrf.mxu1  ;;  %v5417_v4 = vor.u32 %v6098_v63, %v5416_v56  ;;  %v6150_v56 = vld [vmem:[#allocation3 + $0x164] sm:$0xf0] }
 0x3d3   : > { %v8706_v1 = vadd.f32 %v4586_v41, %v4397_v57 }
 0x3d4   : > { %9524 = vst [vmem:[#allocation129_spill] sm:$0xff] %v8704_v6 }
 0x3d5   : > { %9525 = vst [vmem:[#allocation130_spill] sm:$0xff] %v8706_v1  ;;  %v3510_v58 = vpop.f32.mrf.mxu2  ;;  %4436 = vmatmul.bf16.gmra.mxu1 %v5777_v43  ;;  %5993 = vmatmul.msk.bf16.gmra.mxu3 %vm2781_vm7, %v5797_v12  ;;  %v5802_v43 = vld [vmem:[#allocation3 + $0x188] sm:$0xf0] }
 0x3d7   : > { %v3029_v8 = vpop.f32.mrf.mxu0 }
 0x3d8   : > { %v3219_v27 = vadd.f32 %v8417_v15, %v3029_v8  ;;  %v4596_v31 = vpop.f32.mrf.mxu3  ;;  %v5805_v8 = vor.u32 %v6153_v21, %v5802_v43 }
 0x3da   : > { %v8710_v6 = vadd.f32 %v3503_v47, %v3219_v27  ;;  %3068 = vmatmul.bf16.gmra.mxu0 %v5417_v4  ;;  %5578 = vmatmul.msk.bf16.vlgmr.msrb.gmra.mxu2 %vm2781_vm7, %v5521_v49  ;;  %v4399_v41 = vpop.f32.mrf.mxu1  ;;  %v6015_v47 = vld [vmem:[#allocation3 + $0x14] sm:$0xf]  ;;  %v5526_v27 = vld [vmem:[#allocation3 + $0x18] sm:$0xf0]  ;;  %v5785_v49 = vor.u32 %v6150_v56, %v5784_v3  ;;  %v5424_v4 = vld [vmem:[#allocation3 + $0x250] sm:$0xf] }
 0x3db   : > { %v8713_v18 = vadd.f32 %v4588_v51, %v4399_v41 }
 0x3dd   : > { %9526 = vst [vmem:[#allocation131_spill] sm:$0xff] %v8713_v18  ;;  %v3513_v9 = vpop.f32.mrf.mxu2 }
 0x3df   : > { %v3031_v34 = vpop.f32.mrf.mxu0 }
 0x3e0   : > { %v3221_v57 = vadd.f32 %v8430_v23, %v3031_v34  ;;  %v4598_v44 = vpop.f32.mrf.mxu3  ;;  %v5529_v23 = vor.u32 %v6015_v47, %v5526_v27  ;;  %v6100_v34 = vld [vmem:[#allocation3 + $0x254] sm:$0xf0]  ;;  %v5792_v47 = vld [vmem:[#allocation3 + $0x170] sm:$0xf]  ;;  %v6155_v27 = vld [vmem:[#allocation3 + $0x194] sm:$0xf] }
 0x3e2   : > { %v8716_v12 = vadd.f32 %v3505_v42, %v3221_v57  ;;  %v4402_v15 = vpop.f32.mrf.mxu1  ;;  %v5425_v42 = vor.u32 %v6100_v34, %v5424_v4  ;;  %v6152_v4 = vld [vmem:[#allocation3 + $0x174] sm:$0xf0]  ;;  %v6017_v34 = vld [vmem:[#allocation3 + $0x24] sm:$0xf] }
 0x3e3   : > { %v8718_v63 = vadd.f32 %v4591_v16, %v4402_v15 }
 0x3e5   : > { %v3515_v51 = vpop.f32.mrf.mxu2  ;;  %4441 = vmatmul.bf16.gmra.mxu1 %v5785_v49  ;;  %5994 = vmatmul.msk.bf16.gmra.mxu3 %vm2781_vm7, %v5805_v8  ;;  %v5810_v49 = vld [vmem:[#allocation3 + $0x198] sm:$0xf0] }
 0x3e7   : > { %v3034_v41 = vpop.f32.mrf.mxu0 }
 0x3e8   : > { %v3224_v18 = vadd.f32 %v8441_v48, %v3034_v41  ;;  %v4601_v57 = vpop.f32.mrf.mxu3  ;;  %v5813_v41 = vor.u32 %v6155_v27, %v5810_v49 }
 0x3ea   : > { %v8722_v1 = vadd.f32 %v3508_v53, %v3224_v18  ;;  %3073 = vmatmul.bf16.gmra.mxu0 %v5425_v42  ;;  %5579 = vmatmul.msk.bf16.gmra.mxu2 %vm2781_vm7, %v5529_v23  ;;  %v4404_v16 = vpop.f32.mrf.mxu1  ;;  %v5793_v18 = vor.u32 %v6152_v4, %v5792_v47  ;;  %v6157_v4 = vld [vmem:[#allocation3 + $0x1a4] sm:$0xf] }
 0x3eb   : > { %v8725_v3 = vadd.f32 %v4593_v39, %v4404_v16  ;;  %v5146_v39 = vld [vmem:[#allocation3 + $0x28] sm:$0xf0] }
 0x3ec   : > { %v5149_v16 = vor.u32 %v6017_v34, %v5146_v39 }
 0x3ed   : > { %9527 = vst [vmem:[#allocation132_spill] sm:$0xff] %v8725_v3  ;;  %v3518_v21 = vpop.f32.mrf.mxu2 }
 0x3ef   : > { %v3036_v43 = vpop.f32.mrf.mxu0 }
 0x3f0   : > { %v3226_v15 = vadd.f32 %v8454_v38, %v3036_v43  ;;  %v4603_v56 = vpop.f32.mrf.mxu3 }
 0x3f2   : > { %v8728_v8 = vadd.f32 %v3510_v58, %v3226_v15  ;;  %v4407_v48 = vpop.f32.mrf.mxu1 }
 0x3f3   : > { %v8730_v53 = vadd.f32 %v4596_v31, %v4407_v48  ;;  %v6154_v48 = vld [vmem:[#allocation3 + $0x184] sm:$0xf0] }
 0x3f5   : > { %9528 = vst [vmem:[#allocation133_spill] sm:$0xff] %v8730_v53  ;;  %v3520_v23 = vpop.f32.mrf.mxu2  ;;  %4446 = vmatmul.bf16.gmra.mxu1 %v5793_v18  ;;  %5995 = vmatmul.msk.bf16.gmra.mxu3 %vm2781_vm7, %v5813_v41  ;;  %v5818_v18 = vld [vmem:[#allocation3 + $0x1a8] sm:$0xf0] }
 0x3f7   : > { %v3039_v42 = vpop.f32.mrf.mxu0 }
 0x3f8   : > { %v3229_v38 = vadd.f32 %v8465_v61, %v3039_v42  ;;  %v4606_v43 = vpop.f32.mrf.mxu3  ;;  %v5821_v42 = vor.u32 %v6157_v4, %v5818_v18 }
 0x3fa   : > { %v8734_v3 = vadd.f32 %v3513_v9, %v3229_v38  ;;  %5478 = vmatmul.msk.bf16.vlgmr.msrb.gmra.mxu0 %vm2781_vm7, %v5149_v16  ;;  %5580 = vmatmul.msk.bf16.gmra.mxu2 %vm2781_vm7, %v5149_v16  ;;  %v4409_v58 = vpop.f32.mrf.mxu1  ;;  %v5800_v9 = vld [vmem:[#allocation3 + $0x180] sm:$0xf]  ;;  %v5154_v16 = vld [vmem:[#allocation3 + $0x38] sm:$0xf0] }
 0x3fb   : > { %v8738_v31 = vadd.f32 %v4598_v44, %v4409_v58  ;;  %v5801_v39 = vor.u32 %v6154_v48, %v5800_v9  ;;  %v6019_v58 = vld [vmem:[#allocation3 + $0x34] sm:$0xf] }
 0x3fc   : > { %v6159_v9 = vld [vmem:[#allocation3 + $0x1b4] sm:$0xf] }
 0x3fd   : > { %9529 = vst [vmem:[#allocation134_spill] sm:$0xff] %v8738_v31  ;;  %v3523_v15 = vpop.f32.mrf.mxu2 }
 0x3ff   : > { %v3041_v47 = vpop.f32.mrf.mxu0 }
 0x400   : > { %v3231_v27 = vadd.f32 %v8477_v7, %v3041_v47  ;;  %v4608_v49 = vpop.f32.mrf.mxu3  ;;  %v5157_v47 = vor.u32 %v6019_v58, %v5154_v16 }
 0x402   : > { %v8741_v61 = vadd.f32 %v3515_v51, %v3231_v27  ;;  %v4412_v41 = vpop.f32.mrf.mxu1 }
 0x403   : > { %v8743_v34 = vadd.f32 %v4601_v57, %v4412_v41  ;;  %v5808_v41 = vld [vmem:[#allocation3 + $0x190] sm:$0xf] }
 0x405   : > { %9530 = vst [vmem:[#allocation135_spill] sm:$0xff] %v8743_v34  ;;  %v3525_v38 = vpop.f32.mrf.mxu2  ;;  %4451 = vmatmul.bf16.gmra.mxu1 %v5801_v39  ;;  %5996 = vmatmul.msk.bf16.gmra.mxu3 %vm2781_vm7, %v5821_v42  ;;  %v5826_v39 = vld [vmem:[#allocation3 + $0x1b8] sm:$0xf0] }
 0x406   : > { %v5829_v58 = vor.u32 %v6159_v9, %v5826_v39 }
 0x407   : > { %v3044_v44 = vpop.f32.mrf.mxu0 }
 0x408   : > { %v3234_v7 = vadd.f32 %v8488_v40, %v3044_v44  ;;  %v4611_v31 = vpop.f32.mrf.mxu3 }
 0x40a   : > { %v8747_v53 = vadd.f32 %v3518_v21, %v3234_v7  ;;  %5479 = vmatmul.msk.bf16.gmra.mxu0 %vm2781_vm7, %v5157_v47  ;;  %5581 = vmatmul.msk.bf16.gmra.mxu2 %vm2781_vm7, %v5157_v47  ;;  %v4414_v51 = vpop.f32.mrf.mxu1  ;;  %v6156_v21 = vld [vmem:[#allocation3 + $0x194] sm:$0xf0]  ;;  %v6021_v47 = vld [vmem:[#allocation3 + $0x44] sm:$0xf] }
 0x40b   : > { %v8751_v57 = vadd.f32 %v4603_v56, %v4414_v51  ;;  %v5809_v44 = vor.u32 %v6156_v21, %v5808_v41  ;;  %v5162_v51 = vld [vmem:[#allocation3 + $0x48] sm:$0xf0]  ;;  %v6161_v21 = vld [vmem:[#allocation3 + $0x1c4] sm:$0xf] }
 0x40d   : > { %9531 = vst [vmem:[#allocation136_spill] sm:$0xff] %v8751_v57  ;;  %v3528_v27 = vpop.f32.mrf.mxu2 }
 0x40f   : > { %v3046_v48 = vpop.f32.mrf.mxu0 }
 0x410   : > { %v3236_v4 = vadd.f32 %v8500_v22, %v3046_v48  ;;  %v4613_v18 = vpop.f32.mrf.mxu3  ;;  %v5165_v48 = vor.u32 %v6021_v47, %v5162_v51 }
 0x412   : > { %v8754_v40 = vadd.f32 %v3520_v23, %v3236_v4  ;;  %v4417_v42 = vpop.f32.mrf.mxu1 }
 0x413   : > { %v8756_v16 = vadd.f32 %v4606_v43, %v4417_v42  ;;  %v5816_v42 = vld [vmem:[#allocation3 + $0x1a0] sm:$0xf] }
 0x415   : > { %9532 = vst [vmem:[#allocation137_spill] sm:$0xff] %v8756_v16  ;;  %v3530_v7 = vpop.f32.mrf.mxu2  ;;  %4456 = vmatmul.bf16.gmra.mxu1 %v5809_v44  ;;  %5997 = vmatmul.msk.bf16.gmra.mxu3 %vm2781_vm7, %v5829_v58  ;;  %v5834_v44 = vld [vmem:[#allocation3 + $0x1c8] sm:$0xf0] }
 0x416   : > { %v5837_v51 = vor.u32 %v6161_v21, %v5834_v44 }
 0x417   : > { %v3049_v56 = vpop.f32.mrf.mxu0 }
 0x418   : > { %v3239_v22 = vadd.f32 %v8511_v59, %v3049_v56  ;;  %v4616_v57 = vpop.f32.mrf.mxu3 }
 0x41a   : > { %v8760_v34 = vadd.f32 %v3523_v15, %v3239_v22  ;;  %5480 = vmatmul.msk.bf16.gmra.mxu0 %vm2781_vm7, %v5165_v48  ;;  %5582 = vmatmul.msk.bf16.gmra.mxu2 %vm2781_vm7, %v5165_v48  ;;  %v4419_v23 = vpop.f32.mrf.mxu1  ;;  %v6158_v15 = vld [vmem:[#allocation3 + $0x1a4] sm:$0xf0]  ;;  %v6023_v48 = vld [vmem:[#allocation3 + $0x54] sm:$0xf] }
 0x41b   : > { %v8764_v43 = vadd.f32 %v4608_v49, %v4419_v23  ;;  %v5817_v56 = vor.u32 %v6158_v15, %v5816_v42  ;;  %v5170_v49 = vld [vmem:[#allocation3 + $0x58] sm:$0xf0]  ;;  %v6163_v15 = vld [vmem:[#allocation3 + $0x1d4] sm:$0xf] }
 0x41d   : > { %9533 = vst [vmem:[#allocation138_spill] sm:$0xff] %v8764_v43  ;;  %v3533_v4 = vpop.f32.mrf.mxu2 }
 0x41f   : > { %v3051_v41 = vpop.f32.mrf.mxu0 }
 0x420   : > { %v3241_v9 = vadd.f32 %v8523_v17, %v3051_v41  ;;  %v4618_v39 = vpop.f32.mrf.mxu3  ;;  %v5173_v41 = vor.u32 %v6023_v48, %v5170_v49 }
 0x422   : > { %v8767_v59 = vadd.f32 %v3525_v38, %v3241_v9  ;;  %v4422_v58 = vpop.f32.mrf.mxu1 }
 0x423   : > { %v8769_v47 = vadd.f32 %v4611_v31, %v4422_v58  ;;  %v6160_v58 = vld [vmem:[#allocation3 + $0x1b4] sm:$0xf0] }
 0x425   : > { %9534 = vst [vmem:[#allocation139_spill] sm:$0xff] %v8769_v47  ;;  %v3535_v22 = vpop.f32.mrf.mxu2  ;;  %4461 = vmatmul.bf16.gmra.mxu1 %v5817_v56  ;;  %5998 = vmatmul.msk.bf16.gmra.mxu3 %vm2781_vm7, %v5837_v51  ;;  %v5842_v56 = vld [vmem:[#allocation3 + $0x1d8] sm:$0xf0] }
 0x427   : > { %v3054_v23 = vpop.f32.mrf.mxu0 }
 0x428   : > { %v3244_v17 = vadd.f32 %v8533_v11, %v3054_v23  ;;  %v4621_v43 = vpop.f32.mrf.mxu3  ;;  %v5845_v23 = vor.u32 %v6163_v15, %v5842_v56 }
 0x42a   : > { %v8773_v16 = vadd.f32 %v3528_v27, %v3244_v17  ;;  %5481 = vmatmul.msk.bf16.gmra.mxu0 %vm2781_vm7, %v5173_v41  ;;  %5583 = vmatmul.msk.bf16.gmra.mxu2 %vm2781_vm7, %v5173_v41  ;;  %v4424_v31 = vpop.f32.mrf.mxu1  ;;  %v5824_v27 = vld [vmem:[#allocation3 + $0x1b0] sm:$0xf]  ;;  %v6025_v41 = vld [vmem:[#allocation3 + $0x64] sm:$0xf] }
 0x42b   : > { %v8777_v38 = vadd.f32 %v4613_v18, %v4424_v31  ;;  %v5825_v49 = vor.u32 %v6160_v58, %v5824_v27  ;;  %v5178_v18 = vld [vmem:[#allocation3 + $0x68] sm:$0xf0]  ;;  %v6165_v27 = vld [vmem:[#allocation3 + $0x1e4] sm:$0xf] }
 0x42d   : > { %9535 = vst [vmem:[#allocation140_spill] sm:$0xff] %v8777_v38  ;;  %v3538_v9 = vpop.f32.mrf.mxu2 }
 0x42f   : > { %v3056_v42 = vpop.f32.mrf.mxu0 }
 0x430   : > { %v3246_v21 = vadd.f32 %v8544_v46, %v3056_v42  ;;  %v4623_v44 = vpop.f32.mrf.mxu3  ;;  %v5181_v42 = vor.u32 %v6025_v41, %v5178_v18 }
 0x432   : > { %v8780_v11 = vadd.f32 %v3530_v7, %v3246_v21  ;;  %v4427_v51 = vpop.f32.mrf.mxu1 }
 0x433   : > { %v8782_v48 = vadd.f32 %v4616_v57, %v4427_v51  ;;  %v5832_v51 = vld [vmem:[#allocation3 + $0x1c0] sm:$0xf] }
 0x435   : > { %9536 = vst [vmem:[#allocation141_spill] sm:$0xff] %v8782_v48  ;;  %v3540_v17 = vpop.f32.mrf.mxu2  ;;  %4466 = vmatmul.bf16.gmra.mxu1 %v5825_v49  ;;  %5999 = vmatmul.msk.bf16.gmra.mxu3 %vm2781_vm7, %v5845_v23  ;;  %v5850_v49 = vld [vmem:[#allocation3 + $0x1e8] sm:$0xf0] }
 0x437   : > { %v3059_v31 = vpop.f32.mrf.mxu0 }
 0x438   : > { %v3249_v46 = vadd.f32 %v8553_v28, %v3059_v31  ;;  %v4626_v38 = vpop.f32.mrf.mxu3  ;;  %v5853_v31 = vor.u32 %v6165_v27, %v5850_v49 }
 0x43a   : > { %v8786_v47 = vadd.f32 %v3533_v4, %v3249_v46  ;;  %5482 = vmatmul.msk.bf16.gmra.mxu0 %vm2781_vm7, %v5181_v42  ;;  %5584 = vmatmul.msk.bf16.gmra.mxu2 %vm2781_vm7, %v5181_v42  ;;  %v4429_v57 = vpop.f32.mrf.mxu1  ;;  %v6162_v4 = vld [vmem:[#allocation3 + $0x1c4] sm:$0xf0]  ;;  %v6027_v42 = vld [vmem:[#allocation3 + $0x74] sm:$0xf] }
 0x43b   : > { %v8790_v7 = vadd.f32 %v4618_v39, %v4429_v57  ;;  %v5833_v18 = vor.u32 %v6162_v4, %v5832_v51  ;;  %v5186_v39 = vld [vmem:[#allocation3 + $0x78] sm:$0xf0]  ;;  %v6167_v4 = vld [vmem:[#allocation3 + $0x1f4] sm:$0xf] }
 0x43d   : > { %9537 = vst [vmem:[#allocation142_spill] sm:$0xff] %v8790_v7  ;;  %v3543_v21 = vpop.f32.mrf.mxu2 }
 0x43f   : > { %v3061_v58 = vpop.f32.mrf.mxu0 }
 0x440   : > { %v3251_v15 = vadd.f32 %v8562_v29, %v3061_v58  ;;  %v4628_v56 = vpop.f32.mrf.mxu3  ;;  %v5189_v58 = vor.u32 %v6027_v42, %v5186_v39  ;;  %v3648_v42 = vadd.f32 %v7590_v60, %v8611_v32  ;;  %v3650_v32 = vadd.f32 %v7614_v10, %v8616_v26 }
 0x441   : > { %v3653_v10 = vadd.f32 %v7669_v54, %v8622_v33  ;;  %v9541_v33 = vld [vmem:[#allocation6_spill] sm:$0xff] }
 0x442   : > { %v8793_v28 = vadd.f32 %v3535_v22, %v3251_v15  ;;  %v4432_v23 = vpop.f32.mrf.mxu1 }
 0x443   : > { %v8795_v41 = vadd.f32 %v4621_v43, %v4432_v23  ;;  %v5840_v23 = vld [vmem:[#allocation3 + $0x1d0] sm:$0xf] }
 0x445   : > { %9538 = vst [vmem:[#allocation143_spill] sm:$0xff] %v8795_v41  ;;  %v3545_v46 = vpop.f32.mrf.mxu2  ;;  %4471 = vmatmul.bf16.gmra.mxu1 %v5833_v18  ;;  %6000 = vmatmul.msk.bf16.gmra.mxu3 %vm2781_vm7, %v5853_v31  ;;  %v5858_v18 = vld [vmem:[#allocation3 + $0x1f8] sm:$0xf0] }
 0x447   : > { %v3064_v57 = vpop.f32.mrf.mxu0 }
 0x448   : > { %v3254_v29 = vadd.f32 %v8570_v2, %v3064_v57  ;;  %v4631_v7 = vpop.f32.mrf.mxu3 }
 0x44a   : > { %v8799_v48 = vadd.f32 %v3538_v9, %v3254_v29  ;;  %5483 = vmatmul.msk.bf16.gmra.mxu0 %vm2781_vm7, %v5189_v58  ;;  %5585 = vmatmul.msk.bf16.gmra.mxu2 %vm2781_vm7, %v5189_v58  ;;  %v4434_v43 = vpop.f32.mrf.mxu1  ;;  %v6164_v9 = vld [vmem:[#allocation3 + $0x1d4] sm:$0xf0]  ;;  %v5861_v29 = vor.u32 %v6167_v4, %v5858_v18  ;;  %v6029_v58 = vld [vmem:[#allocation3 + $0x84] sm:$0xf] }
 0x44b   : > { %v8803_v22 = vadd.f32 %v4623_v44, %v4434_v43  ;;  %v5841_v57 = vor.u32 %v6164_v9, %v5840_v23  ;;  %v5194_v43 = vld [vmem:[#allocation3 + $0x88] sm:$0xf0] }
 0x44c   : > { %v5866_v9 = vld [vmem:[#allocation3 + $0x208] sm:$0xf0] }
 0x44d   : > { %9539 = vst [vmem:[#allocation144_spill] sm:$0xff] %v8803_v22  ;;  %v3548_v15 = vpop.f32.mrf.mxu2 }
 0x44f   : > { %v3066_v51 = vpop.f32.mrf.mxu0 }
 0x450   : > { %v3256_v27 = vadd.f32 %v8579_v5, %v3066_v51  ;;  %v4633_v49 = vpop.f32.mrf.mxu3  ;;  %v5197_v51 = vor.u32 %v6029_v58, %v5194_v43  ;;  %v6031_v43 = vld [vmem:[#allocation3 + $0x94] sm:$0xf] }
 0x452   : > { %v8806_v2 = vadd.f32 %v3540_v17, %v3256_v27  ;;  %v4437_v31 = vpop.f32.mrf.mxu1 }
 0x453   : > { %v4627_v39 = vadd.f32 %v4626_v38, %v4437_v31  ;;  %v6169_v31 = vld [vmem:[#allocation3 + $0x204] sm:$0xf] }
 0x455   : > { %v3550_v44 = vpop.f32.mrf.mxu2  ;;  %v4755_v22 = vadd.f32 %v4627_v39, %v3648_v42  ;;  %4476 = vmatmul.bf16.gmra.mxu1 %v5841_v57  ;;  %6001 = vmatmul.msk.bf16.gmra.mxu3 %vm2781_vm7, %v5861_v29  ;;  %v5848_v57 = vld [vmem:[#allocation3 + $0x1e0] sm:$0xf]  ;;  %v5869_v29 = vor.u32 %v6169_v31, %v5866_v9  ;;  %v9542_v31 = vld [vmem:[#allocation109_spill] sm:$0xff] }
 0x457   : > { %v3069_v5 = vpop.f32.mrf.mxu0  ;;  %4827 = vst.msk [vmem:[#allocation2 + $0x110] sm:$0xff] %vm2781_vm7, %v4755_v22 }
 0x458   : > { %v3259_v17 = vadd.f32 %v8587_v62, %v3069_v5  ;;  %v4636_v27 = vpop.f32.mrf.mxu3  ;;  %v5202_v5 = vld [vmem:[#allocation3 + $0x98] sm:$0xf0] }
 0x45a   : > { %v8813_v41 = vadd.f32 %v3543_v21, %v3259_v17  ;;  %5484 = vmatmul.msk.bf16.gmra.mxu0 %vm2781_vm7, %v5197_v51  ;;  %5586 = vmatmul.msk.bf16.gmra.mxu2 %vm2781_vm7, %v5197_v51  ;;  %v4439_v60 = vpop.f32.mrf.mxu1  ;;  %v6166_v21 = vld [vmem:[#allocation3 + $0x1e4] sm:$0xf0] }
 0x45b   : > { %v4629_v38 = vadd.f32 %v4628_v56, %v4439_v60  ;;  %v5849_v56 = vor.u32 %v6166_v21, %v5848_v57  ;;  %v5205_v60 = vor.u32 %v6031_v43, %v5202_v5  ;;  %v6171_v57 = vld [vmem:[#allocation3 + $0x214] sm:$0xf] }
 0x45d   : > { %v8819_v23 = vpop.f32.mrf.mxu2  ;;  %v4756_v4 = vadd.f32 %v4629_v38, %v3650_v32 }
 0x45f   : > { %v3071_v18 = vpop.f32.mrf.mxu0  ;;  %4828 = vst.msk [vmem:[#allocation2 + $0x118] sm:$0xff] %vm2781_vm7, %v4756_v4 }
 0x460   : > { %v3261_v62 = vadd.f32 %v8594_v52, %v3071_v18  ;;  %v4638_v22 = vpop.f32.mrf.mxu3 }
 0x462   : > { %v8823_v42 = vadd.f32 %v3545_v46, %v3261_v62  ;;  %v4442_v39 = vpop.f32.mrf.mxu1  ;;  %v9540_v46 = vld [vmem:[#allocation107_spill] sm:$0xff] }
 0x463   : > { %v4632_v26 = vadd.f32 %v4631_v7, %v4442_v39  ;;  %v3655_v7 = vadd.f32 %v9541_v33, %v8627_v36  ;;  %v9543_v36 = vld [vmem:[#allocation7_spill] sm:$0xff] }
 0x465   : > { %v8827_v58 = vpop.f32.mrf.mxu2  ;;  %v4757_v17 = vadd.f32 %v4632_v26, %v3653_v10  ;;  %4481 = vmatmul.bf16.gmra.mxu1 %v5849_v56  ;;  %6002 = vmatmul.msk.bf16.gmra.mxu3 %vm2781_vm7, %v5869_v29  ;;  %v5874_v10 = vld [vmem:[#allocation3 + $0x218] sm:$0xf0]  ;;  %v6168_v29 = vld [vmem:[#allocation3 + $0x1f4] sm:$0xf0] }
 0x467   : > { %v3074_v52 = vpop.f32.mrf.mxu0  ;;  %4829 = vst.msk [vmem:[#allocation2 + $0x120] sm:$0xff] %vm2781_vm7, %v4757_v17  ;;  %v5877_v17 = vor.u32 %v6171_v57, %v5874_v10  ;;  %v9547_v10 = vld [vmem:[#allocation111_spill] sm:$0xff] }
 0x468   : > { %v3264_v51 = vadd.f32 %v9540_v46, %v3074_v52  ;;  %v4641_v32 = vpop.f32.mrf.mxu3  ;;  %v6033_v46 = vld [vmem:[#allocation3 + $0xa4] sm:$0xf] }
 0x46a   : > { %v8832_v38 = vadd.f32 %v3548_v15, %v3264_v51  ;;  %5485 = vmatmul.msk.bf16.gmra.mxu0 %vm2781_vm7, %v5205_v60  ;;  %5587 = vmatmul.msk.bf16.gmra.mxu2 %vm2781_vm7, %v5205_v60  ;;  %v4444_v54 = vpop.f32.mrf.mxu1  ;;  %v5856_v15 = vld [vmem:[#allocation3 + $0x1f0] sm:$0xf]  ;;  %v5210_v51 = vld [vmem:[#allocation3 + $0xa8] sm:$0xf0] }
 0x46b   : > { %v4634_v4 = vadd.f32 %v4633_v49, %v4444_v54  ;;  %v3658_v49 = vadd.f32 %v9543_v36, %v8633_v13  ;;  %v5857_v5 = vor.u32 %v6168_v29, %v5856_v15  ;;  %v9545_v13 = vld [vmem:[#allocation8_spill] sm:$0xff] }
 0x46d   : > { %v8838_v18 = vpop.f32.mrf.mxu2  ;;  %v4758_v62 = vadd.f32 %v4634_v4, %v3655_v7  ;;  %v5213_v7 = vor.u32 %v6033_v46, %v5210_v51  ;;  %v9549_v46 = vld [vmem:[#allocation10_spill] sm:$0xff] }
 0x46f   : > { %v3076_v21 = vpop.f32.mrf.mxu0  ;;  %4830 = vst.msk [vmem:[#allocation2 + $0x128] sm:$0xff] %vm2781_vm7, %v4758_v62 }
 0x470   : > { %v3266_v9 = vadd.f32 %v9542_v31, %v3076_v21  ;;  %v8842_v39 = vpop.f32.mrf.mxu3  ;;  %v9546_v31 = vld [vmem:[#allocation9_spill] sm:$0xff] }
 0x472   : > { %v8844_v26 = vadd.f32 %v3550_v44, %v3266_v9  ;;  %v4447_v56 = vpop.f32.mrf.mxu1  ;;  %v9544_v44 = vld [vmem:[#allocation15_spill] sm:$0xff]  ;;  %v3660_v9 = vadd.f32 %v9546_v31, %v8638_v24  ;;  %v6173_v24 = vld [vmem:[#allocation3 + $0x224] sm:$0xf] }
 0x473   : > { %v4637_v43 = vadd.f32 %v4636_v27, %v4447_v56  ;;  %v5218_v31 = vld [vmem:[#allocation3 + $0xb8] sm:$0xf0] }
 0x475   : > { %v8848_v52 = vpop.f32.mrf.mxu2  ;;  %v4759_v60 = vadd.f32 %v4637_v43, %v3658_v49  ;;  %4486 = vmatmul.bf16.gmra.mxu1 %v5857_v5  ;;  %6003 = vmatmul.msk.bf16.gmra.mxu3 %vm2781_vm7, %v5877_v17  ;;  %v9548_v49 = vld [vmem:[#allocation18_spill] sm:$0xff]  ;;  %v5882_v5 = vld [vmem:[#allocation3 + $0x228] sm:$0xf0] }
 0x477   : > { %v3088_v54 = vpop.f32.mrf.mxu0  ;;  %4831 = vst.msk [vmem:[#allocation2 + $0x130] sm:$0xff] %vm2781_vm7, %v4759_v60  ;;  %v6170_v60 = vld [vmem:[#allocation3 + $0x204] sm:$0xf0] }
 0x478   : > { %v3089_v33 = vadd.f32 %v3088_v54, %v9544_v44  ;;  %v8853_v4 = vpop.f32.mrf.mxu3  ;;  %v5885_v54 = vor.u32 %v6173_v24, %v5882_v5 }
 0x47a   : > { %v3374_v27 = vadd.f32 %v9545_v13, %v3089_v33  ;;  %5486 = vmatmul.msk.bf16.gmra.mxu0 %vm2781_vm7, %v5213_v7  ;;  %5588 = vmatmul.msk.bf16.gmra.mxu2 %vm2781_vm7, %v5213_v7  ;;  %v4449_v62 = vpop.f32.mrf.mxu1  ;;  %v9550_v33 = vld [vmem:[#allocation11_spill] sm:$0xff] }
 0x47b   : > { %v4639_v15 = vadd.f32 %v4638_v22, %v4449_v62  ;;  %v3663_v7 = vadd.f32 %v9550_v33, %v8644_v45  ;;  %v9556_v33 = vld [vmem:[#allocation24_spill] sm:$0xff] }
 0x47c   : > { %v3563_v21 = vadd.f32 %v8819_v23, %v3374_v27  ;;  %v5864_v23 = vld [vmem:[#allocation3 + $0x200] sm:$0xf] }
 0x47d   : > { %v8861_v57 = vpop.f32.mrf.mxu2  ;;  %v4760_v29 = vadd.f32 %v4639_v15, %v3660_v9  ;;  %v5865_v27 = vor.u32 %v6170_v60, %v5864_v23  ;;  %v9551_v9 = vld [vmem:[#allocation112_spill] sm:$0xff]  ;;  %v9554_v23 = vld [vmem:[#allocation13_spill] sm:$0xff] }
 0x47e   : > { %v4721_v56 = vadd.f32 %v9547_v10, %v3563_v21  ;;  %v6035_v21 = vld [vmem:[#allocation3 + $0xb4] sm:$0xf] }
 0x47f   : > { %v3090_v36 = vpop.f32.mrf.mxu0  ;;  %4832 = vst.msk [vmem:[#allocation2 + $0x138] sm:$0xff] %vm2781_vm7, %v4760_v29  ;;  %v9552_v29 = vld [vmem:[#allocation21_spill] sm:$0xff] }
 0x480   : > { %4793 = vst.msk [vmem:[#allocation2] sm:$0xff] %vm2781_vm7, %v4721_v56  ;;  %v3091_v43 = vadd.f32 %v3090_v36, %v9548_v49  ;;  %v8867_v17 = vpop.f32.mrf.mxu3  ;;  %v5221_v36 = vor.u32 %v6035_v21, %v5218_v31  ;;  %v9557_v21 = vld [vmem:[#allocation14_spill] sm:$0xff] }
 0x481   : > { %v6175_v31 = vld [vmem:[#allocation3 + $0x234] sm:$0xf] }
 0x482   : > { %v3376_v51 = vadd.f32 %v9549_v46, %v3091_v43  ;;  %v4452_v22 = vpop.f32.mrf.mxu1  ;;  %v3665_v46 = vadd.f32 %v9554_v23, %v8649_v37 }
 0x483   : > { %v4642_v13 = vadd.f32 %v4641_v32, %v4452_v22  ;;  %v9553_v32 = vld [vmem:[#allocation12_spill] sm:$0xff]  ;;  %v9555_v22 = vld [vmem:[#allocation113_spill] sm:$0xff] }
 0x484   : > { %v3565_v44 = vadd.f32 %v8827_v58, %v3376_v51 }
 0x485   : > { %v8873_v62 = vpop.f32.mrf.mxu2  ;;  %v4761_v10 = vadd.f32 %v4642_v13, %v3663_v7  ;;  %4491 = vmatmul.bf16.gmra.mxu1 %v5865_v27  ;;  %6004 = vmatmul.msk.bf16.gmra.mxu3 %vm2781_vm7, %v5885_v54  ;;  %v5890_v13 = vld [vmem:[#allocation3 + $0x238] sm:$0xf0] }
 0x486   : > { %v4722_v15 = vadd.f32 %v9551_v9, %v3565_v44  ;;  %v5872_v9 = vld [vmem:[#allocation3 + $0x210] sm:$0xf] }
 0x487   : > { %v3093_v56 = vpop.f32.mrf.mxu0  ;;  %4833 = vst.msk [vmem:[#allocation2 + $0x140] sm:$0xff] %vm2781_vm7, %v4761_v10 }
 0x488   : > { %4794 = vst.msk [vmem:[#allocation2 + $0x8] sm:$0xff] %vm2781_vm7, %v4722_v15  ;;  %v3094_v58 = vadd.f32 %v3093_v56, %v9552_v29  ;;  %v8880_v45 = vpop.f32.mrf.mxu3  ;;  %v5893_v15 = vor.u32 %v6175_v31, %v5890_v13  ;;  %v9558_v56 = vld [vmem:[#allocation16_spill] sm:$0xff] }
 0x489   : > { %v3668_v29 = vadd.f32 %v9558_v56, %v8655_v55  ;;  %v6177_v56 = vld [vmem:[#allocation3 + $0x244] sm:$0xf] }
 0x48a   : > { %v3379_v49 = vadd.f32 %v9553_v32, %v3094_v58  ;;  %5487 = vmatmul.msk.bf16.gmra.mxu0 %vm2781_vm7, %v5221_v36  ;;  %5589 = vmatmul.msk.bf16.gmra.mxu2 %vm2781_vm7, %v5221_v36  ;;  %v4454_v43 = vpop.f32.mrf.mxu1 }
 0x48b   : > { %v4644_v51 = vadd.f32 %v8842_v39, %v4454_v43  ;;  %v5226_v43 = vld [vmem:[#allocation3 + $0xc8] sm:$0xf0] }
 0x48c   : > { %v3568_v5 = vadd.f32 %v8838_v18, %v3379_v49  ;;  %v6172_v18 = vld [vmem:[#allocation3 + $0x214] sm:$0xf0]  ;;  %v6037_v49 = vld [vmem:[#allocation3 + $0xc4] sm:$0xf] }
 0x48d   : > { %v8889_v24 = vpop.f32.mrf.mxu2  ;;  %v4762_v54 = vadd.f32 %v4644_v51, %v3665_v46  ;;  %v5873_v36 = vor.u32 %v6172_v18, %v5872_v9 }
 0x48e   : > { %v4723_v60 = vadd.f32 %v9555_v22, %v3568_v5  ;;  %v9559_v5 = vld [vmem:[#allocation114_spill] sm:$0xff] }
 0x48f   : > { %v3095_v44 = vpop.f32.mrf.mxu0  ;;  %4834 = vst.msk [vmem:[#allocation2 + $0x148] sm:$0xff] %vm2781_vm7, %v4762_v54 }
 0x490   : > { %4795 = vst.msk [vmem:[#allocation2 + $0x10] sm:$0xff] %vm2781_vm7, %v4723_v60  ;;  %v3096_v7 = vadd.f32 %v3095_v44, %v9556_v33  ;;  %v8895_v27 = vpop.f32.mrf.mxu3  ;;  %v5229_v60 = vor.u32 %v6037_v49, %v5226_v43  ;;  %v6174_v49 = vld [vmem:[#allocation3 + $0x224] sm:$0xf0] }
 0x492   : > { %v3381_v37 = vadd.f32 %v9557_v21, %v3096_v7  ;;  %v4457_v39 = vpop.f32.mrf.mxu1  ;;  %v9562_v7 = vld [vmem:[#allocation19_spill] sm:$0xff] }
 0x493   : > { %v4647_v58 = vadd.f32 %v8853_v4, %v4457_v39  ;;  %v9561_v4 = vld [vmem:[#allocation17_spill] sm:$0xff]  ;;  %v3670_v13 = vadd.f32 %v9562_v7, %v8660_v25  ;;  %v9565_v25 = vld [vmem:[#allocation20_spill] sm:$0xff] }
 0x494   : > { %v3570_v10 = vadd.f32 %v8848_v52, %v3381_v37  ;;  %v9560_v52 = vld [vmem:[#allocation27_spill] sm:$0xff] }
 0x495   : > { %v8902_v32 = vpop.f32.mrf.mxu2  ;;  %v4763_v46 = vadd.f32 %v4647_v58, %v3668_v29  ;;  %4496 = vmatmul.bf16.gmra.mxu1 %v5873_v36  ;;  %6005 = vmatmul.msk.bf16.gmra.mxu3 %vm2781_vm7, %v5893_v15  ;;  %v9563_v37 = vld [vmem:[#allocation115_spill] sm:$0xff]  ;;  %v9564_v15 = vld [vmem:[#allocation30_spill] sm:$0xff]  ;;  %v5898_v29 = vld [vmem:[#allocation3 + $0x248] sm:$0xf0] }
 0x496   : > { %v4724_v23 = vadd.f32 %v9559_v5, %v3570_v10  ;;  %v5880_v58 = vld [vmem:[#allocation3 + $0x220] sm:$0xf]  ;;  %v5901_v43 = vor.u32 %v6177_v56, %v5898_v29  ;;  %v9571_v29 = vld [vmem:[#allocation117_spill] sm:$0xff] }
 0x497   : > { %v3098_v51 = vpop.f32.mrf.mxu0  ;;  %4835 = vst.msk [vmem:[#allocation2 + $0x150] sm:$0xff] %vm2781_vm7, %v4763_v46 }
 0x498   : > { %4796 = vst.msk [vmem:[#allocation2 + $0x18] sm:$0xff] %vm2781_vm7, %v4724_v23  ;;  %v3099_v22 = vadd.f32 %v3098_v51, %v9560_v52  ;;  %v8909_v55 = vpop.f32.mrf.mxu3  ;;  %v9566_v23 = vld [vmem:[#allocation22_spill] sm:$0xff]  ;;  %v5881_v52 = vor.u32 %v6174_v49, %v5880_v58 }
 0x499   : > { %v3673_v46 = vadd.f32 %v9566_v23, %v8666_v19  ;;  %v9573_v23 = vld [vmem:[#allocation26_spill] sm:$0xff] }
 0x49a   : > { %v3384_v54 = vadd.f32 %v9561_v4, %v3099_v22  ;;  %5488 = vmatmul.msk.bf16.gmra.mxu0 %vm2781_vm7, %v5229_v60  ;;  %5590 = vmatmul.msk.bf16.gmra.mxu2 %vm2781_vm7, %v5229_v60  ;;  %v4459_v44 = vpop.f32.mrf.mxu1  ;;  %v6039_v60 = vld [vmem:[#allocation3 + $0xd4] sm:$0xf]  ;;  %v5234_v4 = vld [vmem:[#allocation3 + $0xd8] sm:$0xf0] }
 0x49b   : > { %v4649_v18 = vadd.f32 %v8867_v17, %v4459_v44 }
 0x49c   : > { %v3573_v33 = vadd.f32 %v8861_v57, %v3384_v54  ;;  %v9567_v54 = vld [vmem:[#allocation116_spill] sm:$0xff] }
 0x49d   : > { %v8918_v21 = vpop.f32.mrf.mxu2  ;;  %v4764_v39 = vadd.f32 %v4649_v18, %v3670_v13  ;;  %v5237_v18 = vor.u32 %v6039_v60, %v5234_v4  ;;  %v9574_v4 = vld [vmem:[#allocation28_spill] sm:$0xff] }
 0x49e   : > { %v4725_v31 = vadd.f32 %v9563_v37, %v3573_v33 }
 0x49f   : > { %v3100_v9 = vpop.f32.mrf.mxu0  ;;  %4836 = vst.msk [vmem:[#allocation2 + $0x158] sm:$0xff] %vm2781_vm7, %v4764_v39 }
 0x4a0   : > { %4797 = vst.msk [vmem:[#allocation2 + $0x20] sm:$0xff] %vm2781_vm7, %v4725_v31  ;;  %v3101_v10 = vadd.f32 %v3100_v9, %v9564_v15  ;;  %v8924_v57 = vpop.f32.mrf.mxu3  ;;  %v9570_v9 = vld [vmem:[#allocation25_spill] sm:$0xff] }
 0x4a1   : > { %v3675_v15 = vadd.f32 %v9570_v9, %v8671_v14 }
 0x4a2   : > { %v3386_v36 = vadd.f32 %v9565_v25, %v3101_v10  ;;  %v4462_v17 = vpop.f32.mrf.mxu1 }
 0x4a3   : > { %v4652_v51 = vadd.f32 %v8880_v45, %v4462_v17  ;;  %v9569_v45 = vld [vmem:[#allocation23_spill] sm:$0xff]  ;;  %v9572_v17 = vld [vmem:[#allocation36_spill] sm:$0xff] }
 0x4a4   : > { %v3575_v5 = vadd.f32 %v8873_v62, %v3386_v36  ;;  %v9568_v62 = vld [vmem:[#allocation33_spill] sm:$0xff] }
 0x4a5   : > { %v8931_v22 = vpop.f32.mrf.mxu2  ;;  %v4765_v33 = vadd.f32 %v4652_v51, %v3673_v46  ;;  %4501 = vmatmul.bf16.gmra.mxu1 %v5881_v52  ;;  %6006 = vmatmul.msk.bf16.gmra.mxu3 %vm2781_vm7, %v5901_v43  ;;  %v6179_v43 = vld [vmem:[#allocation3 + $0x254] sm:$0xf]  ;;  %v5906_v46 = vld [vmem:[#allocation3 + $0x258] sm:$0xf0]  ;;  %v6176_v51 = vld [vmem:[#allocation3 + $0x234] sm:$0xf0] }
 0x4a6   : > { %v4726_v44 = vadd.f32 %v9567_v54, %v3575_v5  ;;  %v5909_v52 = vor.u32 %v6179_v43, %v5906_v46  ;;  %v3678_v54 = vadd.f32 %v9574_v4, %v8677_v30  ;;  %v9582_v4 = vld [vmem:[#allocation34_spill] sm:$0xff] }
 0x4a7   : > { %v3103_v7 = vpop.f32.mrf.mxu0  ;;  %4837 = vst.msk [vmem:[#allocation2 + $0x160] sm:$0xff] %vm2781_vm7, %v4765_v33 }
 0x4a8   : > { %4798 = vst.msk [vmem:[#allocation2 + $0x28] sm:$0xff] %vm2781_vm7, %v4726_v44  ;;  %v3104_v13 = vadd.f32 %v3103_v7, %v9568_v62  ;;  %v4661_v19 = vpop.f32.mrf.mxu3  ;;  %v6041_v62 = vld [vmem:[#allocation3 + $0xe4] sm:$0xf] }
 0x4aa   : > { %v3389_v37 = vadd.f32 %v9569_v45, %v3104_v13  ;;  %5489 = vmatmul.msk.bf16.gmra.mxu0 %vm2781_vm7, %v5237_v18  ;;  %5591 = vmatmul.msk.bf16.gmra.mxu2 %vm2781_vm7, %v5237_v18  ;;  %v4464_v31 = vpop.f32.mrf.mxu1  ;;  %v5242_v13 = vld [vmem:[#allocation3 + $0xe8] sm:$0xf0]  ;;  %v9575_v18 = vld [vmem:[#allocation118_spill] sm:$0xff] }
 0x4ab   : > { %v4654_v10 = vadd.f32 %v8895_v27, %v4464_v31  ;;  %v5245_v9 = vor.u32 %v6041_v62, %v5242_v13  ;;  %v6043_v13 = vld [vmem:[#allocation3 + $0xf4] sm:$0xf] }
 0x4ac   : > { %v3578_v39 = vadd.f32 %v8889_v24, %v3389_v37  ;;  %v5888_v24 = vld [vmem:[#allocation3 + $0x230] sm:$0xf] }
 0x4ad   : > { %v8945_v56 = vpop.f32.mrf.mxu2  ;;  %v4766_v25 = vadd.f32 %v4654_v10, %v3675_v15  ;;  %v5889_v33 = vor.u32 %v6176_v51, %v5888_v24  ;;  %v9581_v51 = vld [vmem:[#allocation32_spill] sm:$0xff] }
 0x4ae   : > { %v4727_v58 = vadd.f32 %v9571_v29, %v3578_v39 }
 0x4af   : > { %v3105_v36 = vpop.f32.mrf.mxu0  ;;  %4838 = vst.msk [vmem:[#allocation2 + $0x168] sm:$0xff] %vm2781_vm7, %v4766_v25 }
 0x4b0   : > { %4799 = vst.msk [vmem:[#allocation2 + $0x30] sm:$0xff] %vm2781_vm7, %v4727_v58  ;;  %v3106_v49 = vadd.f32 %v3105_v36, %v9572_v17  ;;  %v8951_v5 = vpop.f32.mrf.mxu3  ;;  %v9578_v58 = vld [vmem:[#allocation31_spill] sm:$0xff] }
 0x4b1   : > { %v3680_v25 = vadd.f32 %v9578_v58, %v8682_v0 }
 0x4b2   : > { %v3391_v14 = vadd.f32 %v9573_v23, %v3106_v49  ;;  %v4467_v27 = vpop.f32.mrf.mxu1  ;;  %v9579_v49 = vld [vmem:[#allocation119_spill] sm:$0xff] }
 0x4b3   : > { %v4657_v44 = vadd.f32 %v8909_v55, %v4467_v27  ;;  %v9577_v55 = vld [vmem:[#allocation29_spill] sm:$0xff] }
 0x4b4   : > { %v3580_v60 = vadd.f32 %v8902_v32, %v3391_v14  ;;  %v9576_v32 = vld [vmem:[#allocation39_spill] sm:$0xff]  ;;  %v9580_v14 = vld [vmem:[#allocation42_spill] sm:$0xff] }
 0x4b5   : > { %v8958_v7 = vpop.f32.mrf.mxu2  ;;  %v4767_v37 = vadd.f32 %v4657_v44, %v3678_v54  ;;  %4506 = vmatmul.bf16.gmra.mxu1 %v5889_v33  ;;  %6007 = vmatmul.msk.bf16.gmra.mxu3 %vm2781_vm7, %v5909_v52  ;;  %v3683_v54 = vadd.f32 %v9582_v4, %v8688_v50 }
 0x4b6   : > { %v4728_v45 = vadd.f32 %v9575_v18, %v3580_v60  ;;  %v5896_v60 = vld [vmem:[#allocation3 + $0x240] sm:$0xf]  ;;  %v5250_v18 = vld [vmem:[#allocation3 + $0xf8] sm:$0xf0] }
 0x4b7   : > { %v3108_v31 = vpop.f32.mrf.mxu0  ;;  %4839 = vst.msk [vmem:[#allocation2 + $0x170] sm:$0xff] %vm2781_vm7, %v4767_v37 }
 0x4b8   : > { %4800 = vst.msk [vmem:[#allocation2 + $0x38] sm:$0xff] %vm2781_vm7, %v4728_v45  ;;  %v3109_v39 = vadd.f32 %v3108_v31, %v9576_v32  ;;  %v4666_v30 = vpop.f32.mrf.mxu3  ;;  %v9583_v45 = vld [vmem:[#allocation120_spill] sm:$0xff] }
 0x4ba   : > { %v3394_v15 = vadd.f32 %v9577_v55, %v3109_v39  ;;  %5490 = vmatmul.msk.bf16.gmra.mxu0 %vm2781_vm7, %v5245_v9  ;;  %5592 = vmatmul.msk.bf16.gmra.mxu2 %vm2781_vm7, %v5245_v9  ;;  %v4469_v10 = vpop.f32.mrf.mxu1  ;;  %v9584_v39 = vld [vmem:[#allocation45_spill] sm:$0xff]  ;;  %v5253_v55 = vor.u32 %v6043_v13, %v5250_v18 }
 0x4bb   : > { %v4659_v36 = vadd.f32 %v8924_v57, %v4469_v10  ;;  %v9585_v10 = vld [vmem:[#allocation35_spill] sm:$0xff] }
 0x4bc   : > { %v3583_v29 = vadd.f32 %v8918_v21, %v3394_v15  ;;  %v6178_v21 = vld [vmem:[#allocation3 + $0x244] sm:$0xf0]  ;;  %v5914_v15 = vld [vmem:[#allocation3 + $0x268] sm:$0xf0] }
 0x4bd   : > { %v8972_v17 = vpop.f32.mrf.mxu2  ;;  %v4768_v24 = vadd.f32 %v4659_v36, %v3680_v25  ;;  %v5897_v33 = vor.u32 %v6178_v21, %v5896_v60  ;;  %v9586_v36 = vld [vmem:[#allocation37_spill] sm:$0xff]  ;;  %v5904_v60 = vld [vmem:[#allocation3 + $0x250] sm:$0xf] }
 0x4be   : > { %v4729_v43 = vadd.f32 %v9579_v49, %v3583_v29  ;;  %v3685_v49 = vadd.f32 %v9586_v36, %v8693_v20  ;;  %v6180_v20 = vld [vmem:[#allocation3 + $0x254] sm:$0xf0]  ;;  %v9594_v36 = vld [vmem:[#allocation129_spill] sm:$0xff] }
 0x4bf   : > { %v3110_v23 = vpop.f32.mrf.mxu0  ;;  %4840 = vst.msk [vmem:[#allocation2 + $0x178] sm:$0xff] %vm2781_vm7, %v4768_v24  ;;  %v5905_v13 = vor.u32 %v6180_v20, %v5904_v60  ;;  %v5912_v60 = vld [vmem:[#allocation3 + $0x260] sm:$0xf] }
 0x4c0   : > { %4801 = vst.msk [vmem:[#allocation2 + $0x40] sm:$0xff] %vm2781_vm7, %v4729_v43  ;;  %v3111_v46 = vadd.f32 %v3110_v23, %v9580_v14  ;;  %v8978_v27 = vpop.f32.mrf.mxu3  ;;  %v9587_v23 = vld [vmem:[#allocation121_spill] sm:$0xff] }
 0x4c2   : > { %v3396_v52 = vadd.f32 %v9581_v51, %v3111_v46  ;;  %v4472_v0 = vpop.f32.mrf.mxu1  ;;  %v9588_v51 = vld [vmem:[#allocation48_spill] sm:$0xff] }
 0x4c3   : > { %v4662_v44 = vadd.f32 %v4661_v19, %v4472_v0 }
 0x4c4   : > { %v3585_v57 = vadd.f32 %v8931_v22, %v3396_v52  ;;  %v6181_v22 = vld [vmem:[#allocation3 + $0x264] sm:$0xf] }
 0x4c5   : > { %v8984_v62 = vpop.f32.mrf.mxu2  ;;  %v4769_v31 = vadd.f32 %v4662_v44, %v3683_v54  ;;  %4511 = vmatmul.bf16.gmra.mxu1 %v5897_v33  ;;  %v5917_v19 = vor.u32 %v6181_v22, %v5914_v15  ;;  %v9590_v54 = vld [vmem:[#allocation40_spill] sm:$0xff] }
 0x4c6   : > { %v4730_v37 = vadd.f32 %v9583_v45, %v3585_v57  ;;  %v3688_v44 = vadd.f32 %v9590_v54, %v8699_v35  ;;  %v6045_v45 = vld [vmem:[#allocation3 + $0x104] sm:$0xf] }
 0x4c7   : > { %v3113_v32 = vpop.f32.mrf.mxu0  ;;  %4841 = vst.msk [vmem:[#allocation2 + $0x180] sm:$0xff] %vm2781_vm7, %v4769_v31  ;;  %6008 = vmatmul.msk.bf16.gmra.mxu3 %vm2781_vm7, %v5917_v19  ;;  %v9591_v31 = vld [vmem:[#allocation122_spill] sm:$0xff]  ;;  %v5922_v19 = vld [vmem:[#allocation3 + $0x278] sm:$0xf0] }
 0x4c8   : > { %4802 = vst.msk [vmem:[#allocation2 + $0x48] sm:$0xff] %vm2781_vm7, %v4730_v37  ;;  %v3114_v9 = vadd.f32 %v3113_v32, %v9584_v39  ;;  %v8990_v50 = vpop.f32.mrf.mxu3  ;;  %v5258_v37 = vld [vmem:[#allocation3 + $0x108] sm:$0xf0] }
 0x4c9   : > { %v5261_v15 = vor.u32 %v6045_v45, %v5258_v37 }
 0x4ca   : > { %v3399_v29 = vadd.f32 %v9585_v10, %v3114_v9  ;;  %5491 = vmatmul.msk.bf16.gmra.mxu0 %vm2781_vm7, %v5253_v55  ;;  %5593 = vmatmul.msk.bf16.gmra.mxu2 %vm2781_vm7, %v5253_v55  ;;  %v4474_v58 = vpop.f32.mrf.mxu1  ;;  %v9592_v55 = vld [vmem:[#allocation51_spill] sm:$0xff]  ;;  %v9593_v10 = vld [vmem:[#allocation41_spill] sm:$0xff] }
 0x4cb   : > { %v4664_v43 = vadd.f32 %v8951_v5, %v4474_v58 }
 0x4cc   : > { %v3588_v25 = vadd.f32 %v8945_v56, %v3399_v29  ;;  %v9589_v56 = vld [vmem:[#allocation38_spill] sm:$0xff] }
 0x4cd   : > { %v9000_v24 = vpop.f32.mrf.mxu2  ;;  %v4770_v46 = vadd.f32 %v4664_v43, %v3685_v49  ;;  %v9595_v49 = vld [vmem:[#allocation43_spill] sm:$0xff] }
 0x4ce   : > { %v4731_v14 = vadd.f32 %v9587_v23, %v3588_v25  ;;  %v3690_v43 = vadd.f32 %v9595_v49, %v9594_v36 }
 0x4cf   : > { %v3115_v21 = vpop.f32.mrf.mxu0  ;;  %4842 = vst.msk [vmem:[#allocation2 + $0x188] sm:$0xff] %vm2781_vm7, %v4770_v46  ;;  %v9596_v46 = vld [vmem:[#allocation123_spill] sm:$0xff] }
 0x4d0   : > { %4803 = vst.msk [vmem:[#allocation2 + $0x50] sm:$0xff] %vm2781_vm7, %v4731_v14  ;;  %v3116_v52 = vadd.f32 %v3115_v21, %v9588_v51  ;;  %v4673_v0 = vpop.f32.mrf.mxu3 }
 0x4d2   : > { %v3401_v57 = vadd.f32 %v9589_v56, %v3116_v52  ;;  %v4477_v4 = vpop.f32.mrf.mxu1  ;;  %v6182_v56 = vld [vmem:[#allocation3 + $0x264] sm:$0xf0] }
 0x4d3   : > { %v4667_v33 = vadd.f32 %v4666_v30, %v4477_v4  ;;  %v5913_v54 = vor.u32 %v6182_v56, %v5912_v60  ;;  %v9607_v60 = vld [vmem:[#allocation50_spill] sm:$0xff] }
 0x4d4   : > { %v3590_v5 = vadd.f32 %v8958_v7, %v3401_v57  ;;  %v6183_v7 = vld [vmem:[#allocation3 + $0x274] sm:$0xf] }
 0x4d5   : > { %v9010_v18 = vpop.f32.mrf.mxu2  ;;  %v4771_v39 = vadd.f32 %v4667_v33, %v3688_v44  ;;  %4516 = vmatmul.bf16.gmra.mxu1 %v5905_v13  ;;  %v5925_v30 = vor.u32 %v6183_v7, %v5922_v19  ;;  %v9597_v57 = vld [vmem:[#allocation54_spill] sm:$0xff]  ;;  %v9602_v7 = vld [vmem:[#allocation47_spill] sm:$0xff]  ;;  %v9603_v19 = vld [vmem:[#allocation4_spill] sm:$0xff] }
 0x4d6   : > { %v4732_v32 = vadd.f32 %v9591_v31, %v3590_v5  ;;  %v9599_v33 = vld [vmem:[#allocation46_spill] sm:$0xff]  ;;  %v9600_v31 = vld [vmem:[#allocation124_spill] sm:$0xff] }
 0x4d7   : > { %v3118_v9 = vpop.f32.mrf.mxu0  ;;  %4843 = vst.msk [vmem:[#allocation2 + $0x190] sm:$0xff] %vm2781_vm7, %v4771_v39  ;;  %6009 = vmatmul.msk.bf16.gmra.mxu3 %vm2781_vm7, %v5925_v30  ;;  %v3693_v13 = vadd.f32 %v9599_v33, %v8710_v6  ;;  %v9604_v30 = vld [vmem:[#allocation49_spill] sm:$0xff] }
 0x4d8   : > { %4804 = vst.msk [vmem:[#allocation2 + $0x58] sm:$0xff] %vm2781_vm7, %v4732_v32  ;;  %v3119_v22 = vadd.f32 %v3118_v9, %v9592_v55  ;;  %v4676_v35 = vpop.f32.mrf.mxu3  ;;  %v9601_v55 = vld [vmem:[#allocation57_spill] sm:$0xff] }
 0x4da   : > { %v3404_v29 = vadd.f32 %v9593_v10, %v3119_v22  ;;  %5492 = vmatmul.msk.bf16.gmra.mxu0 %vm2781_vm7, %v5261_v15  ;;  %5594 = vmatmul.msk.bf16.gmra.mxu2 %vm2781_vm7, %v5261_v15  ;;  %v4479_v58 = vpop.f32.mrf.mxu1  ;;  %v3695_v10 = vadd.f32 %v9604_v30, %v8716_v12 }
 0x4db   : > { %v4669_v23 = vadd.f32 %v8978_v27, %v4479_v58 }
 0x4dc   : > { %v3593_v25 = vadd.f32 %v8972_v17, %v3404_v29  ;;  %v9598_v17 = vld [vmem:[#allocation44_spill] sm:$0xff] }
 0x4dd   : > { %v3602_v14 = vpop.f32.mrf.mxu2  ;;  %v4772_v51 = vadd.f32 %v4669_v23, %v3690_v43  ;;  %v5920_v23 = vld [vmem:[#allocation3 + $0x270] sm:$0xf] }
 0x4de   : > { %v4733_v21 = vadd.f32 %v9596_v46, %v3593_v25  ;;  %v9605_v25 = vld [vmem:[#allocation125_spill] sm:$0xff]  ;;  %v6184_v46 = vld [vmem:[#allocation3 + $0x274] sm:$0xf0] }
 0x4df   : > { %v3120_v52 = vpop.f32.mrf.mxu0  ;;  %4844 = vst.msk [vmem:[#allocation2 + $0x198] sm:$0xff] %vm2781_vm7, %v4772_v51  ;;  %v5921_v56 = vor.u32 %v6184_v46, %v5920_v23  ;;  %v9618_v23 = vld [vmem:[#allocation128_spill] sm:$0xff] }
 0x4e0   : > { %4805 = vst.msk [vmem:[#allocation2 + $0x60] sm:$0xff] %vm2781_vm7, %v4733_v21  ;;  %v3121_v4 = vadd.f32 %v3120_v52, %v9597_v57  ;;  %v4678_v20 = vpop.f32.mrf.mxu3  ;;  %v9606_v21 = vld [vmem:[#allocation60_spill] sm:$0xff] }
 0x4e2   : > { %v3406_v5 = vadd.f32 %v9598_v17, %v3121_v4  ;;  %v4482_v44 = vpop.f32.mrf.mxu1 }
 0x4e3   : > { %v4672_v45 = vadd.f32 %v8990_v50, %v4482_v44 }
 0x4e4   : > { %v3595_v27 = vadd.f32 %v8984_v62, %v3406_v5  ;;  %v9609_v5 = vld [vmem:[#allocation126_spill] sm:$0xff] }
 0x4e5   : > { %v3604_v37 = vpop.f32.mrf.mxu2  ;;  %v4773_v39 = vadd.f32 %v4672_v45, %v3693_v13  ;;  %4521 = vmatmul.bf16.gmra.mxu1 %v5913_v54  ;;  %v9610_v13 = vld [vmem:[#allocation63_spill] sm:$0xff] }
 0x4e6   : > { %v4734_v32 = vadd.f32 %v9600_v31, %v3595_v27  ;;  %v9611_v31 = vld [vmem:[#allocation53_spill] sm:$0xff] }
 0x4e7   : > { %v3123_v9 = vpop.f32.mrf.mxu0  ;;  %4845 = vst.msk [vmem:[#allocation2 + $0x1a0] sm:$0xff] %vm2781_vm7, %v4773_v39  ;;  %v9612_v39 = vld [vmem:[#allocation5_spill] sm:$0xff] }
 0x4e8   : > { %4806 = vst.msk [vmem:[#allocation2 + $0x68] sm:$0xff] %vm2781_vm7, %v4734_v32  ;;  %v3124_v22 = vadd.f32 %v3123_v9, %v9601_v55  ;;  %v4681_v15 = vpop.f32.mrf.mxu3  ;;  %v9613_v9 = vld [vmem:[#allocation55_spill] sm:$0xff] }
 0x4e9   : > { %v3700_v55 = vadd.f32 %v9613_v9, %v8728_v8  ;;  %v9626_v9 = vld [vmem:[#allocation131_spill] sm:$0xff] }
 0x4ea   : > { %v3409_v62 = vadd.f32 %v9602_v7, %v3124_v22  ;;  %5493 = vmatmul.msk.bf16.gmra.mxu0 %vm2781_vm7, %v9603_v19  ;;  %v4484_v6 = vpop.f32.mrf.mxu1  ;;  %v9614_v7 = vld [vmem:[#allocation127_spill] sm:$0xff] }
 0x4eb   : > { %v4674_v29 = vadd.f32 %v4673_v0, %v4484_v6  ;;  %v9608_v0 = vld [vmem:[#allocation52_spill] sm:$0xff] }
 0x4ec   : > { %v3598_v50 = vadd.f32 %v9000_v24, %v3409_v62  ;;  %v3698_v4 = vadd.f32 %v9608_v0, %v8722_v1 }
 0x4ed   : > { %v3607_v58 = vpop.f32.mrf.mxu2  ;;  %v4774_v49 = vadd.f32 %v4674_v29, %v3695_v10  ;;  %v9616_v29 = vld [vmem:[#allocation56_spill] sm:$0xff] }
 0x4ee   : > { %v4735_v36 = vadd.f32 %v9605_v25, %v3598_v50  ;;  %v9615_v50 = vld [vmem:[#allocation66_spill] sm:$0xff] }
 0x4ef   : > { %v3125_v43 = vpop.f32.mrf.mxu0  ;;  %4846 = vst.msk [vmem:[#allocation2 + $0x1a8] sm:$0xff] %vm2781_vm7, %v4774_v49 }
 0x4f0   : > { %4807 = vst.msk [vmem:[#allocation2 + $0x70] sm:$0xff] %vm2781_vm7, %v4735_v36  ;;  %v3126_v51 = vadd.f32 %v3125_v43, %v9606_v21  ;;  %v4683_v52 = vpop.f32.mrf.mxu3 }
 0x4f2   : > { %v3411_v24 = vadd.f32 %v9607_v60, %v3126_v51  ;;  %v4487_v57 = vpop.f32.mrf.mxu1  ;;  %v9619_v60 = vld [vmem:[#allocation69_spill] sm:$0xff] }
 0x4f3   : > { %v4677_v17 = vadd.f32 %v4676_v35, %v4487_v57 }
 0x4f4   : > { %v3600_v12 = vadd.f32 %v9010_v18, %v3411_v24 }
 0x4f5   : > { %v4775_v44 = vadd.f32 %v4677_v17, %v3698_v4  ;;  %4526 = vmatmul.bf16.gmra.mxu1 %v5921_v56  ;;  %v3609_v27 = vpop.f32.mrf.mxu2  ;;  %v9620_v56 = vld [vmem:[#allocation59_spill] sm:$0xff]  ;;  %v9621_v4 = vld [vmem:[#allocation61_spill] sm:$0xff]  ;;  %v9622_v17 = vld [vmem:[#allocation130_spill] sm:$0xff] }
 0x4f6   : > { %v4736_v54 = vadd.f32 %v9609_v5, %v3600_v12 }
 0x4f7   : > { %v3128_v33 = vpop.f32.mrf.mxu0  ;;  %4847 = vst.msk [vmem:[#allocation2 + $0x1b0] sm:$0xff] %vm2781_vm7, %v4775_v44 }
 0x4f8   : > { %4808 = vst.msk [vmem:[#allocation2 + $0x78] sm:$0xff] %vm2781_vm7, %v4736_v54  ;;  %v3129_v45 = vadd.f32 %v3128_v33, %v9610_v13  ;;  %v4686_v18 = vpop.f32.mrf.mxu3  ;;  %v9623_v13 = vld [vmem:[#allocation72_spill] sm:$0xff] }
 0x4fa   : > { %v3414_v32 = vadd.f32 %v9611_v31, %v3129_v45  ;;  %5494 = vmatmul.msk.bf16.gmra.mxu0 %vm2781_vm7, %v9612_v39  ;;  %v4489_v1 = vpop.f32.mrf.mxu1  ;;  %v9624_v31 = vld [vmem:[#allocation62_spill] sm:$0xff] }
 0x4fb   : > { %v4679_v22 = vadd.f32 %v4678_v20, %v4489_v1 }
 0x4fc   : > { %v3603_v35 = vadd.f32 %v3602_v14, %v3414_v32  ;;  %v9617_v14 = vld [vmem:[#allocation58_spill] sm:$0xff] }
 0x4fd   : > { %v4776_v19 = vadd.f32 %v4679_v22, %v3700_v55  ;;  %v3612_v10 = vpop.f32.mrf.mxu2  ;;  %v3703_v43 = vadd.f32 %v9617_v14, %v8734_v3  ;;  %v3705_v3 = vadd.f32 %v9621_v4, %v8741_v61 }
 0x4fe   : > { %v4737_v62 = vadd.f32 %v9614_v7, %v3603_v35 }
 0x4ff   : > { %v3130_v6 = vpop.f32.mrf.mxu0  ;;  %4848 = vst.msk [vmem:[#allocation2 + $0x1b8] sm:$0xff] %vm2781_vm7, %v4776_v19 }
 0x500   : > { %4809 = vst.msk [vmem:[#allocation2 + $0x80] sm:$0xff] %vm2781_vm7, %v4737_v62  ;;  %v3131_v30 = vadd.f32 %v3130_v6, %v9615_v50  ;;  %v4688_v20 = vpop.f32.mrf.mxu3  ;;  %v9627_v62 = vld [vmem:[#allocation75_spill] sm:$0xff]  ;;  %v9628_v50 = vld [vmem:[#allocation65_spill] sm:$0xff] }
 0x502   : > { %v3416_v25 = vadd.f32 %v9616_v29, %v3131_v30  ;;  %v4492_v36 = vpop.f32.mrf.mxu1 }
 0x503   : > { %v4682_v8 = vadd.f32 %v4681_v15, %v4492_v36 }
 0x504   : > { %v3605_v49 = vadd.f32 %v3604_v37, %v3416_v25  ;;  %v9629_v25 = vld [vmem:[#allocation67_spill] sm:$0xff] }
 0x505   : > { %v4777_v21 = vadd.f32 %v4682_v8, %v3703_v43  ;;  %v3614_v12 = vpop.f32.mrf.mxu2  ;;  %v9630_v8 = vld [vmem:[#allocation78_spill] sm:$0xff] }
 0x506   : > { %v4738_v46 = vadd.f32 %v9618_v23, %v3605_v49 }
 0x507   : > { %v3133_v51 = vpop.f32.mrf.mxu0  ;;  %4849 = vst.msk [vmem:[#allocation2 + $0x1c0] sm:$0xff] %vm2781_vm7, %v4777_v21 }
 0x508   : > { %4810 = vst.msk [vmem:[#allocation2 + $0x88] sm:$0xff] %vm2781_vm7, %v4738_v46  ;;  %v3134_v24 = vadd.f32 %v3133_v51, %v9619_v60  ;;  %v4691_v44 = vpop.f32.mrf.mxu3  ;;  %v9631_v46 = vld [vmem:[#allocation68_spill] sm:$0xff] }
 0x50a   : > { %v3419_v57 = vadd.f32 %v9620_v56, %v3134_v24  ;;  %v4494_v0 = vpop.f32.mrf.mxu1  ;;  %v9632_v24 = vld [vmem:[#allocation70_spill] sm:$0xff]  ;;  %v9633_v56 = vld [vmem:[#allocation132_spill] sm:$0xff] }
 0x50b   : > { %v4684_v15 = vadd.f32 %v4683_v52, %v4494_v0 }
 0x50c   : > { %v3608_v37 = vadd.f32 %v3607_v58, %v3419_v57  ;;  %v9625_v58 = vld [vmem:[#allocation64_spill] sm:$0xff] }
 0x50d   : > { %v4778_v54 = vadd.f32 %v4684_v15, %v3705_v3  ;;  %v3708_v35 = vadd.f32 %v9625_v58, %v8747_v53  ;;  %v3617_v52 = vpop.f32.mrf.mxu2  ;;  %v3710_v53 = vadd.f32 %v9629_v25, %v8754_v40  ;;  %v3713_v40 = vadd.f32 %v9632_v24, %v8760_v34  ;;  %v9635_v15 = vld [vmem:[#allocation71_spill] sm:$0xff]  ;;  %v9639_v58 = vld [vmem:[#allocation74_spill] sm:$0xff] }
 0x50e   : > { %v4739_v5 = vadd.f32 %v9622_v17, %v3608_v37  ;;  %v9634_v37 = vld [vmem:[#allocation81_spill] sm:$0xff] }
 0x50f   : > { %v3135_v33 = vpop.f32.mrf.mxu0  ;;  %4850 = vst.msk [vmem:[#allocation2 + $0x1c8] sm:$0xff] %vm2781_vm7, %v4778_v54 }
 0x510   : > { %4811 = vst.msk [vmem:[#allocation2 + $0x90] sm:$0xff] %vm2781_vm7, %v4739_v5  ;;  %v3136_v45 = vadd.f32 %v3135_v33, %v9623_v13  ;;  %v4693_v6 = vpop.f32.mrf.mxu3  ;;  %v9637_v13 = vld [vmem:[#allocation133_spill] sm:$0xff] }
 0x512   : > { %v3421_v32 = vadd.f32 %v9624_v31, %v3136_v45  ;;  %v4497_v39 = vpop.f32.mrf.mxu1 }
 0x513   : > { %v4687_v61 = vadd.f32 %v4686_v18, %v4497_v39  ;;  %v9638_v39 = vld [vmem:[#allocation84_spill] sm:$0xff] }
 0x514   : > { %v3610_v1 = vadd.f32 %v3609_v27, %v3421_v32 }
 0x515   : > { %v4779_v22 = vadd.f32 %v4687_v61, %v3708_v35  ;;  %v3619_v14 = vpop.f32.mrf.mxu2 }
 0x516   : > { %v4740_v55 = vadd.f32 %v9626_v9, %v3610_v1 }
 0x517   : > { %v3138_v7 = vpop.f32.mrf.mxu0  ;;  %4851 = vst.msk [vmem:[#allocation2 + $0x1d0] sm:$0xff] %vm2781_vm7, %v4779_v22 }
 0x518   : > { %4812 = vst.msk [vmem:[#allocation2 + $0x98] sm:$0xff] %vm2781_vm7, %v4740_v55  ;;  %v3139_v19 = vadd.f32 %v3138_v7, %v9627_v62  ;;  %v4696_v51 = vpop.f32.mrf.mxu3  ;;  %v9640_v55 = vld [vmem:[#allocation76_spill] sm:$0xff]  ;;  %v9641_v7 = vld [vmem:[#allocation134_spill] sm:$0xff] }
 0x51a   : > { %v3424_v30 = vadd.f32 %v9628_v50, %v3139_v19  ;;  %v4499_v29 = vpop.f32.mrf.mxu1 }
 0x51b   : > { %v4689_v18 = vadd.f32 %v4688_v20, %v4499_v29 }
 0x51c   : > { %v3613_v27 = vadd.f32 %v3612_v10, %v3424_v30  ;;  %v9642_v30 = vld [vmem:[#allocation87_spill] sm:$0xff] }
 0x51d   : > { %v4780_v49 = vadd.f32 %v4689_v18, %v3710_v53  ;;  %v3622_v3 = vpop.f32.mrf.mxu2 }
 0x51e   : > { %v4741_v36 = vadd.f32 %v8718_v63, %v3613_v27  ;;  %v9643_v27 = vld [vmem:[#allocation77_spill] sm:$0xff] }
 0x51f   : > { %v3140_v43 = vpop.f32.mrf.mxu0  ;;  %4852 = vst.msk [vmem:[#allocation2 + $0x1d8] sm:$0xff] %vm2781_vm7, %v4780_v49 }
 0x520   : > { %4813 = vst.msk [vmem:[#allocation2 + $0xa0] sm:$0xff] %vm2781_vm7, %v4741_v36  ;;  %v3141_v23 = vadd.f32 %v3140_v43, %v9630_v8  ;;  %v9644_v36 = vld [vmem:[#allocation79_spill] sm:$0xff] }
 0x521   : > { %v3720_v49 = vadd.f32 %v9644_v36, %v8780_v11  ;;  %v9645_v43 = vld [vmem:[#allocation135_spill] sm:$0xff] }
 0x522   : > { %v3426_v21 = vadd.f32 %v9631_v46, %v3141_v23  ;;  %v4502_v60 = vpop.f32.mrf.mxu1 }
 0x523   : > { %v4692_v20 = vadd.f32 %v4691_v44, %v4502_v60  ;;  %v4698_v44 = vpop.f32.mrf.mxu3 }
 0x524   : > { %v3615_v10 = vadd.f32 %v3614_v12, %v3426_v21  ;;  %v9636_v12 = vld [vmem:[#allocation73_spill] sm:$0xff]  ;;  %v9646_v21 = vld [vmem:[#allocation90_spill] sm:$0xff] }
 0x525   : > { %v4781_v57 = vadd.f32 %v4692_v20, %v3713_v40  ;;  %v3715_v33 = vadd.f32 %v9636_v12, %v8767_v59  ;;  %v3624_v61 = vpop.f32.mrf.mxu2  ;;  %v3718_v59 = vadd.f32 %v9640_v55, %v8773_v16 }
 0x526   : > { %v4742_v63 = vadd.f32 %v9633_v56, %v3615_v10  ;;  %v9647_v10 = vld [vmem:[#allocation80_spill] sm:$0xff]  ;;  %v9648_v56 = vld [vmem:[#allocation82_spill] sm:$0xff] }
 0x527   : > { %v3143_v0 = vpop.f32.mrf.mxu0  ;;  %4853 = vst.msk [vmem:[#allocation2 + $0x1e0] sm:$0xff] %vm2781_vm7, %v4781_v57  ;;  %v3723_v11 = vadd.f32 %v9648_v56, %v8786_v47  ;;  %v9649_v57 = vld [vmem:[#allocation136_spill] sm:$0xff] }
 0x528   : > { %4814 = vst.msk [vmem:[#allocation2 + $0xa8] sm:$0xff] %vm2781_vm7, %v4742_v63  ;;  %v3144_v4 = vadd.f32 %v3143_v0, %v9634_v37 }
 0x52a   : > { %v3429_v17 = vadd.f32 %v9635_v15, %v3144_v4  ;;  %v4504_v5 = vpop.f32.mrf.mxu1  ;;  %v9650_v15 = vld [vmem:[#allocation93_spill] sm:$0xff] }
 0x52b   : > { %v4694_v34 = vadd.f32 %v4693_v6, %v4504_v5  ;;  %v4701_v6 = vpop.f32.mrf.mxu3  ;;  %v9651_v5 = vld [vmem:[#allocation83_spill] sm:$0xff] }
 0x52c   : > { %v3618_v54 = vadd.f32 %v3617_v52, %v3429_v17 }
 0x52d   : > { %v4782_v31 = vadd.f32 %v4694_v34, %v3715_v33 }
 0x52e   : > { %v4743_v45 = vadd.f32 %v9637_v13, %v3618_v54 }
 0x52f   : > { %v3145_v32 = vpop.f32.mrf.mxu0  ;;  %4854 = vst.msk [vmem:[#allocation2 + $0x1e8] sm:$0xff] %vm2781_vm7, %v4782_v31 }
 0x530   : > { %4815 = vst.msk [vmem:[#allocation2 + $0xb0] sm:$0xff] %vm2781_vm7, %v4743_v45  ;;  %v3146_v1 = vadd.f32 %v3145_v32, %v9638_v39  ;;  %v9653_v45 = vld [vmem:[#allocation137_spill] sm:$0xff] }
 0x532   : > { %v3431_v35 = vadd.f32 %v9639_v58, %v3146_v1  ;;  %v4507_v9 = vpop.f32.mrf.mxu1  ;;  %v9654_v1 = vld [vmem:[#allocation96_spill] sm:$0xff] }
 0x533   : > { %v4697_v22 = vadd.f32 %v4696_v51, %v4507_v9  ;;  %v4703_v60 = vpop.f32.mrf.mxu3 }
 0x534   : > { %v3620_v52 = vadd.f32 %v3619_v14, %v3431_v35  ;;  %v3627_v14 = vpop.f32.mrf.mxu2 }
 0x535   : > { %v4783_v19 = vadd.f32 %v4697_v22, %v3718_v59  ;;  %v9656_v59 = vld [vmem:[#allocation88_spill] sm:$0xff] }
 0x536   : > { %v4744_v62 = vadd.f32 %v9641_v7, %v3620_v52  ;;  %v3728_v22 = vadd.f32 %v9656_v59, %v8799_v48  ;;  %v9673_v59 = vld [vmem:[#allocation142_spill] sm:$0xff] }
 0x537   : > { %v3148_v50 = vpop.f32.mrf.mxu0  ;;  %4855 = vst.msk [vmem:[#allocation2 + $0x1f0] sm:$0xff] %vm2781_vm7, %v4783_v19 }
 0x538   : > { %4816 = vst.msk [vmem:[#allocation2 + $0xb8] sm:$0xff] %vm2781_vm7, %v4744_v62  ;;  %v3149_v29 = vadd.f32 %v3148_v50, %v9642_v30  ;;  %v9657_v62 = vld [vmem:[#allocation138_spill] sm:$0xff]  ;;  %v9658_v30 = vld [vmem:[#allocation99_spill] sm:$0xff] }
 0x53a   : > { %v3434_v25 = vadd.f32 %v9643_v27, %v3149_v29  ;;  %v4509_v53 = vpop.f32.mrf.mxu1  ;;  %v9659_v27 = vld [vmem:[#allocation89_spill] sm:$0xff] }
 0x53b   : > { %v4699_v16 = vadd.f32 %v4698_v44, %v4509_v53  ;;  %v4706_v12 = vpop.f32.mrf.mxu3  ;;  %v9652_v44 = vld [vmem:[#allocation85_spill] sm:$0xff] }
 0x53c   : > { %v3623_v18 = vadd.f32 %v3622_v3, %v3434_v25  ;;  %v3629_v4 = vpop.f32.mrf.mxu2  ;;  %v3725_v47 = vadd.f32 %v9652_v44, %v8793_v28  ;;  %v9669_v44 = vld [vmem:[#allocation141_spill] sm:$0xff] }
 0x53d   : > { %v4784_v23 = vadd.f32 %v4699_v16, %v3720_v49  ;;  %v9660_v49 = vld [vmem:[#allocation91_spill] sm:$0xff] }
 0x53e   : > { %v4745_v8 = vadd.f32 %v9645_v43, %v3623_v18  ;;  %v3730_v48 = vadd.f32 %v9660_v49, %v8806_v2  ;;  %v9661_v43 = vld [vmem:[#allocation139_spill] sm:$0xff] }
 0x53f   : > { %v3150_v46 = vpop.f32.mrf.mxu0  ;;  %4856 = vst.msk [vmem:[#allocation2 + $0x1f8] sm:$0xff] %vm2781_vm7, %v4784_v23 }
 0x540   : > { %4817 = vst.msk [vmem:[#allocation2 + $0xc0] sm:$0xff] %vm2781_vm7, %v4745_v8  ;;  %v3151_v51 = vadd.f32 %v3150_v46, %v9646_v21  ;;  %v9662_v21 = vld [vmem:[#allocation102_spill] sm:$0xff] }
 0x542   : > { %v3436_v24 = vadd.f32 %v9647_v10, %v3151_v51  ;;  %v4512_v40 = vpop.f32.mrf.mxu1 }
 0x543   : > { %v4702_v63 = vadd.f32 %v4701_v6, %v4512_v40  ;;  %v4708_v7 = vpop.f32.mrf.mxu3 }
 0x544   : > { %v3625_v20 = vadd.f32 %v3624_v61, %v3436_v24  ;;  %v3632_v35 = vpop.f32.mrf.mxu2  ;;  %v9655_v61 = vld [vmem:[#allocation86_spill] sm:$0xff] }
 0x545   : > { %v4785_v37 = vadd.f32 %v4702_v63, %v3723_v11  ;;  %v9665_v63 = vld [vmem:[#allocation140_spill] sm:$0xff] }
 0x546   : > { %v4746_v0 = vadd.f32 %v9649_v57, %v3625_v20  ;;  %v9664_v20 = vld [vmem:[#allocation94_spill] sm:$0xff] }
 0x547   : > { %v3153_v3 = vpop.f32.mrf.mxu0  ;;  %4857 = vst.msk [vmem:[#allocation2 + $0x200] sm:$0xff] %vm2781_vm7, %v4785_v37  ;;  %v3733_v56 = vadd.f32 %v9664_v20, %v8813_v41 }
 0x548   : > { %4818 = vst.msk [vmem:[#allocation2 + $0xc8] sm:$0xff] %vm2781_vm7, %v4746_v0  ;;  %v3154_v17 = vadd.f32 %v3153_v3, %v9650_v15  ;;  %v9666_v3 = vld [vmem:[#allocation105_spill] sm:$0xff] }
 0x54a   : > { %v3439_v54 = vadd.f32 %v9651_v5, %v3154_v17  ;;  %v4514_v33 = vpop.f32.mrf.mxu1  ;;  %v9667_v17 = vld [vmem:[#allocation95_spill] sm:$0xff] }
 0x54b   : > { %v4704_v13 = vadd.f32 %v4703_v60, %v4514_v33  ;;  %v9663_v60 = vld [vmem:[#allocation92_spill] sm:$0xff]  ;;  %v9668_v33 = vld [vmem:[#allocation97_spill] sm:$0xff] }
 0x54c   : > { %v3628_v34 = vadd.f32 %v3627_v14, %v3439_v54  ;;  %v3634_v53 = vpop.f32.mrf.mxu2  ;;  %v4711_v14 = vpop.f32.mrf.mxu3  ;;  %v3735_v41 = vadd.f32 %v9668_v33, %v8823_v42 }
 0x54d   : > { %v4786_v32 = vadd.f32 %v4704_v13, %v3725_v47 }
 0x54e   : > { %v4747_v31 = vadd.f32 %v9653_v45, %v3628_v34 }
 0x54f   : > { %v3155_v39 = vpop.f32.mrf.mxu0  ;;  %4858 = vst.msk [vmem:[#allocation2 + $0x208] sm:$0xff] %vm2781_vm7, %v4786_v32  ;;  %v9670_v32 = vld [vmem:[#allocation106_spill] sm:$0xff] }
 0x550   : > { %4819 = vst.msk [vmem:[#allocation2 + $0xd0] sm:$0xff] %vm2781_vm7, %v4747_v31  ;;  %v3156_v58 = vadd.f32 %v3155_v39, %v9654_v1 }
 0x552   : > { %v3441_v9 = vadd.f32 %v9655_v61, %v3156_v58  ;;  %v4517_v52 = vpop.f32.mrf.mxu1  ;;  %v9671_v58 = vld [vmem:[#allocation98_spill] sm:$0xff] }
 0x553   : > { %v4707_v28 = vadd.f32 %v4706_v12, %v4517_v52  ;;  %v9672_v52 = vld [vmem:[#allocation100_spill] sm:$0xff] }
 0x554   : > { %v3630_v55 = vadd.f32 %v3629_v4, %v3441_v9  ;;  %v3637_v11 = vpop.f32.mrf.mxu2  ;;  %v4713_v4 = vpop.f32.mrf.mxu3  ;;  %v3738_v42 = vadd.f32 %v9672_v52, %v8832_v38 }
 0x555   : > { %v4787_v6 = vadd.f32 %v4707_v28, %v3728_v22 }
 0x556   : > { %v4748_v19 = vadd.f32 %v9657_v62, %v3630_v55  ;;  %v9674_v62 = vld [vmem:[#allocation108_spill] sm:$0xff] }
 0x557   : > { %v3158_v50 = vpop.f32.mrf.mxu0  ;;  %4859 = vst.msk [vmem:[#allocation2 + $0x210] sm:$0xff] %vm2781_vm7, %v4787_v6 }
 0x558   : > { %4820 = vst.msk [vmem:[#allocation2 + $0xd8] sm:$0xff] %vm2781_vm7, %v4748_v19  ;;  %v3159_v29 = vadd.f32 %v3158_v50, %v9658_v30  ;;  %v9675_v50 = vld [vmem:[#allocation101_spill] sm:$0xff] }
 0x55a   : > { %v3444_v25 = vadd.f32 %v9659_v27, %v3159_v29  ;;  %v4519_v18 = vpop.f32.mrf.mxu1 }
 0x55b   : > { %v4709_v16 = vadd.f32 %v4708_v7, %v4519_v18 }
 0x55c   : > { %v3633_v36 = vadd.f32 %v3632_v35, %v3444_v25  ;;  %v3639_v45 = vpop.f32.mrf.mxu2  ;;  %v4716_v1 = vpop.f32.mrf.mxu3 }
 0x55d   : > { %v4788_v23 = vadd.f32 %v4709_v16, %v3730_v48 }
 0x55e   : > { %v4749_v8 = vadd.f32 %v9661_v43, %v3633_v36  ;;  %v9677_v36 = vld [vmem:[#allocation143_spill] sm:$0xff] }
 0x55f   : > { %v3160_v46 = vpop.f32.mrf.mxu0  ;;  %4860 = vst.msk [vmem:[#allocation2 + $0x218] sm:$0xff] %vm2781_vm7, %v4788_v23 }
 0x560   : > { %4821 = vst.msk [vmem:[#allocation2 + $0xe0] sm:$0xff] %vm2781_vm7, %v4749_v8  ;;  %v3161_v51 = vadd.f32 %v3160_v46, %v9662_v21  ;;  %v9679_v8 = vld [vmem:[#allocation104_spill] sm:$0xff] }
 0x562   : > { %v3446_v10 = vadd.f32 %v9663_v60, %v3161_v51  ;;  %v4522_v24 = vpop.f32.mrf.mxu1  ;;  %v9680_v51 = vld [vmem:[#allocation144_spill] sm:$0xff] }
 0x563   : > { %v4712_v2 = vadd.f32 %v4711_v14, %v4522_v24  ;;  %v9678_v14 = vld [vmem:[#allocation110_spill] sm:$0xff] }
 0x564   : > { %v3635_v40 = vadd.f32 %v3634_v53, %v3446_v10  ;;  %v3642_v6 = vpop.f32.mrf.mxu2  ;;  %v4718_v29 = vpop.f32.mrf.mxu3  ;;  %v9676_v53 = vld [vmem:[#allocation103_spill] sm:$0xff] }
 0x565   : > { %v4789_v0 = vadd.f32 %v4712_v2, %v3733_v56  ;;  %v3740_v38 = vadd.f32 %v9676_v53, %v8844_v26 }
 0x566   : > { %v4750_v57 = vadd.f32 %v9665_v63, %v3635_v40 }
 0x567   : > { %v3163_v37 = vpop.f32.mrf.mxu0  ;;  %4861 = vst.msk [vmem:[#allocation2 + $0x220] sm:$0xff] %vm2781_vm7, %v4789_v0 }
 0x568   : > { %4822 = vst.msk [vmem:[#allocation2 + $0xe8] sm:$0xff] %vm2781_vm7, %v4750_v57  ;;  %v3164_v15 = vadd.f32 %v3163_v37, %v9666_v3 }
 0x56a   : > { %v3449_v5 = vadd.f32 %v9667_v17, %v3164_v15  ;;  %v4524_v54 = vpop.f32.mrf.mxu1 }
 0x56b   : > { %v4714_v34 = vadd.f32 %v4713_v4, %v4524_v54 }
 0x56c   : > { %v3638_v12 = vadd.f32 %v3637_v11, %v3449_v5  ;;  %v3644_v46 = vpop.f32.mrf.mxu2 }
 0x56d   : > { %v4790_v13 = vadd.f32 %v4714_v34, %v3735_v41 }
 0x56e   : > { %v4751_v47 = vadd.f32 %v9669_v44, %v3638_v12 }
 0x56f   : > { %v3165_v31 = vpop.f32.mrf.mxu0  ;;  %4862 = vst.msk [vmem:[#allocation2 + $0x228] sm:$0xff] %vm2781_vm7, %v4790_v13 }
 0x570   : > { %4823 = vst.msk [vmem:[#allocation2 + $0xf0] sm:$0xff] %vm2781_vm7, %v4751_v47  ;;  %v3166_v39 = vadd.f32 %v3165_v31, %v9670_v32 }
 0x572   : > { %v3451_v35 = vadd.f32 %v9671_v58, %v3166_v39  ;;  %v4527_v61 = vpop.f32.mrf.mxu1 }
 0x573   : > { %v4717_v55 = vadd.f32 %v4716_v1, %v4527_v61 }
 0x574   : > { %v3640_v9 = vadd.f32 %v3639_v45, %v3451_v35 }
 0x575   : > { %v4791_v28 = vadd.f32 %v4717_v55, %v3738_v42 }
 0x576   : > { %v4752_v22 = vadd.f32 %v9673_v59, %v3640_v9 }
 0x577   : > { %v3168_v7 = vpop.f32.mrf.mxu0  ;;  %4863 = vst.msk [vmem:[#allocation2 + $0x230] sm:$0xff] %vm2781_vm7, %v4791_v28 }
 0x578   : > { %4824 = vst.msk [vmem:[#allocation2 + $0xf8] sm:$0xff] %vm2781_vm7, %v4752_v22  ;;  %v3169_v19 = vadd.f32 %v3168_v7, %v9674_v62 }
 0x57a   : > { %v3454_v30 = vadd.f32 %v9675_v50, %v3169_v19  ;;  %v4529_v27 = vpop.f32.mrf.mxu1 }
 0x57b   : > { %v4719_v18 = vadd.f32 %v4718_v29, %v4529_v27 }
 0x57c   : > { %v3643_v25 = vadd.f32 %v3642_v6, %v3454_v30 }
 0x57d   : > { %v4792_v48 = vadd.f32 %v4719_v18, %v3740_v38 }
 0x57e   : > { %v4753_v49 = vadd.f32 %v9677_v36, %v3643_v25 }
 0x57f   : > { %v3170_v16 = vpop.f32.mrf.mxu0  ;;  %4864 = vst.msk [vmem:[#allocation2 + $0x238] sm:$0xff] %vm2781_vm7, %v4792_v48 }
 0x580   : > { %4825 = vst.msk [vmem:[#allocation2 + $0x100] sm:$0xff] %vm2781_vm7, %v4753_v49  ;;  %v3171_v43 = vadd.f32 %v3170_v16, %v9678_v14 }
 0x582   : > { %v3456_v23 = vadd.f32 %v9679_v8, %v3171_v43 }
 0x584   : > { %v3645_v21 = vadd.f32 %v3644_v46, %v3456_v23  ;;  %4868 = sbr.rel (%p6010_p8) target bundleno = 1490 (0x5d2), region = 48 }
 0x586   : > { %v4754_v60 = vadd.f32 %v9680_v51, %v3645_v21 }
 0x588   : > { %4826 = vst.msk [vmem:[#allocation2 + $0x108] sm:$0xff] %vm2781_vm7, %v4754_v60 }
 0x589   : > { %v4869_v26 = vld [vmem:[#allocation2] sm:$0xff]  ;;  %v4870_v10 = vld [vmem:[#allocation2 + $0x8] sm:$0xff]  ;;  %v4871_v24 = vld [vmem:[#allocation2 + $0x10] sm:$0xff] }
 0x58a   : > { %4941 = vst.msk [vmem:[%s6390_s17] sm:$0xff] %vm2781_vm7, %v4869_v26  ;;  %v4872_v40 = vld [vmem:[#allocation2 + $0x18] sm:$0xff]  ;;  %v4873_v20 = vld [vmem:[#allocation2 + $0x20] sm:$0xff]  ;;  %v4874_v56 = vld [vmem:[#allocation2 + $0x28] sm:$0xff] }
 0x58b   : > { %4942 = vst.msk [vmem:[%s6390_s17 + $0x8] sm:$0xff] %vm2781_vm7, %v4870_v10  ;;  %v4875_v2 = vld [vmem:[#allocation2 + $0x30] sm:$0xff]  ;;  %v4876_v11 = vld [vmem:[#allocation2 + $0x38] sm:$0xff]  ;;  %v4877_v63 = vld [vmem:[#allocation2 + $0x40] sm:$0xff] }
 0x58c   : > { %4943 = vst.msk [vmem:[%s6390_s17 + $0x10] sm:$0xff] %vm2781_vm7, %v4871_v24  ;;  %v4878_v57 = vld [vmem:[#allocation2 + $0x48] sm:$0xff]  ;;  %v4879_v0 = vld [vmem:[#allocation2 + $0x50] sm:$0xff]  ;;  %v4880_v37 = vld [vmem:[#allocation2 + $0x58] sm:$0xff] }
 0x58d   : > { %4944 = vst.msk [vmem:[%s6390_s17 + $0x18] sm:$0xff] %vm2781_vm7, %v4872_v40  ;;  %v4881_v4 = vld [vmem:[#allocation2 + $0x60] sm:$0xff]  ;;  %v4882_v3 = vld [vmem:[#allocation2 + $0x68] sm:$0xff]  ;;  %v4883_v15 = vld [vmem:[#allocation2 + $0x70] sm:$0xff] }
 0x58e   : > { %4945 = vst.msk [vmem:[%s6390_s17 + $0x20] sm:$0xff] %vm2781_vm7, %v4873_v20  ;;  %v4884_v17 = vld [vmem:[#allocation2 + $0x78] sm:$0xff]  ;;  %v4885_v5 = vld [vmem:[#allocation2 + $0x80] sm:$0xff]  ;;  %v4886_v54 = vld [vmem:[#allocation2 + $0x88] sm:$0xff] }
 0x58f   : > { %4946 = vst.msk [vmem:[%s6390_s17 + $0x28] sm:$0xff] %vm2781_vm7, %v4874_v56  ;;  %v4887_v12 = vld [vmem:[#allocation2 + $0x90] sm:$0xff]  ;;  %v4888_v33 = vld [vmem:[#allocation2 + $0x98] sm:$0xff]  ;;  %v4889_v41 = vld [vmem:[#allocation2 + $0xa0] sm:$0xff] }
 0x590   : > { %4947 = vst.msk [vmem:[%s6390_s17 + $0x30] sm:$0xff] %vm2781_vm7, %v4875_v2  ;;  %v4890_v34 = vld [vmem:[#allocation2 + $0xa8] sm:$0xff]  ;;  %v4891_v44 = vld [vmem:[#allocation2 + $0xb0] sm:$0xff]  ;;  %v4892_v47 = vld [vmem:[#allocation2 + $0xb8] sm:$0xff] }
 0x591   : > { %4948 = vst.msk [vmem:[%s6390_s17 + $0x38] sm:$0xff] %vm2781_vm7, %v4876_v11  ;;  %v4893_v13 = vld [vmem:[#allocation2 + $0xc0] sm:$0xff]  ;;  %v4894_v45 = vld [vmem:[#allocation2 + $0xc8] sm:$0xff]  ;;  %v4895_v31 = vld [vmem:[#allocation2 + $0xd0] sm:$0xff] }
 0x592   : > { %4949 = vst.msk [vmem:[%s6390_s17 + $0x40] sm:$0xff] %vm2781_vm7, %v4877_v63  ;;  %v4896_v32 = vld [vmem:[#allocation2 + $0xd8] sm:$0xff]  ;;  %v4897_v39 = vld [vmem:[#allocation2 + $0xe0] sm:$0xff]  ;;  %v4898_v1 = vld [vmem:[#allocation2 + $0xe8] sm:$0xff] }
 0x593   : > { %4950 = vst.msk [vmem:[%s6390_s17 + $0x48] sm:$0xff] %vm2781_vm7, %v4878_v57  ;;  %v4899_v58 = vld [vmem:[#allocation2 + $0xf0] sm:$0xff]  ;;  %v4900_v35 = vld [vmem:[#allocation2 + $0xf8] sm:$0xff]  ;;  %v4901_v61 = vld [vmem:[#allocation2 + $0x100] sm:$0xff] }
 0x594   : > { %4951 = vst.msk [vmem:[%s6390_s17 + $0x50] sm:$0xff] %vm2781_vm7, %v4879_v0  ;;  %v4902_v9 = vld [vmem:[#allocation2 + $0x108] sm:$0xff]  ;;  %v4903_v52 = vld [vmem:[#allocation2 + $0x110] sm:$0xff]  ;;  %v4904_v42 = vld [vmem:[#allocation2 + $0x118] sm:$0xff] }
 0x595   : > { %4952 = vst.msk [vmem:[%s6390_s17 + $0x58] sm:$0xff] %vm2781_vm7, %v4880_v37  ;;  %v4905_v55 = vld [vmem:[#allocation2 + $0x120] sm:$0xff]  ;;  %v4906_v59 = vld [vmem:[#allocation2 + $0x128] sm:$0xff]  ;;  %v4907_v22 = vld [vmem:[#allocation2 + $0x130] sm:$0xff] }
 0x596   : > { %4953 = vst.msk [vmem:[%s6390_s17 + $0x60] sm:$0xff] %vm2781_vm7, %v4881_v4  ;;  %v4908_v28 = vld [vmem:[#allocation2 + $0x138] sm:$0xff]  ;;  %v4909_v7 = vld [vmem:[#allocation2 + $0x140] sm:$0xff]  ;;  %v4910_v62 = vld [vmem:[#allocation2 + $0x148] sm:$0xff] }
 0x597   : > { %4954 = vst.msk [vmem:[%s6390_s17 + $0x68] sm:$0xff] %vm2781_vm7, %v4882_v3  ;;  %v4911_v19 = vld [vmem:[#allocation2 + $0x150] sm:$0xff]  ;;  %v4912_v6 = vld [vmem:[#allocation2 + $0x158] sm:$0xff]  ;;  %v4913_v50 = vld [vmem:[#allocation2 + $0x160] sm:$0xff] }
 0x598   : > { %4955 = vst.msk [vmem:[%s6390_s17 + $0x70] sm:$0xff] %vm2781_vm7, %v4883_v15  ;;  %v4914_v30 = vld [vmem:[#allocation2 + $0x168] sm:$0xff]  ;;  %v4915_v29 = vld [vmem:[#allocation2 + $0x170] sm:$0xff]  ;;  %v4916_v27 = vld [vmem:[#allocation2 + $0x178] sm:$0xff] }
 0x599   : > { %4956 = vst.msk [vmem:[%s6390_s17 + $0x78] sm:$0xff] %vm2781_vm7, %v4884_v17  ;;  %v4917_v25 = vld [vmem:[#allocation2 + $0x180] sm:$0xff]  ;;  %v4918_v53 = vld [vmem:[#allocation2 + $0x188] sm:$0xff]  ;;  %v4919_v38 = vld [vmem:[#allocation2 + $0x190] sm:$0xff] }
 0x59a   : > { %4957 = vst.msk [vmem:[%s6390_s17 + $0x80] sm:$0xff] %vm2781_vm7, %v4885_v5  ;;  %v4920_v18 = vld [vmem:[#allocation2 + $0x198] sm:$0xff]  ;;  %v4921_v36 = vld [vmem:[#allocation2 + $0x1a0] sm:$0xff]  ;;  %v4922_v49 = vld [vmem:[#allocation2 + $0x1a8] sm:$0xff] }
 0x59b   : > { %4958 = vst.msk [vmem:[%s6390_s17 + $0x88] sm:$0xff] %vm2781_vm7, %v4886_v54  ;;  %v4923_v48 = vld [vmem:[#allocation2 + $0x1b0] sm:$0xff]  ;;  %v4924_v16 = vld [vmem:[#allocation2 + $0x1b8] sm:$0xff]  ;;  %v4925_v14 = vld [vmem:[#allocation2 + $0x1c0] sm:$0xff] }
 0x59c   : > { %4959 = vst.msk [vmem:[%s6390_s17 + $0x90] sm:$0xff] %vm2781_vm7, %v4887_v12  ;;  %v4926_v43 = vld [vmem:[#allocation2 + $0x1c8] sm:$0xff]  ;;  %v4927_v8 = vld [vmem:[#allocation2 + $0x1d0] sm:$0xff]  ;;  %v4928_v23 = vld [vmem:[#allocation2 + $0x1d8] sm:$0xff] }
 0x59d   : > { %4960 = vst.msk [vmem:[%s6390_s17 + $0x98] sm:$0xff] %vm2781_vm7, %v4888_v33  ;;  %v4929_v46 = vld [vmem:[#allocation2 + $0x1e0] sm:$0xff]  ;;  %v4930_v21 = vld [vmem:[#allocation2 + $0x1e8] sm:$0xff]  ;;  %v4931_v51 = vld [vmem:[#allocation2 + $0x1f0] sm:$0xff] }
 0x59e   : > { %4961 = vst.msk [vmem:[%s6390_s17 + $0xa0] sm:$0xff] %vm2781_vm7, %v4889_v41  ;;  %v4932_v60 = vld [vmem:[#allocation2 + $0x1f8] sm:$0xff]  ;;  %v4933_v26 = vld [vmem:[#allocation2 + $0x200] sm:$0xff]  ;;  %v4934_v10 = vld [vmem:[#allocation2 + $0x208] sm:$0xff] }
 0x59f   : > { %4962 = vst.msk [vmem:[%s6390_s17 + $0xa8] sm:$0xff] %vm2781_vm7, %v4890_v34  ;;  %v4935_v24 = vld [vmem:[#allocation2 + $0x210] sm:$0xff]  ;;  %v4936_v40 = vld [vmem:[#allocation2 + $0x218] sm:$0xff]  ;;  %v4937_v20 = vld [vmem:[#allocation2 + $0x220] sm:$0xff] }
 0x5a0   : > { %4963 = vst.msk [vmem:[%s6390_s17 + $0xb0] sm:$0xff] %vm2781_vm7, %v4891_v44  ;;  %v4938_v56 = vld [vmem:[#allocation2 + $0x228] sm:$0xff]  ;;  %v4939_v2 = vld [vmem:[#allocation2 + $0x230] sm:$0xff]  ;;  %v4940_v11 = vld [vmem:[#allocation2 + $0x238] sm:$0xff] }
 0x5a1   : > { %4964 = vst.msk [vmem:[%s6390_s17 + $0xb8] sm:$0xff] %vm2781_vm7, %v4892_v47 }
 0x5a2   : > { %4965 = vst.msk [vmem:[%s6390_s17 + $0xc0] sm:$0xff] %vm2781_vm7, %v4893_v13 }
 0x5a3   : > { %4966 = vst.msk [vmem:[%s6390_s17 + $0xc8] sm:$0xff] %vm2781_vm7, %v4894_v45 }
 0x5a4   : > { %4967 = vst.msk [vmem:[%s6390_s17 + $0xd0] sm:$0xff] %vm2781_vm7, %v4895_v31 }
 0x5a5   : > { %4968 = vst.msk [vmem:[%s6390_s17 + $0xd8] sm:$0xff] %vm2781_vm7, %v4896_v32 }
 0x5a6   : > { %4969 = vst.msk [vmem:[%s6390_s17 + $0xe0] sm:$0xff] %vm2781_vm7, %v4897_v39 }
 0x5a7   : > { %4970 = vst.msk [vmem:[%s6390_s17 + $0xe8] sm:$0xff] %vm2781_vm7, %v4898_v1 }
 0x5a8   : > { %4971 = vst.msk [vmem:[%s6390_s17 + $0xf0] sm:$0xff] %vm2781_vm7, %v4899_v58 }
 0x5a9   : > { %4972 = vst.msk [vmem:[%s6390_s17 + $0xf8] sm:$0xff] %vm2781_vm7, %v4900_v35 }
 0x5aa   : > { %4973 = vst.msk [vmem:[%s6390_s17 + $0x100] sm:$0xff] %vm2781_vm7, %v4901_v61 }
 0x5ab   : > { %4974 = vst.msk [vmem:[%s6390_s17 + $0x108] sm:$0xff] %vm2781_vm7, %v4902_v9 }
 0x5ac   : > { %4975 = vst.msk [vmem:[%s6390_s17 + $0x110] sm:$0xff] %vm2781_vm7, %v4903_v52 }
 0x5ad   : > { %4976 = vst.msk [vmem:[%s6390_s17 + $0x118] sm:$0xff] %vm2781_vm7, %v4904_v42 }
 0x5ae   : > { %4977 = vst.msk [vmem:[%s6390_s17 + $0x120] sm:$0xff] %vm2781_vm7, %v4905_v55 }
 0x5af   : > { %4978 = vst.msk [vmem:[%s6390_s17 + $0x128] sm:$0xff] %vm2781_vm7, %v4906_v59 }
 0x5b0   : > { %4979 = vst.msk [vmem:[%s6390_s17 + $0x130] sm:$0xff] %vm2781_vm7, %v4907_v22 }
 0x5b1   : > { %4980 = vst.msk [vmem:[%s6390_s17 + $0x138] sm:$0xff] %vm2781_vm7, %v4908_v28 }
 0x5b2   : > { %4981 = vst.msk [vmem:[%s6390_s17 + $0x140] sm:$0xff] %vm2781_vm7, %v4909_v7 }
 0x5b3   : > { %4982 = vst.msk [vmem:[%s6390_s17 + $0x148] sm:$0xff] %vm2781_vm7, %v4910_v62 }
 0x5b4   : > { %4983 = vst.msk [vmem:[%s6390_s17 + $0x150] sm:$0xff] %vm2781_vm7, %v4911_v19 }
 0x5b5   : > { %4984 = vst.msk [vmem:[%s6390_s17 + $0x158] sm:$0xff] %vm2781_vm7, %v4912_v6 }
 0x5b6   : > { %4985 = vst.msk [vmem:[%s6390_s17 + $0x160] sm:$0xff] %vm2781_vm7, %v4913_v50 }
 0x5b7   : > { %4986 = vst.msk [vmem:[%s6390_s17 + $0x168] sm:$0xff] %vm2781_vm7, %v4914_v30 }
 0x5b8   : > { %4987 = vst.msk [vmem:[%s6390_s17 + $0x170] sm:$0xff] %vm2781_vm7, %v4915_v29 }
 0x5b9   : > { %4988 = vst.msk [vmem:[%s6390_s17 + $0x178] sm:$0xff] %vm2781_vm7, %v4916_v27 }
 0x5ba   : > { %4989 = vst.msk [vmem:[%s6390_s17 + $0x180] sm:$0xff] %vm2781_vm7, %v4917_v25 }
 0x5bb   : > { %4990 = vst.msk [vmem:[%s6390_s17 + $0x188] sm:$0xff] %vm2781_vm7, %v4918_v53 }
 0x5bc   : > { %4991 = vst.msk [vmem:[%s6390_s17 + $0x190] sm:$0xff] %vm2781_vm7, %v4919_v38 }
 0x5bd   : > { %4992 = vst.msk [vmem:[%s6390_s17 + $0x198] sm:$0xff] %vm2781_vm7, %v4920_v18 }
 0x5be   : > { %4993 = vst.msk [vmem:[%s6390_s17 + $0x1a0] sm:$0xff] %vm2781_vm7, %v4921_v36 }
 0x5bf   : > { %4994 = vst.msk [vmem:[%s6390_s17 + $0x1a8] sm:$0xff] %vm2781_vm7, %v4922_v49 }
 0x5c0   : > { %4995 = vst.msk [vmem:[%s6390_s17 + $0x1b0] sm:$0xff] %vm2781_vm7, %v4923_v48 }
 0x5c1   : > { %4996 = vst.msk [vmem:[%s6390_s17 + $0x1b8] sm:$0xff] %vm2781_vm7, %v4924_v16 }
 0x5c2   : > { %4997 = vst.msk [vmem:[%s6390_s17 + $0x1c0] sm:$0xff] %vm2781_vm7, %v4925_v14 }
 0x5c3   : > { %4998 = vst.msk [vmem:[%s6390_s17 + $0x1c8] sm:$0xff] %vm2781_vm7, %v4926_v43 }
 0x5c4   : > { %4999 = vst.msk [vmem:[%s6390_s17 + $0x1d0] sm:$0xff] %vm2781_vm7, %v4927_v8 }
 0x5c5   : > { %5000 = vst.msk [vmem:[%s6390_s17 + $0x1d8] sm:$0xff] %vm2781_vm7, %v4928_v23 }
 0x5c6   : > { %5001 = vst.msk [vmem:[%s6390_s17 + $0x1e0] sm:$0xff] %vm2781_vm7, %v4929_v46 }
 0x5c7   : > { %5002 = vst.msk [vmem:[%s6390_s17 + $0x1e8] sm:$0xff] %vm2781_vm7, %v4930_v21 }
 0x5c8   : > { %5003 = vst.msk [vmem:[%s6390_s17 + $0x1f0] sm:$0xff] %vm2781_vm7, %v4931_v51 }
 0x5c9   : > { %5004 = vst.msk [vmem:[%s6390_s17 + $0x1f8] sm:$0xff] %vm2781_vm7, %v4932_v60 }
 0x5ca   : > { %5005 = vst.msk [vmem:[%s6390_s17 + $0x200] sm:$0xff] %vm2781_vm7, %v4933_v26 }
 0x5cb   : > { %5006 = vst.msk [vmem:[%s6390_s17 + $0x208] sm:$0xff] %vm2781_vm7, %v4934_v10 }
 0x5cc   : > { %5007 = vst.msk [vmem:[%s6390_s17 + $0x210] sm:$0xff] %vm2781_vm7, %v4935_v24 }
 0x5cd   : > { %5008 = vst.msk [vmem:[%s6390_s17 + $0x218] sm:$0xff] %vm2781_vm7, %v4936_v40 }
 0x5ce   : > { %5009 = vst.msk [vmem:[%s6390_s17 + $0x220] sm:$0xff] %vm2781_vm7, %v4937_v20 }
 0x5cf   : > { %5010 = vst.msk [vmem:[%s6390_s17 + $0x228] sm:$0xff] %vm2781_vm7, %v4938_v56 }
 0x5d0   : > { %5011 = vst.msk [vmem:[%s6390_s17 + $0x230] sm:$0xff] %vm2781_vm7, %v4939_v2 }
 0x5d1   : > { %5012 = vst.msk [vmem:[%s6390_s17 + $0x238] sm:$0xff] %vm2781_vm7, %v4940_v11 }
 0x5d2 PF: > { %s15_s22 = sadd.s32 1, %s6298_s22   ;;  %s9681_s18 = smov %s6290_s20 }
 0x5d3   : > { %p12_p9 = scmp.ge.s32.totalorder %s15_s22, 14   ;;  %s9682_s19 = smov %s6294_s21 }
 0x5d4   : > { %s9683_s20 = smov %s9686_s23  ;;  %s9684_s21 = smov %s9690_s24 }
 0x5d5   :  { %14 = sbr.rel (!%p12_p9) target bundleno = 3 (0x3), region = 89 }

</bundles_post_ra>
